<compile_context>
chip_gen: v5e
topology: v5e:2x2
jax: 0.10.0
libtpu: 0.0.40
codegen_flags: <defaults>
</compile_context>

<pallas_src>
import jax
import jax.numpy as jnp
from jax import lax
from jax.experimental import pallas as pl
from jax.experimental.pallas import tpu as pltpu

SUBLANE = 8
SQRT_2_OVER_PI = 0.7978845608028654
GELU_C = 0.044715


def _round_up(x, m):
    return (x + m - 1) // m * m


def _pick_k_tile(K, tk_max):
    """Largest divisor of K that is a multiple of 8 and <= tk_max."""
    cap = min(tk_max, K)
    cap -= cap % SUBLANE
    for tk in range(cap, SUBLANE - 1, -SUBLANE):
        if K % tk == 0:
            return tk
    return None


def _gelu_combo(v1):
    """v28 = v10 + v15 of the PyTorch graph, given v1 = conv1(x)."""
    v3 = v1 * v1
    v5 = (v3 * v1) * GELU_C                       # == v15 (= v1^3 * 0.044715)
    v7 = (v1 + v5) * SQRT_2_OVER_PI
    v10 = (v1 * 0.5) * (1.0 + jnp.tanh(v7))       # tanh-GELU
    return v10 + v5                               # v28


def _single_shot_kernel(w_ref, p_ref, b_ref, o_ref):
    """out_T(COUTP, tp) = gelu_combo(W(COUTP, K) @ patches_T(K, tp) + b)."""
    v1 = jnp.dot(w_ref[...], p_ref[...],
                 preferred_element_type=jnp.float32) + b_ref[...]
    o_ref[...] = _gelu_combo(v1)


def _k_tiled_kernel(w_ref, p_ref, b_ref, o_ref, acc_ref):
    """One (p, k) grid step of out_T = gelu_combo(W @ patches_T + b).

    w_ref   : (nk, COUTP, tk) f32  full weight, VMEM-resident for the grid
    p_ref   : (1, tk, tp)     f32  k-th slab of im2col patches, (K, P) layout
    b_ref   : (COUTP, 1)      f32  bias
    o_ref   : (COUTP, tp)     f32  v28 = v10 + v15
    acc_ref : (COUTP, tp)     f32  accumulator, persists along the k axis
    """
    k = pl.program_id(1)

    @pl.when(k == 0)
    def _():
        acc_ref[...] = jnp.zeros_like(acc_ref)

    acc_ref[...] += jnp.dot(w_ref[k], p_ref[0],
                            preferred_element_type=jnp.float32)

    @pl.when(k == pl.num_programs(1) - 1)
    def _():
        o_ref[...] = _gelu_combo(acc_ref[...] + b_ref[...])


def make_forward(w1, b1, *, stride=3, dilation=2,
                 tp_max=512, tk_max=2048,
                 fast_path_bytes=12 * 1024 * 1024,
                 vmem_limit_bytes=32 * 1024 * 1024):
    """Returns a jitted forward(x) computing v28 of the PyTorch graph."""
    Cout, Cin, KH, KW = map(int, w1.shape)
    K = Cin * KH * KW
    COUTP = _round_up(Cout, SUBLANE)

    # Parameter padding (Cout -> 8 sublanes) hoisted out of the per-call path.
    w_flat = jnp.pad(w1.reshape(Cout, K).astype(jnp.float32),
                     ((0, COUTP - Cout), (0, 0)))
    b_col = jnp.pad(b1.astype(jnp.float32).reshape(Cout, 1),
                    ((0, COUTP - Cout), (0, 0)))

    # K tiling without any zero-padding of K: tk divides K (K = 10000 here,
    # a multiple of 8).  Weight laid out (nk, COUTP, tk) so each k-slab's lane
    # dim equals the full last axis (no 128-divisibility requirement on tk).
    tk = _pick_k_tile(K, tk_max)
    assert tk is not None, "K must be a multiple of 8"   # 16*25*25 = 10000
    nk = K // tk
    w_tiled = w_flat.reshape(COUTP, nk, tk).transpose(1, 0, 2)

    @jax.jit
    def forward(x):
        N, C, H, W = x.shape
        assert C == Cin
        OH = (H - dilation * (KH - 1) - 1) // stride + 1
        OW = (W - dilation * (KW - 1) - 1) // stride + 1
        P = N * OH * OW

        # im2col via one conv-patches op, delivered channel-major ("CNHW") so
        # the (K, P) operand the kernel wants needs no gather / transpose.
        pT = lax.conv_general_dilated_patches(
            x.astype(jnp.float32), (KH, KW), (stride, stride), "VALID",
            rhs_dilation=(dilation, dilation),
            dimension_numbers=("NCHW", "OIHW", "CNHW"),
        ).reshape(K, P)

        # Lane (P) tile: full extent when small, else 512-wide lane-dense
        # tiles on a "parallel" grid axis (v7x megacore).  The partial last
        # tile is handled by Pallas boundary masking; garbage lanes there only
        # feed output columns beyond P, which are never written back.
        tp = P if P <= tp_max else tp_max
        np_tiles = pl.cdiv(P, tp)

        cost = pl.CostEstimate(
            flops=2 * COUTP * K * P,
            transcendentals=COUTP * P,
            bytes_accessed=4 * (COUTP * K + K * P + COUTP + COUTP * P),
        )

        if 2 * 4 * K * tp <= fast_path_bytes:
            # Small-problem fast path: whole K in one grid step -> no
            # accumulator scratch, no init/finalize gating, minimal steps.
            out_t = pl.pallas_call(
                _single_shot_kernel,
                out_shape=jax.ShapeDtypeStruct((COUTP, P), jnp.float32),
                grid_spec=pltpu.PrefetchScalarGridSpec(
                    num_scalar_prefetch=0,
                    grid=(np_tiles,),
                    in_specs=[
                        pl.BlockSpec((COUTP, K), lambda p: (0, 0)),
                        pl.BlockSpec((K, tp), lambda p: (0, p)),
                        pl.BlockSpec((COUTP, 1), lambda p: (0, 0)),
                    ],
                    out_specs=pl.BlockSpec((COUTP, tp), lambda p: (0, p)),
                ),
                compiler_params=pltpu.CompilerParams(
                    dimension_semantics=("parallel",),
                    vmem_limit_bytes=vmem_limit_bytes),
                cost_estimate=cost,
            )(w_flat, pT, b_col)
        else:
            # Streaming path: K tiled on the grid (reduction axis last), f32
            # VMEM accumulator, weight fully VMEM-resident for the whole grid.
            pT3 = pT.reshape(nk, tk, P)   # leading-axis split: no data copy
            out_t = pl.pallas_call(
                _k_tiled_kernel,
                out_shape=jax.ShapeDtypeStruct((COUTP, P), jnp.float32),
                grid_spec=pltpu.PrefetchScalarGridSpec(
                    num_scalar_prefetch=0,
                    grid=(np_tiles, nk),
                    in_specs=[
                        pl.BlockSpec((nk, COUTP, tk), lambda p, k: (0, 0, 0)),
                        pl.BlockSpec((1, tk, tp), lambda p, k: (k, 0, p)),
                        pl.BlockSpec((COUTP, 1), lambda p, k: (0, 0)),
                    ],
                    out_specs=pl.BlockSpec((COUTP, tp), lambda p, k: (0, p)),
                    scratch_shapes=[pltpu.VMEM((COUTP, tp), jnp.float32)],
                ),
                compiler_params=pltpu.CompilerParams(
                    dimension_semantics=("parallel", "arbitrary"),
                    vmem_limit_bytes=vmem_limit_bytes),
                cost_estimate=cost,
            )(w_tiled, pT3, b_col)

        # Crop the channel padding and restore NCHW.
        v28 = out_t[:Cout].reshape(Cout, N, OH, OW).transpose(1, 0, 2, 3)
        return v28

    return forward


def _reference_forward(x, w1, b1, *, stride=3, dilation=2):
    """Pure-JAX reference mirroring the PyTorch graph (for validation)."""
    v1 = lax.conv_general_dilated(
        x, w1, window_strides=(stride, stride), padding="VALID",
        rhs_dilation=(dilation, dilation),
        dimension_numbers=("NCHW", "OIHW", "NCHW"),
    ) + b1[None, :, None, None]
    v2 = v1 * 0.5
    v3 = v1 * v1
    v4 = v3 * v1
    v5 = v4 * 0.044715
    v6 = v1 + v5
    v7 = v6 * 0.7978845608028654
    v8 = jnp.tanh(v7)
    v9 = v8 + 1.0
    v10 = v2 * v9
    v15 = v4 * 0.044715
    return v10 + v15  # v28


if __name__ == "__main__":
    key = jax.random.PRNGKey(0)
    k_x, k_w1, k_b1, k_x2 = jax.random.split(key, 4)

    # conv1: Conv2d(16, 4, 25, stride=3, dilation=2); uniform +-1/sqrt(fan_in).
    fan_in1 = 16 * 25 * 25
    bound1 = 1.0 / (fan_in1 ** 0.5)
    w1 = jax.random.uniform(k_w1, (4, 16, 25, 25), jnp.float32, -bound1, bound1)
    b1 = jax.random.uniform(k_b1, (4,), jnp.float32, -bound1, bound1)
    # conv2 parameters never materialized: dead code w.r.t. returned v28.

    # Small shapes consistent with conv1 (effective kernel 2*(25-1)+1 = 49).
    N, C, H, W = 2, 16, 58, 58          # -> conv1 output spatial 4x4, P = 32
    x = jax.random.normal(k_x, (N, C, H, W), dtype=jnp.float32)

    forward = make_forward(w1, b1)      # exercises the single-shot fast path
    out = jax.block_until_ready(forward(x))
    ref = jax.block_until_ready(_reference_forward(x, w1, b1))
    assert out.shape == ref.shape == (N, 4, 4, 4), (out.shape, ref.shape)
    assert jnp.allclose(out, ref, atol=2e-4, rtol=2e-4), (
        "fast path mismatch, max abs err = %e"
        % float(jnp.max(jnp.abs(out - ref))))

    # Also exercise the K-tiled streaming path (multi p-tile + boundary mask).
    H2 = W2 = 100                        # -> output 18x18, P = 648 > tp_max
    x2 = jax.random.normal(k_x2, (N, C, H2, W2), dtype=jnp.float32)
    forward_stream = make_forward(w1, b1, fast_path_bytes=0)
    out2 = jax.block_until_ready(forward_stream(x2))
    ref2 = jax.block_until_ready(_reference_forward(x2, w1, b1))
    assert out2.shape == ref2.shape == (N, 4, 18, 18), (out2.shape, ref2.shape)
    assert jnp.allclose(out2, ref2, atol=2e-4, rtol=2e-4), (
        "streaming path mismatch, max abs err = %e"
        % float(jnp.max(jnp.abs(out2 - ref2))))

    print("KERNEL_OK")
</pallas_src>

<mosaic_0001>
module attributes {stable_mosaic.version = 11 : i64} {
  func.func @_single_shot_kernel(%arg0: i32, %arg1: memref<8x10000xf32, #tpu.memory_space<vmem>>, %arg2: memref<10000x32xf32, #tpu.memory_space<vmem>>, %arg3: memref<8x1xf32, #tpu.memory_space<vmem>>, %arg4: memref<8x32xf32, #tpu.memory_space<vmem>>) attributes {dimension_semantics = [#tpu.dimension_semantics<parallel>], iteration_bounds = array<i64: 1>, scalar_prefetch = 0 : i64, scratch_operands = 0 : i64, tpu.core_type = #tpu.core_type<tc>, window_params = [{pipeline_mode = #tpu.pipeline_mode<synchronous>, transform_indices = @transform_0, window_bounds = array<i64: 8, 10000>}, {transform_indices = @transform_1, window_bounds = array<i64: 10000, 32>}, {pipeline_mode = #tpu.pipeline_mode<synchronous>, transform_indices = @transform_2, window_bounds = array<i64: 8, 1>}, {transform_indices = @transform_3, window_bounds = array<i64: 8, 32>}]} {
    %c0 = arith.constant 0 : index
    %c0_0 = arith.constant 0 : index
    %0 = vector.load %arg1[%c0, %c0_0] : memref<8x10000xf32, #tpu.memory_space<vmem>>, vector<8x10000xf32>
    %c0_1 = arith.constant 0 : index
    %c0_2 = arith.constant 0 : index
    %1 = vector.load %arg2[%c0_1, %c0_2] : memref<10000x32xf32, #tpu.memory_space<vmem>>, vector<10000x32xf32>
    %cst = arith.constant dense<0.000000e+00> : vector<8x32xf32>
    %2 = tpu.matmul %0, %1, %cst {dimension_numbers = #tpu.dot_dimension_numbers<[1], [0], [0], [1], [0, 0, 1, 1], [], []>} : vector<8x10000xf32>, vector<10000x32xf32>, vector<8x32xf32> -> vector<8x32xf32>
    %c0_3 = arith.constant 0 : index
    %c0_4 = arith.constant 0 : index
    %3 = vector.load %arg3[%c0_3, %c0_4] : memref<8x1xf32, #tpu.memory_space<vmem>>, vector<8x1xf32>
    %4 = vector.broadcast %3 : vector<8x1xf32> to vector<8x32xf32>
    %5 = arith.addf %2, %4 : vector<8x32xf32>
    %6 = arith.mulf %5, %5 : vector<8x32xf32>
    %7 = arith.mulf %6, %5 : vector<8x32xf32>
    %cst_5 = arith.constant 4.471500e-02 : f32
    %8 = vector.broadcast %cst_5 : f32 to vector<8x32xf32>
    %9 = arith.mulf %7, %8 : vector<8x32xf32>
    %10 = arith.addf %5, %9 : vector<8x32xf32>
    %cst_6 = arith.constant 0.797884583 : f32
    %11 = vector.broadcast %cst_6 : f32 to vector<8x32xf32>
    %12 = arith.mulf %10, %11 : vector<8x32xf32>
    %cst_7 = arith.constant 5.000000e-01 : f32
    %13 = vector.broadcast %cst_7 : f32 to vector<8x32xf32>
    %14 = arith.mulf %5, %13 : vector<8x32xf32>
    %15 = math.tanh %12 : vector<8x32xf32>
    %cst_8 = arith.constant 1.000000e+00 : f32
    %16 = vector.broadcast %cst_8 : f32 to vector<8x32xf32>
    %17 = arith.addf %16, %15 : vector<8x32xf32>
    %18 = arith.mulf %14, %17 : vector<8x32xf32>
    %19 = arith.addf %18, %9 : vector<8x32xf32>
    %c0_9 = arith.constant 0 : index
    %c0_10 = arith.constant 0 : index
    %20 = vector.load %arg4[%c0_9, %c0_10] : memref<8x32xf32, #tpu.memory_space<vmem>>, vector<8x32xf32>
    tpu.vector_store %arg4[%c0_9, %c0_10], %19 {strides = array<i32>} : memref<8x32xf32, #tpu.memory_space<vmem>>, vector<8x32xf32>,
    return
  }
  func.func @transform_0(%arg0: i32) -> (i32, i32) {
    %c0_i32 = arith.constant 0 : i32
    %c0_i32_0 = arith.constant 0 : i32
    %c0_i32_1 = arith.constant 0 : i32
    return %c0_i32, %c0_i32_0 : i32, i32
  }
  func.func @transform_1(%arg0: i32) -> (i32, i32) {
    %c0_i32 = arith.constant 0 : i32
    %c0_i32_0 = arith.constant 0 : i32
    return %c0_i32, %arg0 : i32, i32
  }
  func.func @transform_2(%arg0: i32) -> (i32, i32) {
    %c0_i32 = arith.constant 0 : i32
    %c0_i32_0 = arith.constant 0 : i32
    %c0_i32_1 = arith.constant 0 : i32
    return %c0_i32, %c0_i32_0 : i32, i32
  }
  func.func @transform_3(%arg0: i32) -> (i32, i32) {
    %c0_i32 = arith.constant 0 : i32
    %c0_i32_0 = arith.constant 0 : i32
    return %c0_i32, %arg0 : i32, i32
  }
}

</mosaic_0001>

<bundles_post_ra>
// kernel: forward.1
= control target key start
LH: loop header
LB: loop body
LE: loop exit
PB: predicated region body
PF: predicated region fallthrough
CT: control target
= control target key end

     0   :  { %vm1349_vm0 = vcmask 130048   ;;  %vm2943_vm1 = vcmask 261120   ;;  %s6968_s1 = inlined_call_operand.vmem [shape: f32[10000,32], index: 1, kind: input, shape index: {}]   ;;  %s6969_s0 = inlined_call_operand.vmem [shape: f32[8,10000], index: 0, kind: input, shape index: {}]   ;;  %s6970_s2 = inlined_call_operand.vmem [shape: f32[8,1], index: 2, kind: input, shape index: {}]   ;;  %s6971_s3 = inlined_call_operand.vmem [shape: f32[8,32], index: 3, kind: output, shape index: {}]  }
   0x1   :  { %v108_v0 = vld [vmem:[%s6968_s1 + $0x78] sm:$0xff]  ;;  %v107_v2 = vld [vmem:[%s6968_s1 + $0x70] sm:$0xff]  ;;  %v106_v6 = vld [vmem:[%s6968_s1 + $0x68] sm:$0xff] }
   0x2   :  { %v140_v1 = vld [vmem:[%s6968_s1 + $0x178] sm:$0xff]  ;;  %1353 = vmatpush.msra.mxu0 %v108_v0  ;;  %v139_v4 = vld [vmem:[%s6968_s1 + $0x170] sm:$0xff]  ;;  %v138_v8 = vld [vmem:[%s6968_s1 + $0x168] sm:$0xff] }
   0x3   :  { %1393 = vmatpush.msra.mxu2 %v140_v1  ;;  %v124_v3 = vld [vmem:[%s6968_s1 + $0xf8] sm:$0xff]  ;;  %v123_v7 = vld [vmem:[%s6968_s1 + $0xf0] sm:$0xff]  ;;  %v122_v10 = vld [vmem:[%s6968_s1 + $0xe8] sm:$0xff] }
   0x4   :  { %v156_v5 = vld [vmem:[%s6968_s1 + $0x1f8] sm:$0xff]  ;;  %1373 = vmatpush.msra.mxu1 %v124_v3  ;;  %1354 = vmatpush.msra.mxu0 %v107_v2  ;;  %v155_v9 = vld [vmem:[%s6968_s1 + $0x1f0] sm:$0xff]  ;;  %v105_v11 = vld [vmem:[%s6968_s1 + $0x60] sm:$0xff] }
   0x5   :  { %1413 = vmatpush.msra.mxu3 %v156_v5  ;;  %1394 = vmatpush.msra.mxu2 %v139_v4  ;;  %v137_v12 = vld [vmem:[%s6968_s1 + $0x160] sm:$0xff]  ;;  %v154_v13 = vld [vmem:[%s6968_s1 + $0x1e8] sm:$0xff]  ;;  %v104_v16 = vld [vmem:[%s6968_s1 + $0x58] sm:$0xff] }
   0x6   :  { %1374 = vmatpush.msra.mxu1 %v123_v7  ;;  %1355 = vmatpush.msra.mxu0 %v106_v6  ;;  %v121_v14 = vld [vmem:[%s6968_s1 + $0xe0] sm:$0xff]  ;;  %v136_v17 = vld [vmem:[%s6968_s1 + $0x158] sm:$0xff]  ;;  %v103_v20 = vld [vmem:[%s6968_s1 + $0x50] sm:$0xff] }
   0x7   :  { %1414 = vmatpush.msra.mxu3 %v155_v9  ;;  %1395 = vmatpush.msra.mxu2 %v138_v8  ;;  %v153_v15 = vld [vmem:[%s6968_s1 + $0x1e0] sm:$0xff]  ;;  %v120_v18 = vld [vmem:[%s6968_s1 + $0xd8] sm:$0xff]  ;;  %v135_v21 = vld [vmem:[%s6968_s1 + $0x150] sm:$0xff] }
   0x8   :  { %1375 = vmatpush.msra.mxu1 %v122_v10  ;;  %1356 = vmatpush.msra.mxu0 %v105_v11  ;;  %v152_v19 = vld [vmem:[%s6968_s1 + $0x1d8] sm:$0xff]  ;;  %v119_v22 = vld [vmem:[%s6968_s1 + $0xd0] sm:$0xff]  ;;  %v102_v24 = vld [vmem:[%s6968_s1 + $0x48] sm:$0xff] }
   0x9   :  { %1415 = vmatpush.msra.mxu3 %v154_v13  ;;  %1396 = vmatpush.msra.mxu2 %v137_v12  ;;  %v151_v23 = vld [vmem:[%s6968_s1 + $0x1d0] sm:$0xff]  ;;  %v134_v25 = vld [vmem:[%s6968_s1 + $0x148] sm:$0xff]  ;;  %v101_v28 = vld [vmem:[%s6968_s1 + $0x40] sm:$0xff] }
   0xa   :  { %1376 = vmatpush.msra.mxu1 %v121_v14  ;;  %1357 = vmatpush.msra.mxu0 %v104_v16  ;;  %v118_v26 = vld [vmem:[%s6968_s1 + $0xc8] sm:$0xff]  ;;  %v133_v29 = vld [vmem:[%s6968_s1 + $0x140] sm:$0xff]  ;;  %v100_v32 = vld [vmem:[%s6968_s1 + $0x38] sm:$0xff] }
   0xb   :  { %1416 = vmatpush.msra.mxu3 %v153_v15  ;;  %1397 = vmatpush.msra.mxu2 %v136_v17  ;;  %v150_v27 = vld [vmem:[%s6968_s1 + $0x1c8] sm:$0xff]  ;;  %v117_v30 = vld [vmem:[%s6968_s1 + $0xc0] sm:$0xff]  ;;  %v132_v33 = vld [vmem:[%s6968_s1 + $0x138] sm:$0xff] }
   0xc   :  { %1377 = vmatpush.msra.mxu1 %v120_v18  ;;  %1358 = vmatpush.msra.mxu0 %v103_v20  ;;  %v149_v31 = vld [vmem:[%s6968_s1 + $0x1c0] sm:$0xff]  ;;  %v116_v34 = vld [vmem:[%s6968_s1 + $0xb8] sm:$0xff]  ;;  %v99_v36 = vld [vmem:[%s6968_s1 + $0x30] sm:$0xff] }
   0xd   :  { %1417 = vmatpush.msra.mxu3 %v152_v19  ;;  %1398 = vmatpush.msra.mxu2 %v135_v21  ;;  %v148_v35 = vld [vmem:[%s6968_s1 + $0x1b8] sm:$0xff]  ;;  %v131_v37 = vld [vmem:[%s6968_s1 + $0x130] sm:$0xff]  ;;  %v98_v40 = vld [vmem:[%s6968_s1 + $0x28] sm:$0xff] }
   0xe   :  { %1378 = vmatpush.msra.mxu1 %v119_v22  ;;  %1359 = vmatpush.msra.mxu0 %v102_v24  ;;  %v115_v38 = vld [vmem:[%s6968_s1 + $0xb0] sm:$0xff]  ;;  %v130_v41 = vld [vmem:[%s6968_s1 + $0x128] sm:$0xff]  ;;  %v97_v44 = vld [vmem:[%s6968_s1 + $0x20] sm:$0xff] }
   0xf   :  { %1418 = vmatpush.msra.mxu3 %v151_v23  ;;  %1399 = vmatpush.msra.mxu2 %v134_v25  ;;  %v147_v39 = vld [vmem:[%s6968_s1 + $0x1b0] sm:$0xff]  ;;  %v114_v42 = vld [vmem:[%s6968_s1 + $0xa8] sm:$0xff]  ;;  %v129_v45 = vld [vmem:[%s6968_s1 + $0x120] sm:$0xff] }
  0x10   :  { %1379 = vmatpush.msra.mxu1 %v118_v26  ;;  %1360 = vmatpush.msra.mxu0 %v101_v28  ;;  %v146_v43 = vld [vmem:[%s6968_s1 + $0x1a8] sm:$0xff]  ;;  %v113_v46 = vld [vmem:[%s6968_s1 + $0xa0] sm:$0xff]  ;;  %v96_v48 = vld [vmem:[%s6968_s1 + $0x18] sm:$0xff] }
  0x11   :  { %1419 = vmatpush.msra.mxu3 %v150_v27  ;;  %1400 = vmatpush.msra.mxu2 %v133_v29  ;;  %v145_v47 = vld [vmem:[%s6968_s1 + $0x1a0] sm:$0xff]  ;;  %v128_v49 = vld [vmem:[%s6968_s1 + $0x118] sm:$0xff]  ;;  %v95_v52 = vld [vmem:[%s6968_s1 + $0x10] sm:$0xff] }
  0x12   :  { %1380 = vmatpush.msra.mxu1 %v117_v30  ;;  %1361 = vmatpush.msra.mxu0 %v100_v32  ;;  %v112_v50 = vld [vmem:[%s6968_s1 + $0x98] sm:$0xff]  ;;  %v127_v53 = vld [vmem:[%s6968_s1 + $0x110] sm:$0xff]  ;;  %v94_v56 = vld [vmem:[%s6968_s1 + $0x8] sm:$0xff] }
  0x13   :  { %1420 = vmatpush.msra.mxu3 %v149_v31  ;;  %1401 = vmatpush.msra.mxu2 %v132_v33  ;;  %v144_v51 = vld [vmem:[%s6968_s1 + $0x198] sm:$0xff]  ;;  %v111_v54 = vld [vmem:[%s6968_s1 + $0x90] sm:$0xff]  ;;  %v126_v57 = vld [vmem:[%s6968_s1 + $0x108] sm:$0xff] }
  0x14   :  { %1381 = vmatpush.msra.mxu1 %v116_v34  ;;  %1362 = vmatpush.msra.mxu0 %v99_v36  ;;  %v143_v55 = vld [vmem:[%s6968_s1 + $0x190] sm:$0xff]  ;;  %v110_v58 = vld [vmem:[%s6968_s1 + $0x88] sm:$0xff]  ;;  %v93_v60 = vld [vmem:[%s6968_s1] sm:$0xff] }
  0x15   :  { %1421 = vmatpush.msra.mxu3 %v148_v35  ;;  %1402 = vmatpush.msra.mxu2 %v131_v37  ;;  %v142_v59 = vld [vmem:[%s6968_s1 + $0x188] sm:$0xff]  ;;  %v125_v61 = vld [vmem:[%s6968_s1 + $0x100] sm:$0xff]  ;;  %v172_v62 = vld [vmem:[%s6968_s1 + $0x278] sm:$0xff] }
  0x16   :  { %1382 = vmatpush.msra.mxu1 %v115_v38  ;;  %1363 = vmatpush.msra.mxu0 %v98_v40  ;;  %v204_v63 = vld [vmem:[%s6968_s1 + $0x378] sm:$0xff]  ;;  %v109_v0 = vld [vmem:[%s6968_s1 + $0x80] sm:$0xff]  ;;  %v171_v2 = vld [vmem:[%s6968_s1 + $0x270] sm:$0xff] }
  0x17   :  { %1422 = vmatpush.msra.mxu3 %v147_v39  ;;  %1403 = vmatpush.msra.mxu2 %v130_v41  ;;  %v141_v1 = vld [vmem:[%s6968_s1 + $0x180] sm:$0xff]  ;;  %v188_v3 = vld [vmem:[%s6968_s1 + $0x2f8] sm:$0xff]  ;;  %v203_v4 = vld [vmem:[%s6968_s1 + $0x370] sm:$0xff] }
  0x18   :  { %1383 = vmatpush.msra.mxu1 %v114_v42  ;;  %1364 = vmatpush.msra.mxu0 %v97_v44  ;;  %v220_v5 = vld [vmem:[%s6968_s1 + $0x3f8] sm:$0xff]  ;;  %v170_v6 = vld [vmem:[%s6968_s1 + $0x268] sm:$0xff]  ;;  %v187_v7 = vld [vmem:[%s6968_s1 + $0x2f0] sm:$0xff] }
  0x19   :  { %1423 = vmatpush.msra.mxu3 %v146_v43  ;;  %1404 = vmatpush.msra.mxu2 %v129_v45  ;;  %v202_v8 = vld [vmem:[%s6968_s1 + $0x368] sm:$0xff]  ;;  %v219_v9 = vld [vmem:[%s6968_s1 + $0x3f0] sm:$0xff]  ;;  %v169_v10 = vld [vmem:[%s6968_s1 + $0x260] sm:$0xff] }
  0x1a   :  { %1384 = vmatpush.msra.mxu1 %v113_v46  ;;  %1365 = vmatpush.msra.mxu0 %v96_v48  ;;  %v186_v11 = vld [vmem:[%s6968_s1 + $0x2e8] sm:$0xff]  ;;  %v201_v12 = vld [vmem:[%s6968_s1 + $0x360] sm:$0xff]  ;;  %v168_v14 = vld [vmem:[%s6968_s1 + $0x258] sm:$0xff] }
  0x1b   :  { %1424 = vmatpush.msra.mxu3 %v145_v47  ;;  %1405 = vmatpush.msra.mxu2 %v128_v49  ;;  %v218_v13 = vld [vmem:[%s6968_s1 + $0x3e8] sm:$0xff]  ;;  %v185_v15 = vld [vmem:[%s6968_s1 + $0x2e0] sm:$0xff]  ;;  %v200_v16 = vld [vmem:[%s6968_s1 + $0x358] sm:$0xff] }
  0x1c   :  { %1385 = vmatpush.msra.mxu1 %v112_v50  ;;  %1366 = vmatpush.msra.mxu0 %v95_v52  ;;  %v217_v17 = vld [vmem:[%s6968_s1 + $0x3e0] sm:$0xff]  ;;  %v167_v18 = vld [vmem:[%s6968_s1 + $0x250] sm:$0xff]  ;;  %v184_v19 = vld [vmem:[%s6968_s1 + $0x2d8] sm:$0xff] }
  0x1d   :  { %1425 = vmatpush.msra.mxu3 %v144_v51  ;;  %1406 = vmatpush.msra.mxu2 %v127_v53  ;;  %v199_v20 = vld [vmem:[%s6968_s1 + $0x350] sm:$0xff]  ;;  %v216_v21 = vld [vmem:[%s6968_s1 + $0x3d8] sm:$0xff]  ;;  %v166_v22 = vld [vmem:[%s6968_s1 + $0x248] sm:$0xff] }
  0x1e   :  { %1386 = vmatpush.msra.mxu1 %v111_v54  ;;  %1367 = vmatpush.msra.mxu0 %v94_v56  ;;  %v183_v23 = vld [vmem:[%s6968_s1 + $0x2d0] sm:$0xff]  ;;  %v198_v24 = vld [vmem:[%s6968_s1 + $0x348] sm:$0xff]  ;;  %v165_v26 = vld [vmem:[%s6968_s1 + $0x240] sm:$0xff] }
  0x1f   :  { %1426 = vmatpush.msra.mxu3 %v143_v55  ;;  %1407 = vmatpush.msra.mxu2 %v126_v57  ;;  %v215_v25 = vld [vmem:[%s6968_s1 + $0x3d0] sm:$0xff]  ;;  %v182_v27 = vld [vmem:[%s6968_s1 + $0x2c8] sm:$0xff]  ;;  %v197_v28 = vld [vmem:[%s6968_s1 + $0x340] sm:$0xff] }
  0x20   :  { %1387 = vmatpush.msra.mxu1 %v110_v58  ;;  %1368 = vmatpush.msra.mxu0 %v93_v60  ;;  %v214_v29 = vld [vmem:[%s6968_s1 + $0x3c8] sm:$0xff]  ;;  %v164_v30 = vld [vmem:[%s6968_s1 + $0x238] sm:$0xff]  ;;  %v181_v31 = vld [vmem:[%s6968_s1 + $0x2c0] sm:$0xff] }
  0x21   :  { %1427 = vmatpush.msra.mxu3 %v142_v59  ;;  %1408 = vmatpush.msra.mxu2 %v125_v61  ;;  %v196_v32 = vld [vmem:[%s6968_s1 + $0x338] sm:$0xff]  ;;  %v213_v33 = vld [vmem:[%s6968_s1 + $0x3c0] sm:$0xff]  ;;  %v163_v34 = vld [vmem:[%s6968_s1 + $0x230] sm:$0xff] }
  0x22   :  { %1433 = vmatpush.msrb.mxu0 %v172_v62  ;;  %1388 = vmatpush.msra.mxu1 %v109_v0  ;;  %v180_v35 = vld [vmem:[%s6968_s1 + $0x2b8] sm:$0xff]  ;;  %v195_v36 = vld [vmem:[%s6968_s1 + $0x330] sm:$0xff]  ;;  %v162_v38 = vld [vmem:[%s6968_s1 + $0x228] sm:$0xff] }
  0x23   :  { %1473 = vmatpush.msrb.mxu2 %v204_v63  ;;  %1428 = vmatpush.msra.mxu3 %v141_v1  ;;  %v212_v37 = vld [vmem:[%s6968_s1 + $0x3b8] sm:$0xff]  ;;  %v179_v39 = vld [vmem:[%s6968_s1 + $0x2b0] sm:$0xff]  ;;  %v194_v40 = vld [vmem:[%s6968_s1 + $0x328] sm:$0xff] }
  0x24   :  { %1434 = vmatpush.msrb.mxu0 %v171_v2  ;;  %1453 = vmatpush.msrb.mxu1 %v188_v3  ;;  %v211_v41 = vld [vmem:[%s6968_s1 + $0x3b0] sm:$0xff]  ;;  %v161_v42 = vld [vmem:[%s6968_s1 + $0x220] sm:$0xff]  ;;  %v178_v43 = vld [vmem:[%s6968_s1 + $0x2a8] sm:$0xff] }
  0x25   :  { %1474 = vmatpush.msrb.mxu2 %v203_v4  ;;  %1493 = vmatpush.msrb.mxu3 %v220_v5  ;;  %v193_v44 = vld [vmem:[%s6968_s1 + $0x320] sm:$0xff]  ;;  %v210_v45 = vld [vmem:[%s6968_s1 + $0x3a8] sm:$0xff]  ;;  %v160_v46 = vld [vmem:[%s6968_s1 + $0x218] sm:$0xff] }
  0x26   :  { %1435 = vmatpush.msrb.mxu0 %v170_v6  ;;  %1454 = vmatpush.msrb.mxu1 %v187_v7  ;;  %v177_v47 = vld [vmem:[%s6968_s1 + $0x2a0] sm:$0xff]  ;;  %v192_v48 = vld [vmem:[%s6968_s1 + $0x318] sm:$0xff]  ;;  %v159_v50 = vld [vmem:[%s6968_s1 + $0x210] sm:$0xff] }
  0x27   :  { %1475 = vmatpush.msrb.mxu2 %v202_v8  ;;  %1494 = vmatpush.msrb.mxu3 %v219_v9  ;;  %v209_v49 = vld [vmem:[%s6968_s1 + $0x3a0] sm:$0xff]  ;;  %v176_v51 = vld [vmem:[%s6968_s1 + $0x298] sm:$0xff]  ;;  %v191_v52 = vld [vmem:[%s6968_s1 + $0x310] sm:$0xff] }
  0x28   :  { %1436 = vmatpush.msrb.mxu0 %v169_v10  ;;  %1455 = vmatpush.msrb.mxu1 %v186_v11  ;;  %v208_v53 = vld [vmem:[%s6968_s1 + $0x398] sm:$0xff]  ;;  %v158_v54 = vld [vmem:[%s6968_s1 + $0x208] sm:$0xff]  ;;  %v175_v55 = vld [vmem:[%s6968_s1 + $0x290] sm:$0xff] }
  0x29   :  { %1476 = vmatpush.msrb.mxu2 %v201_v12  ;;  %1495 = vmatpush.msrb.mxu3 %v218_v13  ;;  %v190_v56 = vld [vmem:[%s6968_s1 + $0x308] sm:$0xff]  ;;  %v207_v57 = vld [vmem:[%s6968_s1 + $0x390] sm:$0xff]  ;;  %v157_v59 = vld [vmem:[%s6968_s1 + $0x200] sm:$0xff] }
  0x2a   :  { %1437 = vmatpush.msrb.mxu0 %v168_v14  ;;  %1456 = vmatpush.msrb.mxu1 %v185_v15  ;;  %v16_v58 = vld [vmem:[%s6969_s0 + $0x10] sm:$0xff]  ;;  %v174_v60 = vld [vmem:[%s6968_s1 + $0x288] sm:$0xff]  ;;  %v189_v61 = vld [vmem:[%s6968_s1 + $0x300] sm:$0xff] }
  0x2b   :  { %1477 = vmatpush.msrb.mxu2 %v200_v16  ;;  %1496 = vmatpush.msrb.mxu3 %v217_v17  ;;  %v206_v62 = vld [vmem:[%s6968_s1 + $0x388] sm:$0xff]  ;;  %v14_v63 = vld [vmem:[%s6969_s0] sm:$0xff]  ;;  %v17_v0 = vld [vmem:[%s6969_s0 + $0x18] sm:$0xff] }
  0x2c   :  { %1438 = vmatpush.msrb.mxu0 %v167_v18  ;;  %1457 = vmatpush.msrb.mxu1 %v184_v19  ;;  %v236_v1 = vld [vmem:[%s6968_s1 + $0x478] sm:$0xff]  ;;  %v173_v3 = vld [vmem:[%s6968_s1 + $0x280] sm:$0xff]  ;;  %v15_v5 = vld [vmem:[%s6969_s0 + $0x8] sm:$0xff] }
  0x2d   :  { %1478 = vmatpush.msrb.mxu2 %v199_v20  ;;  %1497 = vmatpush.msrb.mxu3 %v216_v21  ;;  %v268_v2 = vld [vmem:[%s6968_s1 + $0x578] sm:$0xff]  ;;  %v205_v4 = vld [vmem:[%s6968_s1 + $0x380] sm:$0xff]  ;;  %v235_v6 = vld [vmem:[%s6968_s1 + $0x470] sm:$0xff] }
  0x2e   :  { %1439 = vmatpush.msrb.mxu0 %v166_v22  ;;  %1458 = vmatpush.msrb.mxu1 %v183_v23  ;;  %v252_v7 = vld [vmem:[%s6968_s1 + $0x4f8] sm:$0xff]  ;;  %v267_v8 = vld [vmem:[%s6968_s1 + $0x570] sm:$0xff]  ;;  %v234_v10 = vld [vmem:[%s6968_s1 + $0x468] sm:$0xff] }
  0x2f   :  { %1479 = vmatpush.msrb.mxu2 %v198_v24  ;;  %1498 = vmatpush.msrb.mxu3 %v215_v25  ;;  %v284_v9 = vld [vmem:[%s6968_s1 + $0x5f8] sm:$0xff]  ;;  %v251_v11 = vld [vmem:[%s6968_s1 + $0x4f0] sm:$0xff]  ;;  %v266_v12 = vld [vmem:[%s6968_s1 + $0x568] sm:$0xff] }
  0x30   :  { %1440 = vmatpush.msrb.mxu0 %v165_v26  ;;  %1459 = vmatpush.msrb.mxu1 %v182_v27  ;;  %v283_v13 = vld [vmem:[%s6968_s1 + $0x5f0] sm:$0xff]  ;;  %v233_v15 = vld [vmem:[%s6968_s1 + $0x460] sm:$0xff]  ;;  %v250_v16 = vld [vmem:[%s6968_s1 + $0x4e8] sm:$0xff] }
  0x31   :  { %1480 = vmatpush.msrb.mxu2 %v197_v28  ;;  %1499 = vmatpush.msrb.mxu3 %v214_v29  ;;  %v20_v14 = vld [vmem:[%s6969_s0 + $0x30] sm:$0xff]  ;;  %v265_v17 = vld [vmem:[%s6968_s1 + $0x560] sm:$0xff]  ;;  %v282_v18 = vld [vmem:[%s6968_s1 + $0x5e8] sm:$0xff]  ;;  %v2954_v29 = vmov 0  }
  0x32   :  { %1441 = vmatpush.msrb.mxu0 %v164_v30  ;;  %1460 = vmatpush.msrb.mxu1 %v181_v31  ;;  %v18_v19 = vld [vmem:[%s6969_s0 + $0x20] sm:$0xff]  ;;  %v21_v20 = vld [vmem:[%s6969_s0 + $0x38] sm:$0xff]  ;;  %v19_v25 = vld [vmem:[%s6969_s0 + $0x28] sm:$0xff] }
  0x33   :  { %1481 = vmatpush.msrb.mxu2 %v196_v32  ;;  %1500 = vmatpush.msrb.mxu3 %v213_v33  ;;  %v232_v21 = vld [vmem:[%s6968_s1 + $0x458] sm:$0xff]  ;;  %v249_v22 = vld [vmem:[%s6968_s1 + $0x4e0] sm:$0xff]  ;;  %v231_v26 = vld [vmem:[%s6968_s1 + $0x450] sm:$0xff] }
  0x34   :  { %1442 = vmatpush.msrb.mxu0 %v163_v34  ;;  %1461 = vmatpush.msrb.mxu1 %v180_v35  ;;  %v264_v23 = vld [vmem:[%s6968_s1 + $0x558] sm:$0xff]  ;;  %v281_v24 = vld [vmem:[%s6968_s1 + $0x5e0] sm:$0xff]  ;;  %v263_v28 = vld [vmem:[%s6968_s1 + $0x550] sm:$0xff] }
  0x35   :  { %1482 = vmatpush.msrb.mxu2 %v195_v36  ;;  %1501 = vmatpush.msrb.mxu3 %v212_v37  ;;  %v248_v27 = vld [vmem:[%s6968_s1 + $0x4d8] sm:$0xff]  ;;  %v1343_v31 = vld [vmem:[%s6970_s2] sm:$0xff]  ;;  %v230_v32 = vld [vmem:[%s6968_s1 + $0x448] sm:$0xff] }
  0x36   :  { %1443 = vmatpush.msrb.mxu0 %v162_v38  ;;  %1462 = vmatpush.msrb.mxu1 %v179_v39  ;;  %v280_v30 = vld [vmem:[%s6968_s1 + $0x5d8] sm:$0xff]  ;;  %v247_v33 = vld [vmem:[%s6968_s1 + $0x4d0] sm:$0xff]  ;;  %v262_v34 = vld [vmem:[%s6968_s1 + $0x548] sm:$0xff] }
  0x37   :  { %1483 = vmatpush.msrb.mxu2 %v194_v40  ;;  %1502 = vmatpush.msrb.mxu3 %v211_v41  ;;  %v279_v35 = vld [vmem:[%s6968_s1 + $0x5d0] sm:$0xff]  ;;  %v229_v36 = vld [vmem:[%s6968_s1 + $0x440] sm:$0xff]  ;;  %v246_v37 = vld [vmem:[%s6968_s1 + $0x4c8] sm:$0xff] }
  0x38   :  { %1444 = vmatpush.msrb.mxu0 %v161_v42  ;;  %1463 = vmatpush.msrb.mxu1 %v178_v43  ;;  %v261_v38 = vld [vmem:[%s6968_s1 + $0x540] sm:$0xff]  ;;  %v278_v39 = vld [vmem:[%s6968_s1 + $0x5c8] sm:$0xff]  ;;  %v228_v40 = vld [vmem:[%s6968_s1 + $0x438] sm:$0xff] }
  0x39   :  { %1484 = vmatpush.msrb.mxu2 %v193_v44  ;;  %1503 = vmatpush.msrb.mxu3 %v210_v45  ;;  %v245_v41 = vld [vmem:[%s6968_s1 + $0x4c0] sm:$0xff]  ;;  %v260_v42 = vld [vmem:[%s6968_s1 + $0x538] sm:$0xff]  ;;  %v227_v44 = vld [vmem:[%s6968_s1 + $0x430] sm:$0xff] }
  0x3a   :  { %1445 = vmatpush.msrb.mxu0 %v160_v46  ;;  %1464 = vmatpush.msrb.mxu1 %v177_v47  ;;  %v277_v43 = vld [vmem:[%s6968_s1 + $0x5c0] sm:$0xff]  ;;  %v244_v45 = vld [vmem:[%s6968_s1 + $0x4b8] sm:$0xff]  ;;  %v259_v46 = vld [vmem:[%s6968_s1 + $0x530] sm:$0xff] }
  0x3b   :  { %1485 = vmatpush.msrb.mxu2 %v192_v48  ;;  %1504 = vmatpush.msrb.mxu3 %v209_v49  ;;  %v276_v47 = vld [vmem:[%s6968_s1 + $0x5b8] sm:$0xff]  ;;  %v226_v48 = vld [vmem:[%s6968_s1 + $0x428] sm:$0xff]  ;;  %v243_v49 = vld [vmem:[%s6968_s1 + $0x4b0] sm:$0xff] }
  0x3c   :  { %1446 = vmatpush.msrb.mxu0 %v159_v50  ;;  %1465 = vmatpush.msrb.mxu1 %v176_v51  ;;  %v258_v50 = vld [vmem:[%s6968_s1 + $0x528] sm:$0xff]  ;;  %v275_v51 = vld [vmem:[%s6968_s1 + $0x5b0] sm:$0xff] }
  0x3d   :  { %1486 = vmatpush.msrb.mxu2 %v191_v52  ;;  %1505 = vmatpush.msrb.mxu3 %v208_v53  ;;  %v225_v52 = vld [vmem:[%s6968_s1 + $0x420] sm:$0xff]  ;;  %v242_v53 = vld [vmem:[%s6968_s1 + $0x4a8] sm:$0xff] }
  0x3e   :  { %1447 = vmatpush.msrb.mxu0 %v158_v54  ;;  %1466 = vmatpush.msrb.mxu1 %v175_v55  ;;  %v257_v54 = vld [vmem:[%s6968_s1 + $0x520] sm:$0xff]  ;;  %v274_v55 = vld [vmem:[%s6968_s1 + $0x5a8] sm:$0xff] }
  0x3f   :  { %1487 = vmatpush.msrb.mxu2 %v190_v56  ;;  %1506 = vmatpush.msrb.mxu3 %v207_v57  ;;  %v224_v56 = vld [vmem:[%s6968_s1 + $0x418] sm:$0xff]  ;;  %v241_v57 = vld [vmem:[%s6968_s1 + $0x4a0] sm:$0xff] }
  0x40   :  { %1409 = vmatmul.f32.vlgmr.msra.gmra.mxu2 %v16_v58  ;;  %1448 = vmatpush.msrb.mxu0 %v157_v59  ;;  %v256_v58 = vld [vmem:[%s6968_s1 + $0x518] sm:$0xff]  ;;  %v273_v59 = vld [vmem:[%s6968_s1 + $0x5a0] sm:$0xff] }
  0x41   :  { %1467 = vmatpush.msrb.mxu1 %v174_v60  ;;  %1488 = vmatpush.msrb.mxu2 %v189_v61  ;;  %v223_v60 = vld [vmem:[%s6968_s1 + $0x410] sm:$0xff]  ;;  %v240_v61 = vld [vmem:[%s6968_s1 + $0x498] sm:$0xff] }
  0x42   :  { %1507 = vmatpush.msrb.mxu3 %v206_v62  ;;  %1369 = vmatmul.f32.vlgmr.msra.gmra.mxu0 %v14_v63  ;;  %v255_v62 = vld [vmem:[%s6968_s1 + $0x510] sm:$0xff]  ;;  %v272_v63 = vld [vmem:[%s6968_s1 + $0x598] sm:$0xff] }
  0x43   :  { %1429 = vmatmul.f32.vlgmr.msra.gmra.mxu3 %v17_v0  ;;  %1513 = vmatpush.msra.mxu0 %v236_v1  ;;  %v222_v0 = vld [vmem:[%s6968_s1 + $0x408] sm:$0xff]  ;;  %v239_v1 = vld [vmem:[%s6968_s1 + $0x490] sm:$0xff] }
  0x44   :  { %1553 = vmatpush.msra.mxu2 %v268_v2  ;;  %1468 = vmatpush.msrb.mxu1 %v173_v3  ;;  %v254_v2 = vld [vmem:[%s6968_s1 + $0x508] sm:$0xff]  ;;  %v271_v3 = vld [vmem:[%s6968_s1 + $0x590] sm:$0xff] }
  0x45   :  { %1508 = vmatpush.msrb.mxu3 %v205_v4  ;;  %1389 = vmatmul.f32.vlgmr.msra.gmra.mxu1 %v15_v5  ;;  %v221_v4 = vld [vmem:[%s6968_s1 + $0x400] sm:$0xff]  ;;  %v238_v5 = vld [vmem:[%s6968_s1 + $0x488] sm:$0xff] }
  0x46   :  { %1514 = vmatpush.msra.mxu0 %v235_v6  ;;  %1533 = vmatpush.msra.mxu1 %v252_v7  ;;  %v253_v6 = vld [vmem:[%s6968_s1 + $0x500] sm:$0xff]  ;;  %v270_v7 = vld [vmem:[%s6968_s1 + $0x588] sm:$0xff] }
  0x47   :  { %1554 = vmatpush.msra.mxu2 %v267_v8  ;;  %1573 = vmatpush.msra.mxu3 %v284_v9  ;;  %v22_v8 = vld [vmem:[%s6969_s0 + $0x40] sm:$0xff]  ;;  %v24_v9 = vld [vmem:[%s6969_s0 + $0x50] sm:$0xff] }
  0x48   :  { %1515 = vmatpush.msra.mxu0 %v234_v10  ;;  %1534 = vmatpush.msra.mxu1 %v251_v11  ;;  %v300_v10 = vld [vmem:[%s6968_s1 + $0x678] sm:$0xff] }
  0x49   :  { %1555 = vmatpush.msra.mxu2 %v266_v12  ;;  %1574 = vmatpush.msra.mxu3 %v283_v13  ;;  %v332_v11 = vld [vmem:[%s6968_s1 + $0x778] sm:$0xff]  ;;  %v237_v12 = vld [vmem:[%s6968_s1 + $0x480] sm:$0xff] }
  0x4a   :  { %1489 = vmatmul.f32.vlgmr.msrb.gmra.mxu2 %v20_v14  ;;  %1516 = vmatpush.msra.mxu0 %v233_v15  ;;  %v269_v13 = vld [vmem:[%s6968_s1 + $0x580] sm:$0xff]  ;;  %v23_v14 = vld [vmem:[%s6969_s0 + $0x48] sm:$0xff]  ;;  %v25_v15 = vld [vmem:[%s6969_s0 + $0x58] sm:$0xff] }
  0x4b   :  { %1535 = vmatpush.msra.mxu1 %v250_v16  ;;  %1556 = vmatpush.msra.mxu2 %v265_v17  ;;  %v299_v16 = vld [vmem:[%s6968_s1 + $0x670] sm:$0xff]  ;;  %v316_v17 = vld [vmem:[%s6968_s1 + $0x6f8] sm:$0xff] }
  0x4c   :  { %1575 = vmatpush.msra.mxu3 %v282_v18  ;;  %1449 = vmatmul.f32.vlgmr.msrb.gmra.mxu0 %v18_v19  ;;  %v331_v18 = vld [vmem:[%s6968_s1 + $0x770] sm:$0xff]  ;;  %v348_v19 = vld [vmem:[%s6968_s1 + $0x7f8] sm:$0xff] }
  0x4d   :  { %1509 = vmatmul.f32.vlgmr.msrb.gmra.mxu3 %v21_v20  ;;  %1517 = vmatpush.msra.mxu0 %v232_v21  ;;  %v298_v20 = vld [vmem:[%s6968_s1 + $0x668] sm:$0xff]  ;;  %v315_v21 = vld [vmem:[%s6968_s1 + $0x6f0] sm:$0xff] }
  0x4e   :  { %1536 = vmatpush.msra.mxu1 %v249_v22  ;;  %1557 = vmatpush.msra.mxu2 %v264_v23  ;;  %v330_v22 = vld [vmem:[%s6968_s1 + $0x768] sm:$0xff]  ;;  %v347_v23 = vld [vmem:[%s6968_s1 + $0x7f0] sm:$0xff] }
  0x4f   :  { %1576 = vmatpush.msra.mxu3 %v281_v24  ;;  %2951 = vset.pattern.permute.xlu0 %v2954_v29  ;;  %v297_v24 = vld [vmem:[%s6968_s1 + $0x660] sm:$0xff] }
  0x50   :  { %1469 = vmatmul.f32.vlgmr.msrb.gmra.mxu1 %v19_v25  ;;  %1518 = vmatpush.msra.mxu0 %v231_v26  ;;  %v314_v25 = vld [vmem:[%s6968_s1 + $0x6e8] sm:$0xff]  ;;  %v329_v26 = vld [vmem:[%s6968_s1 + $0x760] sm:$0xff] }
  0x51   :  { %1537 = vmatpush.msra.mxu1 %v248_v27  ;;  %1558 = vmatpush.msra.mxu2 %v263_v28  ;;  %v346_v27 = vld [vmem:[%s6968_s1 + $0x7e8] sm:$0xff]  ;;  %v296_v28 = vld [vmem:[%s6968_s1 + $0x658] sm:$0xff]  ;;  %v313_v29 = vld [vmem:[%s6968_s1 + $0x6e0] sm:$0xff] }
  0x52   :  { %1577 = vmatpush.msra.mxu3 %v280_v30  ;;  %1346 = vperm.xlu0 %2951, %v1343_v31   ;;  %v328_v30 = vld [vmem:[%s6968_s1 + $0x758] sm:$0xff]  ;;  %v345_v31 = vld [vmem:[%s6968_s1 + $0x7e0] sm:$0xff] }
  0x53   :  { %1519 = vmatpush.msra.mxu0 %v230_v32  ;;  %1538 = vmatpush.msra.mxu1 %v247_v33  ;;  %v295_v32 = vld [vmem:[%s6968_s1 + $0x650] sm:$0xff]  ;;  %v312_v33 = vld [vmem:[%s6968_s1 + $0x6d8] sm:$0xff] }
  0x54   :  { %1559 = vmatpush.msra.mxu2 %v262_v34  ;;  %1578 = vmatpush.msra.mxu3 %v279_v35  ;;  %v327_v34 = vld [vmem:[%s6968_s1 + $0x750] sm:$0xff]  ;;  %v344_v35 = vld [vmem:[%s6968_s1 + $0x7d8] sm:$0xff] }
  0x55   :  { %1520 = vmatpush.msra.mxu0 %v229_v36  ;;  %1539 = vmatpush.msra.mxu1 %v246_v37  ;;  %v294_v36 = vld [vmem:[%s6968_s1 + $0x648] sm:$0xff]  ;;  %v311_v37 = vld [vmem:[%s6968_s1 + $0x6d0] sm:$0xff] }
  0x56   :  { %1560 = vmatpush.msra.mxu2 %v261_v38  ;;  %1579 = vmatpush.msra.mxu3 %v278_v39  ;;  %v326_v38 = vld [vmem:[%s6968_s1 + $0x748] sm:$0xff]  ;;  %v343_v39 = vld [vmem:[%s6968_s1 + $0x7d0] sm:$0xff] }
  0x57   :  { %1521 = vmatpush.msra.mxu0 %v228_v40  ;;  %1540 = vmatpush.msra.mxu1 %v245_v41  ;;  %v293_v40 = vld [vmem:[%s6968_s1 + $0x640] sm:$0xff]  ;;  %v310_v41 = vld [vmem:[%s6968_s1 + $0x6c8] sm:$0xff] }
  0x58   :  { %1561 = vmatpush.msra.mxu2 %v260_v42  ;;  %1580 = vmatpush.msra.mxu3 %v277_v43  ;;  %v325_v42 = vld [vmem:[%s6968_s1 + $0x740] sm:$0xff]  ;;  %v342_v43 = vld [vmem:[%s6968_s1 + $0x7c8] sm:$0xff] }
  0x59   :  { %1522 = vmatpush.msra.mxu0 %v227_v44  ;;  %1541 = vmatpush.msra.mxu1 %v244_v45  ;;  %v292_v44 = vld [vmem:[%s6968_s1 + $0x638] sm:$0xff]  ;;  %v309_v45 = vld [vmem:[%s6968_s1 + $0x6c0] sm:$0xff] }
  0x5a   :  { %1562 = vmatpush.msra.mxu2 %v259_v46  ;;  %1581 = vmatpush.msra.mxu3 %v276_v47  ;;  %v324_v46 = vld [vmem:[%s6968_s1 + $0x738] sm:$0xff]  ;;  %v341_v47 = vld [vmem:[%s6968_s1 + $0x7c0] sm:$0xff] }
  0x5b   :  { %1523 = vmatpush.msra.mxu0 %v226_v48  ;;  %1542 = vmatpush.msra.mxu1 %v243_v49  ;;  %v291_v48 = vld [vmem:[%s6968_s1 + $0x630] sm:$0xff]  ;;  %v308_v49 = vld [vmem:[%s6968_s1 + $0x6b8] sm:$0xff] }
  0x5c   :  { %1563 = vmatpush.msra.mxu2 %v258_v50  ;;  %1582 = vmatpush.msra.mxu3 %v275_v51  ;;  %v323_v50 = vld [vmem:[%s6968_s1 + $0x730] sm:$0xff]  ;;  %v340_v51 = vld [vmem:[%s6968_s1 + $0x7b8] sm:$0xff] }
  0x5d   :  { %1524 = vmatpush.msra.mxu0 %v225_v52  ;;  %1543 = vmatpush.msra.mxu1 %v242_v53  ;;  %v290_v52 = vld [vmem:[%s6968_s1 + $0x628] sm:$0xff]  ;;  %v307_v53 = vld [vmem:[%s6968_s1 + $0x6b0] sm:$0xff] }
  0x5e   :  { %1564 = vmatpush.msra.mxu2 %v257_v54  ;;  %1583 = vmatpush.msra.mxu3 %v274_v55  ;;  %v322_v54 = vld [vmem:[%s6968_s1 + $0x728] sm:$0xff]  ;;  %v339_v55 = vld [vmem:[%s6968_s1 + $0x7b0] sm:$0xff] }
  0x5f   :  { %1525 = vmatpush.msra.mxu0 %v224_v56  ;;  %1544 = vmatpush.msra.mxu1 %v241_v57  ;;  %v289_v56 = vld [vmem:[%s6968_s1 + $0x620] sm:$0xff]  ;;  %v306_v57 = vld [vmem:[%s6968_s1 + $0x6a8] sm:$0xff] }
  0x60   :  { %1565 = vmatpush.msra.mxu2 %v256_v58  ;;  %1584 = vmatpush.msra.mxu3 %v273_v59  ;;  %v321_v58 = vld [vmem:[%s6968_s1 + $0x720] sm:$0xff]  ;;  %v338_v59 = vld [vmem:[%s6968_s1 + $0x7a8] sm:$0xff] }
  0x61   :  { %1526 = vmatpush.msra.mxu0 %v223_v60  ;;  %1545 = vmatpush.msra.mxu1 %v240_v61  ;;  %v288_v60 = vld [vmem:[%s6968_s1 + $0x618] sm:$0xff]  ;;  %v305_v61 = vld [vmem:[%s6968_s1 + $0x6a0] sm:$0xff] }
  0x62   :  { %1566 = vmatpush.msra.mxu2 %v255_v62  ;;  %1585 = vmatpush.msra.mxu3 %v272_v63  ;;  %v320_v62 = vld [vmem:[%s6968_s1 + $0x718] sm:$0xff]  ;;  %v337_v63 = vld [vmem:[%s6968_s1 + $0x7a0] sm:$0xff] }
  0x63   :  { %1527 = vmatpush.msra.mxu0 %v222_v0  ;;  %1546 = vmatpush.msra.mxu1 %v239_v1  ;;  %v287_v0 = vld [vmem:[%s6968_s1 + $0x610] sm:$0xff]  ;;  %v304_v1 = vld [vmem:[%s6968_s1 + $0x698] sm:$0xff] }
  0x64   :  { %1567 = vmatpush.msra.mxu2 %v254_v2  ;;  %1586 = vmatpush.msra.mxu3 %v271_v3  ;;  %v319_v2 = vld [vmem:[%s6968_s1 + $0x710] sm:$0xff]  ;;  %v336_v3 = vld [vmem:[%s6968_s1 + $0x798] sm:$0xff] }
  0x65   :  { %1528 = vmatpush.msra.mxu0 %v221_v4  ;;  %1547 = vmatpush.msra.mxu1 %v238_v5  ;;  %v286_v4 = vld [vmem:[%s6968_s1 + $0x608] sm:$0xff]  ;;  %v303_v5 = vld [vmem:[%s6968_s1 + $0x690] sm:$0xff] }
  0x66   :  { %1568 = vmatpush.msra.mxu2 %v253_v6  ;;  %1587 = vmatpush.msra.mxu3 %v270_v7  ;;  %v318_v6 = vld [vmem:[%s6968_s1 + $0x708] sm:$0xff]  ;;  %v335_v7 = vld [vmem:[%s6968_s1 + $0x790] sm:$0xff] }
  0x67   :  { %1529 = vmatmul.f32.vlgmr.msra.gmra.mxu0 %v22_v8  ;;  %1569 = vmatmul.f32.vlgmr.msra.gmra.mxu2 %v24_v9  ;;  %v285_v8 = vld [vmem:[%s6968_s1 + $0x600] sm:$0xff]  ;;  %v302_v9 = vld [vmem:[%s6968_s1 + $0x688] sm:$0xff] }
  0x68   :  { %1593 = vmatpush.msrb.mxu0 %v300_v10  ;;  %1633 = vmatpush.msrb.mxu2 %v332_v11  ;;  %v317_v10 = vld [vmem:[%s6968_s1 + $0x700] sm:$0xff]  ;;  %v334_v11 = vld [vmem:[%s6968_s1 + $0x788] sm:$0xff] }
  0x69   :  { %1548 = vmatpush.msra.mxu1 %v237_v12  ;;  %1588 = vmatpush.msra.mxu3 %v269_v13  ;;  %v26_v12 = vld [vmem:[%s6969_s0 + $0x60] sm:$0xff]  ;;  %v28_v13 = vld [vmem:[%s6969_s0 + $0x70] sm:$0xff] }
  0x6a   :  { %1549 = vmatmul.f32.vlgmr.msra.gmra.mxu1 %v23_v14  ;;  %1589 = vmatmul.f32.vlgmr.msra.gmra.mxu3 %v25_v15  ;;  %v364_v14 = vld [vmem:[%s6968_s1 + $0x878] sm:$0xff] }
  0x6b   :  { %1594 = vmatpush.msrb.mxu0 %v299_v16  ;;  %1613 = vmatpush.msrb.mxu1 %v316_v17  ;;  %v396_v15 = vld [vmem:[%s6968_s1 + $0x978] sm:$0xff]  ;;  %v301_v16 = vld [vmem:[%s6968_s1 + $0x680] sm:$0xff] }
  0x6c   :  { %1634 = vmatpush.msrb.mxu2 %v331_v18  ;;  %1653 = vmatpush.msrb.mxu3 %v348_v19  ;;  %v333_v17 = vld [vmem:[%s6968_s1 + $0x780] sm:$0xff]  ;;  %v27_v18 = vld [vmem:[%s6969_s0 + $0x68] sm:$0xff]  ;;  %v29_v19 = vld [vmem:[%s6969_s0 + $0x78] sm:$0xff] }
  0x6d   :  { %1595 = vmatpush.msrb.mxu0 %v298_v20  ;;  %1614 = vmatpush.msrb.mxu1 %v315_v21  ;;  %v363_v20 = vld [vmem:[%s6968_s1 + $0x870] sm:$0xff]  ;;  %v380_v21 = vld [vmem:[%s6968_s1 + $0x8f8] sm:$0xff] }
  0x6e   :  { %1635 = vmatpush.msrb.mxu2 %v330_v22  ;;  %1654 = vmatpush.msrb.mxu3 %v347_v23  ;;  %v395_v22 = vld [vmem:[%s6968_s1 + $0x970] sm:$0xff]  ;;  %v412_v23 = vld [vmem:[%s6968_s1 + $0x9f8] sm:$0xff] }
  0x6f   :  { %1596 = vmatpush.msrb.mxu0 %v297_v24  ;;  %1615 = vmatpush.msrb.mxu1 %v314_v25  ;;  %v362_v24 = vld [vmem:[%s6968_s1 + $0x868] sm:$0xff]  ;;  %v379_v25 = vld [vmem:[%s6968_s1 + $0x8f0] sm:$0xff] }
  0x70   :  { %1636 = vmatpush.msrb.mxu2 %v329_v26  ;;  %1655 = vmatpush.msrb.mxu3 %v346_v27  ;;  %v394_v26 = vld [vmem:[%s6968_s1 + $0x968] sm:$0xff]  ;;  %v411_v27 = vld [vmem:[%s6968_s1 + $0x9f0] sm:$0xff] }
  0x71   :  { %1597 = vmatpush.msrb.mxu0 %v296_v28  ;;  %1616 = vmatpush.msrb.mxu1 %v313_v29  ;;  %v361_v28 = vld [vmem:[%s6968_s1 + $0x860] sm:$0xff]  ;;  %v378_v29 = vld [vmem:[%s6968_s1 + $0x8e8] sm:$0xff] }
  0x72   :  { %1637 = vmatpush.msrb.mxu2 %v328_v30  ;;  %1656 = vmatpush.msrb.mxu3 %v345_v31  ;;  %v393_v30 = vld [vmem:[%s6968_s1 + $0x960] sm:$0xff]  ;;  %v410_v31 = vld [vmem:[%s6968_s1 + $0x9e8] sm:$0xff] }
  0x73   :  { %1598 = vmatpush.msrb.mxu0 %v295_v32  ;;  %1617 = vmatpush.msrb.mxu1 %v312_v33  ;;  %v360_v32 = vld [vmem:[%s6968_s1 + $0x858] sm:$0xff]  ;;  %v377_v33 = vld [vmem:[%s6968_s1 + $0x8e0] sm:$0xff] }
  0x74   :  { %1638 = vmatpush.msrb.mxu2 %v327_v34  ;;  %1657 = vmatpush.msrb.mxu3 %v344_v35  ;;  %v392_v34 = vld [vmem:[%s6968_s1 + $0x958] sm:$0xff]  ;;  %v409_v35 = vld [vmem:[%s6968_s1 + $0x9e0] sm:$0xff] }
  0x75   :  { %1599 = vmatpush.msrb.mxu0 %v294_v36  ;;  %1618 = vmatpush.msrb.mxu1 %v311_v37  ;;  %v359_v36 = vld [vmem:[%s6968_s1 + $0x850] sm:$0xff]  ;;  %v376_v37 = vld [vmem:[%s6968_s1 + $0x8d8] sm:$0xff] }
  0x76   :  { %1639 = vmatpush.msrb.mxu2 %v326_v38  ;;  %1658 = vmatpush.msrb.mxu3 %v343_v39  ;;  %v391_v38 = vld [vmem:[%s6968_s1 + $0x950] sm:$0xff]  ;;  %v408_v39 = vld [vmem:[%s6968_s1 + $0x9d8] sm:$0xff] }
  0x77   :  { %1600 = vmatpush.msrb.mxu0 %v293_v40  ;;  %1619 = vmatpush.msrb.mxu1 %v310_v41  ;;  %v358_v40 = vld [vmem:[%s6968_s1 + $0x848] sm:$0xff]  ;;  %v375_v41 = vld [vmem:[%s6968_s1 + $0x8d0] sm:$0xff] }
  0x78   :  { %1640 = vmatpush.msrb.mxu2 %v325_v42  ;;  %1659 = vmatpush.msrb.mxu3 %v342_v43  ;;  %v390_v42 = vld [vmem:[%s6968_s1 + $0x948] sm:$0xff]  ;;  %v407_v43 = vld [vmem:[%s6968_s1 + $0x9d0] sm:$0xff] }
  0x79   :  { %1601 = vmatpush.msrb.mxu0 %v292_v44  ;;  %1620 = vmatpush.msrb.mxu1 %v309_v45  ;;  %v357_v44 = vld [vmem:[%s6968_s1 + $0x840] sm:$0xff]  ;;  %v374_v45 = vld [vmem:[%s6968_s1 + $0x8c8] sm:$0xff] }
  0x7a   :  { %1641 = vmatpush.msrb.mxu2 %v324_v46  ;;  %1660 = vmatpush.msrb.mxu3 %v341_v47  ;;  %v389_v46 = vld [vmem:[%s6968_s1 + $0x940] sm:$0xff]  ;;  %v406_v47 = vld [vmem:[%s6968_s1 + $0x9c8] sm:$0xff] }
  0x7b   :  { %1602 = vmatpush.msrb.mxu0 %v291_v48  ;;  %1621 = vmatpush.msrb.mxu1 %v308_v49  ;;  %v356_v48 = vld [vmem:[%s6968_s1 + $0x838] sm:$0xff]  ;;  %v373_v49 = vld [vmem:[%s6968_s1 + $0x8c0] sm:$0xff] }
  0x7c   :  { %1642 = vmatpush.msrb.mxu2 %v323_v50  ;;  %1661 = vmatpush.msrb.mxu3 %v340_v51  ;;  %v388_v50 = vld [vmem:[%s6968_s1 + $0x938] sm:$0xff]  ;;  %v405_v51 = vld [vmem:[%s6968_s1 + $0x9c0] sm:$0xff] }
  0x7d   :  { %1603 = vmatpush.msrb.mxu0 %v290_v52  ;;  %1622 = vmatpush.msrb.mxu1 %v307_v53  ;;  %v355_v52 = vld [vmem:[%s6968_s1 + $0x830] sm:$0xff]  ;;  %v372_v53 = vld [vmem:[%s6968_s1 + $0x8b8] sm:$0xff] }
  0x7e   :  { %1643 = vmatpush.msrb.mxu2 %v322_v54  ;;  %1662 = vmatpush.msrb.mxu3 %v339_v55  ;;  %v387_v54 = vld [vmem:[%s6968_s1 + $0x930] sm:$0xff]  ;;  %v404_v55 = vld [vmem:[%s6968_s1 + $0x9b8] sm:$0xff] }
  0x7f   :  { %1604 = vmatpush.msrb.mxu0 %v289_v56  ;;  %1623 = vmatpush.msrb.mxu1 %v306_v57  ;;  %v354_v56 = vld [vmem:[%s6968_s1 + $0x828] sm:$0xff]  ;;  %v371_v57 = vld [vmem:[%s6968_s1 + $0x8b0] sm:$0xff] }
  0x80   :  { %1644 = vmatpush.msrb.mxu2 %v321_v58  ;;  %1663 = vmatpush.msrb.mxu3 %v338_v59  ;;  %v386_v58 = vld [vmem:[%s6968_s1 + $0x928] sm:$0xff]  ;;  %v403_v59 = vld [vmem:[%s6968_s1 + $0x9b0] sm:$0xff] }
  0x81   :  { %1605 = vmatpush.msrb.mxu0 %v288_v60  ;;  %1624 = vmatpush.msrb.mxu1 %v305_v61  ;;  %v353_v60 = vld [vmem:[%s6968_s1 + $0x820] sm:$0xff]  ;;  %v370_v61 = vld [vmem:[%s6968_s1 + $0x8a8] sm:$0xff] }
  0x82   :  { %1645 = vmatpush.msrb.mxu2 %v320_v62  ;;  %1664 = vmatpush.msrb.mxu3 %v337_v63  ;;  %v385_v62 = vld [vmem:[%s6968_s1 + $0x920] sm:$0xff]  ;;  %v402_v63 = vld [vmem:[%s6968_s1 + $0x9a8] sm:$0xff] }
  0x83   :  { %1606 = vmatpush.msrb.mxu0 %v287_v0  ;;  %1625 = vmatpush.msrb.mxu1 %v304_v1  ;;  %v352_v0 = vld [vmem:[%s6968_s1 + $0x818] sm:$0xff]  ;;  %v369_v1 = vld [vmem:[%s6968_s1 + $0x8a0] sm:$0xff] }
  0x84   :  { %1646 = vmatpush.msrb.mxu2 %v319_v2  ;;  %1665 = vmatpush.msrb.mxu3 %v336_v3  ;;  %v384_v2 = vld [vmem:[%s6968_s1 + $0x918] sm:$0xff]  ;;  %v401_v3 = vld [vmem:[%s6968_s1 + $0x9a0] sm:$0xff] }
  0x85   :  { %1607 = vmatpush.msrb.mxu0 %v286_v4  ;;  %1626 = vmatpush.msrb.mxu1 %v303_v5  ;;  %v351_v4 = vld [vmem:[%s6968_s1 + $0x810] sm:$0xff]  ;;  %v368_v5 = vld [vmem:[%s6968_s1 + $0x898] sm:$0xff] }
  0x86   :  { %1647 = vmatpush.msrb.mxu2 %v318_v6  ;;  %1666 = vmatpush.msrb.mxu3 %v335_v7  ;;  %v383_v6 = vld [vmem:[%s6968_s1 + $0x910] sm:$0xff]  ;;  %v400_v7 = vld [vmem:[%s6968_s1 + $0x998] sm:$0xff] }
  0x87   :  { %1608 = vmatpush.msrb.mxu0 %v285_v8  ;;  %1627 = vmatpush.msrb.mxu1 %v302_v9  ;;  %v350_v8 = vld [vmem:[%s6968_s1 + $0x808] sm:$0xff]  ;;  %v367_v9 = vld [vmem:[%s6968_s1 + $0x890] sm:$0xff] }
  0x88   :  { %1648 = vmatpush.msrb.mxu2 %v317_v10  ;;  %1667 = vmatpush.msrb.mxu3 %v334_v11  ;;  %v382_v10 = vld [vmem:[%s6968_s1 + $0x908] sm:$0xff]  ;;  %v399_v11 = vld [vmem:[%s6968_s1 + $0x990] sm:$0xff] }
  0x89   :  { %1609 = vmatmul.f32.vlgmr.msrb.gmra.mxu0 %v26_v12  ;;  %1649 = vmatmul.f32.vlgmr.msrb.gmra.mxu2 %v28_v13  ;;  %v349_v12 = vld [vmem:[%s6968_s1 + $0x800] sm:$0xff]  ;;  %v366_v13 = vld [vmem:[%s6968_s1 + $0x888] sm:$0xff] }
  0x8a   :  { %1673 = vmatpush.msra.mxu0 %v364_v14  ;;  %1713 = vmatpush.msra.mxu2 %v396_v15  ;;  %v381_v14 = vld [vmem:[%s6968_s1 + $0x900] sm:$0xff]  ;;  %v398_v15 = vld [vmem:[%s6968_s1 + $0x988] sm:$0xff] }
  0x8b   :  { %1628 = vmatpush.msrb.mxu1 %v301_v16  ;;  %1668 = vmatpush.msrb.mxu3 %v333_v17  ;;  %v30_v16 = vld [vmem:[%s6969_s0 + $0x80] sm:$0xff]  ;;  %v32_v17 = vld [vmem:[%s6969_s0 + $0x90] sm:$0xff] }
  0x8c   :  { %1629 = vmatmul.f32.vlgmr.msrb.gmra.mxu1 %v27_v18  ;;  %1669 = vmatmul.f32.vlgmr.msrb.gmra.mxu3 %v29_v19  ;;  %v428_v18 = vld [vmem:[%s6968_s1 + $0xa78] sm:$0xff] }
  0x8d   :  { %1674 = vmatpush.msra.mxu0 %v363_v20  ;;  %1693 = vmatpush.msra.mxu1 %v380_v21  ;;  %v460_v19 = vld [vmem:[%s6968_s1 + $0xb78] sm:$0xff]  ;;  %v365_v20 = vld [vmem:[%s6968_s1 + $0x880] sm:$0xff] }
  0x8e   :  { %1714 = vmatpush.msra.mxu2 %v395_v22  ;;  %1733 = vmatpush.msra.mxu3 %v412_v23  ;;  %v397_v21 = vld [vmem:[%s6968_s1 + $0x980] sm:$0xff]  ;;  %v31_v22 = vld [vmem:[%s6969_s0 + $0x88] sm:$0xff]  ;;  %v33_v23 = vld [vmem:[%s6969_s0 + $0x98] sm:$0xff] }
  0x8f   :  { %1675 = vmatpush.msra.mxu0 %v362_v24  ;;  %1694 = vmatpush.msra.mxu1 %v379_v25  ;;  %v427_v24 = vld [vmem:[%s6968_s1 + $0xa70] sm:$0xff]  ;;  %v444_v25 = vld [vmem:[%s6968_s1 + $0xaf8] sm:$0xff] }
  0x90   :  { %1715 = vmatpush.msra.mxu2 %v394_v26  ;;  %1734 = vmatpush.msra.mxu3 %v411_v27  ;;  %v459_v26 = vld [vmem:[%s6968_s1 + $0xb70] sm:$0xff]  ;;  %v476_v27 = vld [vmem:[%s6968_s1 + $0xbf8] sm:$0xff] }
  0x91   :  { %1676 = vmatpush.msra.mxu0 %v361_v28  ;;  %1695 = vmatpush.msra.mxu1 %v378_v29  ;;  %v426_v28 = vld [vmem:[%s6968_s1 + $0xa68] sm:$0xff]  ;;  %v443_v29 = vld [vmem:[%s6968_s1 + $0xaf0] sm:$0xff] }
  0x92   :  { %1716 = vmatpush.msra.mxu2 %v393_v30  ;;  %1735 = vmatpush.msra.mxu3 %v410_v31  ;;  %v458_v30 = vld [vmem:[%s6968_s1 + $0xb68] sm:$0xff]  ;;  %v475_v31 = vld [vmem:[%s6968_s1 + $0xbf0] sm:$0xff] }
  0x93   :  { %1677 = vmatpush.msra.mxu0 %v360_v32  ;;  %1696 = vmatpush.msra.mxu1 %v377_v33  ;;  %v425_v32 = vld [vmem:[%s6968_s1 + $0xa60] sm:$0xff]  ;;  %v442_v33 = vld [vmem:[%s6968_s1 + $0xae8] sm:$0xff] }
  0x94   :  { %1717 = vmatpush.msra.mxu2 %v392_v34  ;;  %1736 = vmatpush.msra.mxu3 %v409_v35  ;;  %v457_v34 = vld [vmem:[%s6968_s1 + $0xb60] sm:$0xff]  ;;  %v474_v35 = vld [vmem:[%s6968_s1 + $0xbe8] sm:$0xff] }
  0x95   :  { %1678 = vmatpush.msra.mxu0 %v359_v36  ;;  %1697 = vmatpush.msra.mxu1 %v376_v37  ;;  %v424_v36 = vld [vmem:[%s6968_s1 + $0xa58] sm:$0xff]  ;;  %v441_v37 = vld [vmem:[%s6968_s1 + $0xae0] sm:$0xff] }
  0x96   :  { %1718 = vmatpush.msra.mxu2 %v391_v38  ;;  %1737 = vmatpush.msra.mxu3 %v408_v39  ;;  %v456_v38 = vld [vmem:[%s6968_s1 + $0xb58] sm:$0xff]  ;;  %v473_v39 = vld [vmem:[%s6968_s1 + $0xbe0] sm:$0xff] }
  0x97   :  { %1679 = vmatpush.msra.mxu0 %v358_v40  ;;  %1698 = vmatpush.msra.mxu1 %v375_v41  ;;  %v423_v40 = vld [vmem:[%s6968_s1 + $0xa50] sm:$0xff]  ;;  %v440_v41 = vld [vmem:[%s6968_s1 + $0xad8] sm:$0xff] }
  0x98   :  { %1719 = vmatpush.msra.mxu2 %v390_v42  ;;  %1738 = vmatpush.msra.mxu3 %v407_v43  ;;  %v455_v42 = vld [vmem:[%s6968_s1 + $0xb50] sm:$0xff]  ;;  %v472_v43 = vld [vmem:[%s6968_s1 + $0xbd8] sm:$0xff] }
  0x99   :  { %1680 = vmatpush.msra.mxu0 %v357_v44  ;;  %1699 = vmatpush.msra.mxu1 %v374_v45  ;;  %v422_v44 = vld [vmem:[%s6968_s1 + $0xa48] sm:$0xff]  ;;  %v439_v45 = vld [vmem:[%s6968_s1 + $0xad0] sm:$0xff] }
  0x9a   :  { %1720 = vmatpush.msra.mxu2 %v389_v46  ;;  %1739 = vmatpush.msra.mxu3 %v406_v47  ;;  %v454_v46 = vld [vmem:[%s6968_s1 + $0xb48] sm:$0xff]  ;;  %v471_v47 = vld [vmem:[%s6968_s1 + $0xbd0] sm:$0xff] }
  0x9b   :  { %1681 = vmatpush.msra.mxu0 %v356_v48  ;;  %1700 = vmatpush.msra.mxu1 %v373_v49  ;;  %v421_v48 = vld [vmem:[%s6968_s1 + $0xa40] sm:$0xff]  ;;  %v438_v49 = vld [vmem:[%s6968_s1 + $0xac8] sm:$0xff] }
  0x9c   :  { %1721 = vmatpush.msra.mxu2 %v388_v50  ;;  %1740 = vmatpush.msra.mxu3 %v405_v51  ;;  %v453_v50 = vld [vmem:[%s6968_s1 + $0xb40] sm:$0xff]  ;;  %v470_v51 = vld [vmem:[%s6968_s1 + $0xbc8] sm:$0xff] }
  0x9d   :  { %1682 = vmatpush.msra.mxu0 %v355_v52  ;;  %1701 = vmatpush.msra.mxu1 %v372_v53  ;;  %v420_v52 = vld [vmem:[%s6968_s1 + $0xa38] sm:$0xff]  ;;  %v437_v53 = vld [vmem:[%s6968_s1 + $0xac0] sm:$0xff] }
  0x9e   :  { %1722 = vmatpush.msra.mxu2 %v387_v54  ;;  %1741 = vmatpush.msra.mxu3 %v404_v55  ;;  %v452_v54 = vld [vmem:[%s6968_s1 + $0xb38] sm:$0xff]  ;;  %v469_v55 = vld [vmem:[%s6968_s1 + $0xbc0] sm:$0xff] }
  0x9f   :  { %1683 = vmatpush.msra.mxu0 %v354_v56  ;;  %1702 = vmatpush.msra.mxu1 %v371_v57  ;;  %v419_v56 = vld [vmem:[%s6968_s1 + $0xa30] sm:$0xff]  ;;  %v436_v57 = vld [vmem:[%s6968_s1 + $0xab8] sm:$0xff] }
  0xa0   :  { %1723 = vmatpush.msra.mxu2 %v386_v58  ;;  %1742 = vmatpush.msra.mxu3 %v403_v59  ;;  %v451_v58 = vld [vmem:[%s6968_s1 + $0xb30] sm:$0xff]  ;;  %v468_v59 = vld [vmem:[%s6968_s1 + $0xbb8] sm:$0xff] }
  0xa1   :  { %1684 = vmatpush.msra.mxu0 %v353_v60  ;;  %1703 = vmatpush.msra.mxu1 %v370_v61  ;;  %v418_v60 = vld [vmem:[%s6968_s1 + $0xa28] sm:$0xff]  ;;  %v435_v61 = vld [vmem:[%s6968_s1 + $0xab0] sm:$0xff] }
  0xa2   :  { %1724 = vmatpush.msra.mxu2 %v385_v62  ;;  %1743 = vmatpush.msra.mxu3 %v402_v63  ;;  %v450_v62 = vld [vmem:[%s6968_s1 + $0xb28] sm:$0xff]  ;;  %v467_v63 = vld [vmem:[%s6968_s1 + $0xbb0] sm:$0xff] }
  0xa3   :  { %1685 = vmatpush.msra.mxu0 %v352_v0  ;;  %1704 = vmatpush.msra.mxu1 %v369_v1  ;;  %v417_v0 = vld [vmem:[%s6968_s1 + $0xa20] sm:$0xff]  ;;  %v434_v1 = vld [vmem:[%s6968_s1 + $0xaa8] sm:$0xff] }
  0xa4   :  { %1725 = vmatpush.msra.mxu2 %v384_v2  ;;  %1744 = vmatpush.msra.mxu3 %v401_v3  ;;  %v449_v2 = vld [vmem:[%s6968_s1 + $0xb20] sm:$0xff]  ;;  %v466_v3 = vld [vmem:[%s6968_s1 + $0xba8] sm:$0xff] }
  0xa5   :  { %1686 = vmatpush.msra.mxu0 %v351_v4  ;;  %1705 = vmatpush.msra.mxu1 %v368_v5  ;;  %v416_v4 = vld [vmem:[%s6968_s1 + $0xa18] sm:$0xff]  ;;  %v433_v5 = vld [vmem:[%s6968_s1 + $0xaa0] sm:$0xff] }
  0xa6   :  { %1726 = vmatpush.msra.mxu2 %v383_v6  ;;  %1745 = vmatpush.msra.mxu3 %v400_v7  ;;  %v448_v6 = vld [vmem:[%s6968_s1 + $0xb18] sm:$0xff]  ;;  %v465_v7 = vld [vmem:[%s6968_s1 + $0xba0] sm:$0xff] }
  0xa7   :  { %1687 = vmatpush.msra.mxu0 %v350_v8  ;;  %1706 = vmatpush.msra.mxu1 %v367_v9  ;;  %v415_v8 = vld [vmem:[%s6968_s1 + $0xa10] sm:$0xff]  ;;  %v432_v9 = vld [vmem:[%s6968_s1 + $0xa98] sm:$0xff] }
  0xa8   :  { %1727 = vmatpush.msra.mxu2 %v382_v10  ;;  %1746 = vmatpush.msra.mxu3 %v399_v11  ;;  %v447_v10 = vld [vmem:[%s6968_s1 + $0xb10] sm:$0xff]  ;;  %v464_v11 = vld [vmem:[%s6968_s1 + $0xb98] sm:$0xff] }
  0xa9   :  { %1688 = vmatpush.msra.mxu0 %v349_v12  ;;  %1707 = vmatpush.msra.mxu1 %v366_v13  ;;  %v414_v12 = vld [vmem:[%s6968_s1 + $0xa08] sm:$0xff]  ;;  %v431_v13 = vld [vmem:[%s6968_s1 + $0xa90] sm:$0xff] }
  0xaa   :  { %1728 = vmatpush.msra.mxu2 %v381_v14  ;;  %1747 = vmatpush.msra.mxu3 %v398_v15  ;;  %v446_v14 = vld [vmem:[%s6968_s1 + $0xb08] sm:$0xff]  ;;  %v463_v15 = vld [vmem:[%s6968_s1 + $0xb90] sm:$0xff] }
  0xab   :  { %1689 = vmatmul.f32.vlgmr.msra.gmra.mxu0 %v30_v16  ;;  %1729 = vmatmul.f32.vlgmr.msra.gmra.mxu2 %v32_v17  ;;  %v413_v16 = vld [vmem:[%s6968_s1 + $0xa00] sm:$0xff]  ;;  %v430_v17 = vld [vmem:[%s6968_s1 + $0xa88] sm:$0xff] }
  0xac   :  { %1753 = vmatpush.msrb.mxu0 %v428_v18  ;;  %1793 = vmatpush.msrb.mxu2 %v460_v19  ;;  %v445_v18 = vld [vmem:[%s6968_s1 + $0xb00] sm:$0xff]  ;;  %v462_v19 = vld [vmem:[%s6968_s1 + $0xb88] sm:$0xff] }
  0xad   :  { %1708 = vmatpush.msra.mxu1 %v365_v20  ;;  %1748 = vmatpush.msra.mxu3 %v397_v21  ;;  %v34_v20 = vld [vmem:[%s6969_s0 + $0xa0] sm:$0xff]  ;;  %v36_v21 = vld [vmem:[%s6969_s0 + $0xb0] sm:$0xff] }
  0xae   :  { %1709 = vmatmul.f32.vlgmr.msra.gmra.mxu1 %v31_v22  ;;  %1749 = vmatmul.f32.vlgmr.msra.gmra.mxu3 %v33_v23  ;;  %v492_v22 = vld [vmem:[%s6968_s1 + $0xc78] sm:$0xff] }
  0xaf   :  { %1754 = vmatpush.msrb.mxu0 %v427_v24  ;;  %1773 = vmatpush.msrb.mxu1 %v444_v25  ;;  %v524_v23 = vld [vmem:[%s6968_s1 + $0xd78] sm:$0xff]  ;;  %v429_v24 = vld [vmem:[%s6968_s1 + $0xa80] sm:$0xff] }
  0xb0   :  { %1794 = vmatpush.msrb.mxu2 %v459_v26  ;;  %1813 = vmatpush.msrb.mxu3 %v476_v27  ;;  %v461_v25 = vld [vmem:[%s6968_s1 + $0xb80] sm:$0xff]  ;;  %v35_v26 = vld [vmem:[%s6969_s0 + $0xa8] sm:$0xff]  ;;  %v37_v27 = vld [vmem:[%s6969_s0 + $0xb8] sm:$0xff] }
  0xb1   :  { %1755 = vmatpush.msrb.mxu0 %v426_v28  ;;  %1774 = vmatpush.msrb.mxu1 %v443_v29  ;;  %v491_v28 = vld [vmem:[%s6968_s1 + $0xc70] sm:$0xff]  ;;  %v508_v29 = vld [vmem:[%s6968_s1 + $0xcf8] sm:$0xff] }
  0xb2   :  { %1795 = vmatpush.msrb.mxu2 %v458_v30  ;;  %1814 = vmatpush.msrb.mxu3 %v475_v31  ;;  %v523_v30 = vld [vmem:[%s6968_s1 + $0xd70] sm:$0xff]  ;;  %v540_v31 = vld [vmem:[%s6968_s1 + $0xdf8] sm:$0xff] }
  0xb3   :  { %1756 = vmatpush.msrb.mxu0 %v425_v32  ;;  %1775 = vmatpush.msrb.mxu1 %v442_v33  ;;  %v490_v32 = vld [vmem:[%s6968_s1 + $0xc68] sm:$0xff]  ;;  %v507_v33 = vld [vmem:[%s6968_s1 + $0xcf0] sm:$0xff] }
  0xb4   :  { %1796 = vmatpush.msrb.mxu2 %v457_v34  ;;  %1815 = vmatpush.msrb.mxu3 %v474_v35  ;;  %v522_v34 = vld [vmem:[%s6968_s1 + $0xd68] sm:$0xff]  ;;  %v539_v35 = vld [vmem:[%s6968_s1 + $0xdf0] sm:$0xff] }
  0xb5   :  { %1757 = vmatpush.msrb.mxu0 %v424_v36  ;;  %1776 = vmatpush.msrb.mxu1 %v441_v37  ;;  %v489_v36 = vld [vmem:[%s6968_s1 + $0xc60] sm:$0xff]  ;;  %v506_v37 = vld [vmem:[%s6968_s1 + $0xce8] sm:$0xff] }
  0xb6   :  { %1797 = vmatpush.msrb.mxu2 %v456_v38  ;;  %1816 = vmatpush.msrb.mxu3 %v473_v39  ;;  %v521_v38 = vld [vmem:[%s6968_s1 + $0xd60] sm:$0xff]  ;;  %v538_v39 = vld [vmem:[%s6968_s1 + $0xde8] sm:$0xff] }
  0xb7   :  { %1758 = vmatpush.msrb.mxu0 %v423_v40  ;;  %1777 = vmatpush.msrb.mxu1 %v440_v41  ;;  %v488_v40 = vld [vmem:[%s6968_s1 + $0xc58] sm:$0xff]  ;;  %v505_v41 = vld [vmem:[%s6968_s1 + $0xce0] sm:$0xff] }
  0xb8   :  { %1798 = vmatpush.msrb.mxu2 %v455_v42  ;;  %1817 = vmatpush.msrb.mxu3 %v472_v43  ;;  %v520_v42 = vld [vmem:[%s6968_s1 + $0xd58] sm:$0xff]  ;;  %v537_v43 = vld [vmem:[%s6968_s1 + $0xde0] sm:$0xff] }
  0xb9   :  { %1759 = vmatpush.msrb.mxu0 %v422_v44  ;;  %1778 = vmatpush.msrb.mxu1 %v439_v45  ;;  %v487_v44 = vld [vmem:[%s6968_s1 + $0xc50] sm:$0xff]  ;;  %v504_v45 = vld [vmem:[%s6968_s1 + $0xcd8] sm:$0xff] }
  0xba   :  { %1799 = vmatpush.msrb.mxu2 %v454_v46  ;;  %1818 = vmatpush.msrb.mxu3 %v471_v47  ;;  %v519_v46 = vld [vmem:[%s6968_s1 + $0xd50] sm:$0xff]  ;;  %v536_v47 = vld [vmem:[%s6968_s1 + $0xdd8] sm:$0xff] }
  0xbb   :  { %1760 = vmatpush.msrb.mxu0 %v421_v48  ;;  %1779 = vmatpush.msrb.mxu1 %v438_v49  ;;  %v486_v48 = vld [vmem:[%s6968_s1 + $0xc48] sm:$0xff]  ;;  %v503_v49 = vld [vmem:[%s6968_s1 + $0xcd0] sm:$0xff] }
  0xbc   :  { %1800 = vmatpush.msrb.mxu2 %v453_v50  ;;  %1819 = vmatpush.msrb.mxu3 %v470_v51  ;;  %v518_v50 = vld [vmem:[%s6968_s1 + $0xd48] sm:$0xff]  ;;  %v535_v51 = vld [vmem:[%s6968_s1 + $0xdd0] sm:$0xff] }
  0xbd   :  { %1761 = vmatpush.msrb.mxu0 %v420_v52  ;;  %1780 = vmatpush.msrb.mxu1 %v437_v53  ;;  %v485_v52 = vld [vmem:[%s6968_s1 + $0xc40] sm:$0xff]  ;;  %v502_v53 = vld [vmem:[%s6968_s1 + $0xcc8] sm:$0xff] }
  0xbe   :  { %1801 = vmatpush.msrb.mxu2 %v452_v54  ;;  %1820 = vmatpush.msrb.mxu3 %v469_v55  ;;  %v517_v54 = vld [vmem:[%s6968_s1 + $0xd40] sm:$0xff]  ;;  %v534_v55 = vld [vmem:[%s6968_s1 + $0xdc8] sm:$0xff] }
  0xbf   :  { %1762 = vmatpush.msrb.mxu0 %v419_v56  ;;  %1781 = vmatpush.msrb.mxu1 %v436_v57  ;;  %v484_v56 = vld [vmem:[%s6968_s1 + $0xc38] sm:$0xff]  ;;  %v501_v57 = vld [vmem:[%s6968_s1 + $0xcc0] sm:$0xff] }
  0xc0   :  { %1802 = vmatpush.msrb.mxu2 %v451_v58  ;;  %1821 = vmatpush.msrb.mxu3 %v468_v59  ;;  %v516_v58 = vld [vmem:[%s6968_s1 + $0xd38] sm:$0xff]  ;;  %v533_v59 = vld [vmem:[%s6968_s1 + $0xdc0] sm:$0xff] }
  0xc1   :  { %1763 = vmatpush.msrb.mxu0 %v418_v60  ;;  %1782 = vmatpush.msrb.mxu1 %v435_v61  ;;  %v483_v60 = vld [vmem:[%s6968_s1 + $0xc30] sm:$0xff]  ;;  %v500_v61 = vld [vmem:[%s6968_s1 + $0xcb8] sm:$0xff] }
  0xc2   :  { %1803 = vmatpush.msrb.mxu2 %v450_v62  ;;  %1822 = vmatpush.msrb.mxu3 %v467_v63  ;;  %v515_v62 = vld [vmem:[%s6968_s1 + $0xd30] sm:$0xff]  ;;  %v532_v63 = vld [vmem:[%s6968_s1 + $0xdb8] sm:$0xff] }
  0xc3   :  { %1764 = vmatpush.msrb.mxu0 %v417_v0  ;;  %1783 = vmatpush.msrb.mxu1 %v434_v1  ;;  %v482_v0 = vld [vmem:[%s6968_s1 + $0xc28] sm:$0xff]  ;;  %v499_v1 = vld [vmem:[%s6968_s1 + $0xcb0] sm:$0xff] }
  0xc4   :  { %1804 = vmatpush.msrb.mxu2 %v449_v2  ;;  %1823 = vmatpush.msrb.mxu3 %v466_v3  ;;  %v514_v2 = vld [vmem:[%s6968_s1 + $0xd28] sm:$0xff]  ;;  %v531_v3 = vld [vmem:[%s6968_s1 + $0xdb0] sm:$0xff] }
  0xc5   :  { %1765 = vmatpush.msrb.mxu0 %v416_v4  ;;  %1784 = vmatpush.msrb.mxu1 %v433_v5  ;;  %v481_v4 = vld [vmem:[%s6968_s1 + $0xc20] sm:$0xff]  ;;  %v498_v5 = vld [vmem:[%s6968_s1 + $0xca8] sm:$0xff] }
  0xc6   :  { %1805 = vmatpush.msrb.mxu2 %v448_v6  ;;  %1824 = vmatpush.msrb.mxu3 %v465_v7  ;;  %v513_v6 = vld [vmem:[%s6968_s1 + $0xd20] sm:$0xff]  ;;  %v530_v7 = vld [vmem:[%s6968_s1 + $0xda8] sm:$0xff] }
  0xc7   :  { %1766 = vmatpush.msrb.mxu0 %v415_v8  ;;  %1785 = vmatpush.msrb.mxu1 %v432_v9  ;;  %v480_v8 = vld [vmem:[%s6968_s1 + $0xc18] sm:$0xff]  ;;  %v497_v9 = vld [vmem:[%s6968_s1 + $0xca0] sm:$0xff] }
  0xc8   :  { %1806 = vmatpush.msrb.mxu2 %v447_v10  ;;  %1825 = vmatpush.msrb.mxu3 %v464_v11  ;;  %v512_v10 = vld [vmem:[%s6968_s1 + $0xd18] sm:$0xff]  ;;  %v529_v11 = vld [vmem:[%s6968_s1 + $0xda0] sm:$0xff] }
  0xc9   :  { %1767 = vmatpush.msrb.mxu0 %v414_v12  ;;  %1786 = vmatpush.msrb.mxu1 %v431_v13  ;;  %v479_v12 = vld [vmem:[%s6968_s1 + $0xc10] sm:$0xff]  ;;  %v496_v13 = vld [vmem:[%s6968_s1 + $0xc98] sm:$0xff] }
  0xca   :  { %1807 = vmatpush.msrb.mxu2 %v446_v14  ;;  %1826 = vmatpush.msrb.mxu3 %v463_v15  ;;  %v511_v14 = vld [vmem:[%s6968_s1 + $0xd10] sm:$0xff]  ;;  %v528_v15 = vld [vmem:[%s6968_s1 + $0xd98] sm:$0xff] }
  0xcb   :  { %1768 = vmatpush.msrb.mxu0 %v413_v16  ;;  %1787 = vmatpush.msrb.mxu1 %v430_v17  ;;  %v478_v16 = vld [vmem:[%s6968_s1 + $0xc08] sm:$0xff]  ;;  %v495_v17 = vld [vmem:[%s6968_s1 + $0xc90] sm:$0xff] }
  0xcc   :  { %1808 = vmatpush.msrb.mxu2 %v445_v18  ;;  %1827 = vmatpush.msrb.mxu3 %v462_v19  ;;  %v510_v18 = vld [vmem:[%s6968_s1 + $0xd08] sm:$0xff]  ;;  %v527_v19 = vld [vmem:[%s6968_s1 + $0xd90] sm:$0xff] }
  0xcd   :  { %1769 = vmatmul.f32.vlgmr.msrb.gmra.mxu0 %v34_v20  ;;  %1809 = vmatmul.f32.vlgmr.msrb.gmra.mxu2 %v36_v21  ;;  %v477_v20 = vld [vmem:[%s6968_s1 + $0xc00] sm:$0xff]  ;;  %v494_v21 = vld [vmem:[%s6968_s1 + $0xc88] sm:$0xff] }
  0xce   :  { %1833 = vmatpush.msra.mxu0 %v492_v22  ;;  %1873 = vmatpush.msra.mxu2 %v524_v23  ;;  %v509_v22 = vld [vmem:[%s6968_s1 + $0xd00] sm:$0xff]  ;;  %v526_v23 = vld [vmem:[%s6968_s1 + $0xd88] sm:$0xff] }
  0xcf   :  { %1788 = vmatpush.msrb.mxu1 %v429_v24  ;;  %1828 = vmatpush.msrb.mxu3 %v461_v25  ;;  %v38_v24 = vld [vmem:[%s6969_s0 + $0xc0] sm:$0xff]  ;;  %v40_v25 = vld [vmem:[%s6969_s0 + $0xd0] sm:$0xff] }
  0xd0   :  { %1789 = vmatmul.f32.vlgmr.msrb.gmra.mxu1 %v35_v26  ;;  %1829 = vmatmul.f32.vlgmr.msrb.gmra.mxu3 %v37_v27  ;;  %v556_v26 = vld [vmem:[%s6968_s1 + $0xe78] sm:$0xff] }
  0xd1   :  { %1834 = vmatpush.msra.mxu0 %v491_v28  ;;  %1853 = vmatpush.msra.mxu1 %v508_v29  ;;  %v588_v27 = vld [vmem:[%s6968_s1 + $0xf78] sm:$0xff]  ;;  %v493_v28 = vld [vmem:[%s6968_s1 + $0xc80] sm:$0xff] }
  0xd2   :  { %1874 = vmatpush.msra.mxu2 %v523_v30  ;;  %1893 = vmatpush.msra.mxu3 %v540_v31  ;;  %v525_v29 = vld [vmem:[%s6968_s1 + $0xd80] sm:$0xff]  ;;  %v39_v30 = vld [vmem:[%s6969_s0 + $0xc8] sm:$0xff]  ;;  %v41_v31 = vld [vmem:[%s6969_s0 + $0xd8] sm:$0xff] }
  0xd3   :  { %1835 = vmatpush.msra.mxu0 %v490_v32  ;;  %1854 = vmatpush.msra.mxu1 %v507_v33  ;;  %v555_v32 = vld [vmem:[%s6968_s1 + $0xe70] sm:$0xff]  ;;  %v572_v33 = vld [vmem:[%s6968_s1 + $0xef8] sm:$0xff] }
  0xd4   :  { %1875 = vmatpush.msra.mxu2 %v522_v34  ;;  %1894 = vmatpush.msra.mxu3 %v539_v35  ;;  %v587_v34 = vld [vmem:[%s6968_s1 + $0xf70] sm:$0xff]  ;;  %v604_v35 = vld [vmem:[%s6968_s1 + $0xff8] sm:$0xff] }
  0xd5   :  { %1836 = vmatpush.msra.mxu0 %v489_v36  ;;  %1855 = vmatpush.msra.mxu1 %v506_v37  ;;  %v554_v36 = vld [vmem:[%s6968_s1 + $0xe68] sm:$0xff]  ;;  %v571_v37 = vld [vmem:[%s6968_s1 + $0xef0] sm:$0xff] }
  0xd6   :  { %1876 = vmatpush.msra.mxu2 %v521_v38  ;;  %1895 = vmatpush.msra.mxu3 %v538_v39  ;;  %v586_v38 = vld [vmem:[%s6968_s1 + $0xf68] sm:$0xff]  ;;  %v603_v39 = vld [vmem:[%s6968_s1 + $0xff0] sm:$0xff] }
  0xd7   :  { %1837 = vmatpush.msra.mxu0 %v488_v40  ;;  %1856 = vmatpush.msra.mxu1 %v505_v41  ;;  %v553_v40 = vld [vmem:[%s6968_s1 + $0xe60] sm:$0xff]  ;;  %v570_v41 = vld [vmem:[%s6968_s1 + $0xee8] sm:$0xff] }
  0xd8   :  { %1877 = vmatpush.msra.mxu2 %v520_v42  ;;  %1896 = vmatpush.msra.mxu3 %v537_v43  ;;  %v585_v42 = vld [vmem:[%s6968_s1 + $0xf60] sm:$0xff]  ;;  %v602_v43 = vld [vmem:[%s6968_s1 + $0xfe8] sm:$0xff] }
  0xd9   :  { %1838 = vmatpush.msra.mxu0 %v487_v44  ;;  %1857 = vmatpush.msra.mxu1 %v504_v45  ;;  %v552_v44 = vld [vmem:[%s6968_s1 + $0xe58] sm:$0xff]  ;;  %v569_v45 = vld [vmem:[%s6968_s1 + $0xee0] sm:$0xff] }
  0xda   :  { %1878 = vmatpush.msra.mxu2 %v519_v46  ;;  %1897 = vmatpush.msra.mxu3 %v536_v47  ;;  %v584_v46 = vld [vmem:[%s6968_s1 + $0xf58] sm:$0xff]  ;;  %v601_v47 = vld [vmem:[%s6968_s1 + $0xfe0] sm:$0xff] }
  0xdb   :  { %1839 = vmatpush.msra.mxu0 %v486_v48  ;;  %1858 = vmatpush.msra.mxu1 %v503_v49  ;;  %v551_v48 = vld [vmem:[%s6968_s1 + $0xe50] sm:$0xff]  ;;  %v568_v49 = vld [vmem:[%s6968_s1 + $0xed8] sm:$0xff] }
  0xdc   :  { %1879 = vmatpush.msra.mxu2 %v518_v50  ;;  %1898 = vmatpush.msra.mxu3 %v535_v51  ;;  %v583_v50 = vld [vmem:[%s6968_s1 + $0xf50] sm:$0xff]  ;;  %v600_v51 = vld [vmem:[%s6968_s1 + $0xfd8] sm:$0xff] }
  0xdd   :  { %1840 = vmatpush.msra.mxu0 %v485_v52  ;;  %1859 = vmatpush.msra.mxu1 %v502_v53  ;;  %v550_v52 = vld [vmem:[%s6968_s1 + $0xe48] sm:$0xff]  ;;  %v567_v53 = vld [vmem:[%s6968_s1 + $0xed0] sm:$0xff] }
  0xde   :  { %1880 = vmatpush.msra.mxu2 %v517_v54  ;;  %1899 = vmatpush.msra.mxu3 %v534_v55  ;;  %v582_v54 = vld [vmem:[%s6968_s1 + $0xf48] sm:$0xff]  ;;  %v599_v55 = vld [vmem:[%s6968_s1 + $0xfd0] sm:$0xff] }
  0xdf   :  { %1841 = vmatpush.msra.mxu0 %v484_v56  ;;  %1860 = vmatpush.msra.mxu1 %v501_v57  ;;  %v549_v56 = vld [vmem:[%s6968_s1 + $0xe40] sm:$0xff]  ;;  %v566_v57 = vld [vmem:[%s6968_s1 + $0xec8] sm:$0xff] }
  0xe0   :  { %1881 = vmatpush.msra.mxu2 %v516_v58  ;;  %1900 = vmatpush.msra.mxu3 %v533_v59  ;;  %v581_v58 = vld [vmem:[%s6968_s1 + $0xf40] sm:$0xff]  ;;  %v598_v59 = vld [vmem:[%s6968_s1 + $0xfc8] sm:$0xff] }
  0xe1   :  { %1842 = vmatpush.msra.mxu0 %v483_v60  ;;  %1861 = vmatpush.msra.mxu1 %v500_v61  ;;  %v548_v60 = vld [vmem:[%s6968_s1 + $0xe38] sm:$0xff]  ;;  %v565_v61 = vld [vmem:[%s6968_s1 + $0xec0] sm:$0xff] }
  0xe2   :  { %1882 = vmatpush.msra.mxu2 %v515_v62  ;;  %1901 = vmatpush.msra.mxu3 %v532_v63  ;;  %v580_v62 = vld [vmem:[%s6968_s1 + $0xf38] sm:$0xff]  ;;  %v597_v63 = vld [vmem:[%s6968_s1 + $0xfc0] sm:$0xff] }
  0xe3   :  { %1843 = vmatpush.msra.mxu0 %v482_v0  ;;  %1862 = vmatpush.msra.mxu1 %v499_v1  ;;  %v547_v0 = vld [vmem:[%s6968_s1 + $0xe30] sm:$0xff]  ;;  %v564_v1 = vld [vmem:[%s6968_s1 + $0xeb8] sm:$0xff] }
  0xe4   :  { %1883 = vmatpush.msra.mxu2 %v514_v2  ;;  %1902 = vmatpush.msra.mxu3 %v531_v3  ;;  %v579_v2 = vld [vmem:[%s6968_s1 + $0xf30] sm:$0xff]  ;;  %v596_v3 = vld [vmem:[%s6968_s1 + $0xfb8] sm:$0xff] }
  0xe5   :  { %1844 = vmatpush.msra.mxu0 %v481_v4  ;;  %1863 = vmatpush.msra.mxu1 %v498_v5  ;;  %v546_v4 = vld [vmem:[%s6968_s1 + $0xe28] sm:$0xff]  ;;  %v563_v5 = vld [vmem:[%s6968_s1 + $0xeb0] sm:$0xff] }
  0xe6   :  { %1884 = vmatpush.msra.mxu2 %v513_v6  ;;  %1903 = vmatpush.msra.mxu3 %v530_v7  ;;  %v578_v6 = vld [vmem:[%s6968_s1 + $0xf28] sm:$0xff]  ;;  %v595_v7 = vld [vmem:[%s6968_s1 + $0xfb0] sm:$0xff] }
  0xe7   :  { %1845 = vmatpush.msra.mxu0 %v480_v8  ;;  %1864 = vmatpush.msra.mxu1 %v497_v9  ;;  %v545_v8 = vld [vmem:[%s6968_s1 + $0xe20] sm:$0xff]  ;;  %v562_v9 = vld [vmem:[%s6968_s1 + $0xea8] sm:$0xff] }
  0xe8   :  { %1885 = vmatpush.msra.mxu2 %v512_v10  ;;  %1904 = vmatpush.msra.mxu3 %v529_v11  ;;  %v577_v10 = vld [vmem:[%s6968_s1 + $0xf20] sm:$0xff]  ;;  %v594_v11 = vld [vmem:[%s6968_s1 + $0xfa8] sm:$0xff] }
  0xe9   :  { %1846 = vmatpush.msra.mxu0 %v479_v12  ;;  %1865 = vmatpush.msra.mxu1 %v496_v13  ;;  %v544_v12 = vld [vmem:[%s6968_s1 + $0xe18] sm:$0xff]  ;;  %v561_v13 = vld [vmem:[%s6968_s1 + $0xea0] sm:$0xff] }
  0xea   :  { %1886 = vmatpush.msra.mxu2 %v511_v14  ;;  %1905 = vmatpush.msra.mxu3 %v528_v15  ;;  %v576_v14 = vld [vmem:[%s6968_s1 + $0xf18] sm:$0xff]  ;;  %v593_v15 = vld [vmem:[%s6968_s1 + $0xfa0] sm:$0xff] }
  0xeb   :  { %1847 = vmatpush.msra.mxu0 %v478_v16  ;;  %1866 = vmatpush.msra.mxu1 %v495_v17  ;;  %v543_v16 = vld [vmem:[%s6968_s1 + $0xe10] sm:$0xff]  ;;  %v560_v17 = vld [vmem:[%s6968_s1 + $0xe98] sm:$0xff] }
  0xec   :  { %1887 = vmatpush.msra.mxu2 %v510_v18  ;;  %1906 = vmatpush.msra.mxu3 %v527_v19  ;;  %v575_v18 = vld [vmem:[%s6968_s1 + $0xf10] sm:$0xff]  ;;  %v592_v19 = vld [vmem:[%s6968_s1 + $0xf98] sm:$0xff] }
  0xed   :  { %1848 = vmatpush.msra.mxu0 %v477_v20  ;;  %1867 = vmatpush.msra.mxu1 %v494_v21  ;;  %v542_v20 = vld [vmem:[%s6968_s1 + $0xe08] sm:$0xff]  ;;  %v559_v21 = vld [vmem:[%s6968_s1 + $0xe90] sm:$0xff] }
  0xee   :  { %1888 = vmatpush.msra.mxu2 %v509_v22  ;;  %1907 = vmatpush.msra.mxu3 %v526_v23  ;;  %v574_v22 = vld [vmem:[%s6968_s1 + $0xf08] sm:$0xff]  ;;  %v591_v23 = vld [vmem:[%s6968_s1 + $0xf90] sm:$0xff] }
  0xef   :  { %1849 = vmatmul.f32.vlgmr.msra.gmra.mxu0 %v38_v24  ;;  %1889 = vmatmul.f32.vlgmr.msra.gmra.mxu2 %v40_v25  ;;  %v541_v24 = vld [vmem:[%s6968_s1 + $0xe00] sm:$0xff]  ;;  %v558_v25 = vld [vmem:[%s6968_s1 + $0xe88] sm:$0xff] }
  0xf0   :  { %1913 = vmatpush.msrb.mxu0 %v556_v26  ;;  %1953 = vmatpush.msrb.mxu2 %v588_v27  ;;  %v573_v26 = vld [vmem:[%s6968_s1 + $0xf00] sm:$0xff]  ;;  %v590_v27 = vld [vmem:[%s6968_s1 + $0xf88] sm:$0xff] }
  0xf1   :  { %1868 = vmatpush.msra.mxu1 %v493_v28  ;;  %1908 = vmatpush.msra.mxu3 %v525_v29  ;;  %v42_v28 = vld [vmem:[%s6969_s0 + $0xe0] sm:$0xff]  ;;  %v44_v29 = vld [vmem:[%s6969_s0 + $0xf0] sm:$0xff] }
  0xf2   :  { %1869 = vmatmul.f32.vlgmr.msra.gmra.mxu1 %v39_v30  ;;  %1909 = vmatmul.f32.vlgmr.msra.gmra.mxu3 %v41_v31  ;;  %v620_v30 = vld [vmem:[%s6968_s1 + $0x1078] sm:$0xff] }
  0xf3   :  { %1914 = vmatpush.msrb.mxu0 %v555_v32  ;;  %1933 = vmatpush.msrb.mxu1 %v572_v33  ;;  %v652_v31 = vld [vmem:[%s6968_s1 + $0x1178] sm:$0xff]  ;;  %v557_v32 = vld [vmem:[%s6968_s1 + $0xe80] sm:$0xff] }
  0xf4   :  { %1954 = vmatpush.msrb.mxu2 %v587_v34  ;;  %1973 = vmatpush.msrb.mxu3 %v604_v35  ;;  %v589_v33 = vld [vmem:[%s6968_s1 + $0xf80] sm:$0xff]  ;;  %v43_v34 = vld [vmem:[%s6969_s0 + $0xe8] sm:$0xff]  ;;  %v45_v35 = vld [vmem:[%s6969_s0 + $0xf8] sm:$0xff] }
  0xf5   :  { %1915 = vmatpush.msrb.mxu0 %v554_v36  ;;  %1934 = vmatpush.msrb.mxu1 %v571_v37  ;;  %v619_v36 = vld [vmem:[%s6968_s1 + $0x1070] sm:$0xff]  ;;  %v636_v37 = vld [vmem:[%s6968_s1 + $0x10f8] sm:$0xff] }
  0xf6   :  { %1955 = vmatpush.msrb.mxu2 %v586_v38  ;;  %1974 = vmatpush.msrb.mxu3 %v603_v39  ;;  %v651_v38 = vld [vmem:[%s6968_s1 + $0x1170] sm:$0xff]  ;;  %v668_v39 = vld [vmem:[%s6968_s1 + $0x11f8] sm:$0xff] }
  0xf7   :  { %1916 = vmatpush.msrb.mxu0 %v553_v40  ;;  %1935 = vmatpush.msrb.mxu1 %v570_v41  ;;  %v618_v40 = vld [vmem:[%s6968_s1 + $0x1068] sm:$0xff]  ;;  %v635_v41 = vld [vmem:[%s6968_s1 + $0x10f0] sm:$0xff] }
  0xf8   :  { %1956 = vmatpush.msrb.mxu2 %v585_v42  ;;  %1975 = vmatpush.msrb.mxu3 %v602_v43  ;;  %v650_v42 = vld [vmem:[%s6968_s1 + $0x1168] sm:$0xff]  ;;  %v667_v43 = vld [vmem:[%s6968_s1 + $0x11f0] sm:$0xff] }
  0xf9   :  { %1917 = vmatpush.msrb.mxu0 %v552_v44  ;;  %1936 = vmatpush.msrb.mxu1 %v569_v45  ;;  %v617_v44 = vld [vmem:[%s6968_s1 + $0x1060] sm:$0xff]  ;;  %v634_v45 = vld [vmem:[%s6968_s1 + $0x10e8] sm:$0xff] }
  0xfa   :  { %1957 = vmatpush.msrb.mxu2 %v584_v46  ;;  %1976 = vmatpush.msrb.mxu3 %v601_v47  ;;  %v649_v46 = vld [vmem:[%s6968_s1 + $0x1160] sm:$0xff]  ;;  %v666_v47 = vld [vmem:[%s6968_s1 + $0x11e8] sm:$0xff] }
  0xfb   :  { %1918 = vmatpush.msrb.mxu0 %v551_v48  ;;  %1937 = vmatpush.msrb.mxu1 %v568_v49  ;;  %v616_v48 = vld [vmem:[%s6968_s1 + $0x1058] sm:$0xff]  ;;  %v633_v49 = vld [vmem:[%s6968_s1 + $0x10e0] sm:$0xff] }
  0xfc   :  { %1958 = vmatpush.msrb.mxu2 %v583_v50  ;;  %1977 = vmatpush.msrb.mxu3 %v600_v51  ;;  %v648_v50 = vld [vmem:[%s6968_s1 + $0x1158] sm:$0xff]  ;;  %v665_v51 = vld [vmem:[%s6968_s1 + $0x11e0] sm:$0xff] }
  0xfd   :  { %1919 = vmatpush.msrb.mxu0 %v550_v52  ;;  %1938 = vmatpush.msrb.mxu1 %v567_v53  ;;  %v615_v52 = vld [vmem:[%s6968_s1 + $0x1050] sm:$0xff]  ;;  %v632_v53 = vld [vmem:[%s6968_s1 + $0x10d8] sm:$0xff] }
  0xfe   :  { %1959 = vmatpush.msrb.mxu2 %v582_v54  ;;  %1978 = vmatpush.msrb.mxu3 %v599_v55  ;;  %v647_v54 = vld [vmem:[%s6968_s1 + $0x1150] sm:$0xff]  ;;  %v664_v55 = vld [vmem:[%s6968_s1 + $0x11d8] sm:$0xff] }
  0xff   :  { %1920 = vmatpush.msrb.mxu0 %v549_v56  ;;  %1939 = vmatpush.msrb.mxu1 %v566_v57  ;;  %v614_v56 = vld [vmem:[%s6968_s1 + $0x1048] sm:$0xff]  ;;  %v631_v57 = vld [vmem:[%s6968_s1 + $0x10d0] sm:$0xff] }
 0x100   :  { %1960 = vmatpush.msrb.mxu2 %v581_v58  ;;  %1979 = vmatpush.msrb.mxu3 %v598_v59  ;;  %v646_v58 = vld [vmem:[%s6968_s1 + $0x1148] sm:$0xff]  ;;  %v663_v59 = vld [vmem:[%s6968_s1 + $0x11d0] sm:$0xff] }
 0x101   :  { %1921 = vmatpush.msrb.mxu0 %v548_v60  ;;  %1940 = vmatpush.msrb.mxu1 %v565_v61  ;;  %v613_v60 = vld [vmem:[%s6968_s1 + $0x1040] sm:$0xff]  ;;  %v630_v61 = vld [vmem:[%s6968_s1 + $0x10c8] sm:$0xff] }
 0x102   :  { %1961 = vmatpush.msrb.mxu2 %v580_v62  ;;  %1980 = vmatpush.msrb.mxu3 %v597_v63  ;;  %v645_v62 = vld [vmem:[%s6968_s1 + $0x1140] sm:$0xff]  ;;  %v662_v63 = vld [vmem:[%s6968_s1 + $0x11c8] sm:$0xff] }
 0x103   :  { %1922 = vmatpush.msrb.mxu0 %v547_v0  ;;  %1941 = vmatpush.msrb.mxu1 %v564_v1  ;;  %v612_v0 = vld [vmem:[%s6968_s1 + $0x1038] sm:$0xff]  ;;  %v629_v1 = vld [vmem:[%s6968_s1 + $0x10c0] sm:$0xff] }
 0x104   :  { %1962 = vmatpush.msrb.mxu2 %v579_v2  ;;  %1981 = vmatpush.msrb.mxu3 %v596_v3  ;;  %v644_v2 = vld [vmem:[%s6968_s1 + $0x1138] sm:$0xff]  ;;  %v661_v3 = vld [vmem:[%s6968_s1 + $0x11c0] sm:$0xff] }
 0x105   :  { %1923 = vmatpush.msrb.mxu0 %v546_v4  ;;  %1942 = vmatpush.msrb.mxu1 %v563_v5  ;;  %v611_v4 = vld [vmem:[%s6968_s1 + $0x1030] sm:$0xff]  ;;  %v628_v5 = vld [vmem:[%s6968_s1 + $0x10b8] sm:$0xff] }
 0x106   :  { %1963 = vmatpush.msrb.mxu2 %v578_v6  ;;  %1982 = vmatpush.msrb.mxu3 %v595_v7  ;;  %v643_v6 = vld [vmem:[%s6968_s1 + $0x1130] sm:$0xff]  ;;  %v660_v7 = vld [vmem:[%s6968_s1 + $0x11b8] sm:$0xff] }
 0x107   :  { %1924 = vmatpush.msrb.mxu0 %v545_v8  ;;  %1943 = vmatpush.msrb.mxu1 %v562_v9  ;;  %v610_v8 = vld [vmem:[%s6968_s1 + $0x1028] sm:$0xff]  ;;  %v627_v9 = vld [vmem:[%s6968_s1 + $0x10b0] sm:$0xff] }
 0x108   :  { %1964 = vmatpush.msrb.mxu2 %v577_v10  ;;  %1983 = vmatpush.msrb.mxu3 %v594_v11  ;;  %v642_v10 = vld [vmem:[%s6968_s1 + $0x1128] sm:$0xff]  ;;  %v659_v11 = vld [vmem:[%s6968_s1 + $0x11b0] sm:$0xff] }
 0x109   :  { %1925 = vmatpush.msrb.mxu0 %v544_v12  ;;  %1944 = vmatpush.msrb.mxu1 %v561_v13  ;;  %v609_v12 = vld [vmem:[%s6968_s1 + $0x1020] sm:$0xff]  ;;  %v626_v13 = vld [vmem:[%s6968_s1 + $0x10a8] sm:$0xff] }
 0x10a   :  { %1965 = vmatpush.msrb.mxu2 %v576_v14  ;;  %1984 = vmatpush.msrb.mxu3 %v593_v15  ;;  %v641_v14 = vld [vmem:[%s6968_s1 + $0x1120] sm:$0xff]  ;;  %v658_v15 = vld [vmem:[%s6968_s1 + $0x11a8] sm:$0xff] }
 0x10b   :  { %1926 = vmatpush.msrb.mxu0 %v543_v16  ;;  %1945 = vmatpush.msrb.mxu1 %v560_v17  ;;  %v608_v16 = vld [vmem:[%s6968_s1 + $0x1018] sm:$0xff]  ;;  %v625_v17 = vld [vmem:[%s6968_s1 + $0x10a0] sm:$0xff] }
 0x10c   :  { %1966 = vmatpush.msrb.mxu2 %v575_v18  ;;  %1985 = vmatpush.msrb.mxu3 %v592_v19  ;;  %v640_v18 = vld [vmem:[%s6968_s1 + $0x1118] sm:$0xff]  ;;  %v657_v19 = vld [vmem:[%s6968_s1 + $0x11a0] sm:$0xff] }
 0x10d   :  { %1927 = vmatpush.msrb.mxu0 %v542_v20  ;;  %1946 = vmatpush.msrb.mxu1 %v559_v21  ;;  %v607_v20 = vld [vmem:[%s6968_s1 + $0x1010] sm:$0xff]  ;;  %v624_v21 = vld [vmem:[%s6968_s1 + $0x1098] sm:$0xff] }
 0x10e   :  { %1967 = vmatpush.msrb.mxu2 %v574_v22  ;;  %1986 = vmatpush.msrb.mxu3 %v591_v23  ;;  %v639_v22 = vld [vmem:[%s6968_s1 + $0x1110] sm:$0xff]  ;;  %v656_v23 = vld [vmem:[%s6968_s1 + $0x1198] sm:$0xff] }
 0x10f   :  { %1928 = vmatpush.msrb.mxu0 %v541_v24  ;;  %1947 = vmatpush.msrb.mxu1 %v558_v25  ;;  %v606_v24 = vld [vmem:[%s6968_s1 + $0x1008] sm:$0xff]  ;;  %v623_v25 = vld [vmem:[%s6968_s1 + $0x1090] sm:$0xff] }
 0x110   :  { %1968 = vmatpush.msrb.mxu2 %v573_v26  ;;  %1987 = vmatpush.msrb.mxu3 %v590_v27  ;;  %v638_v26 = vld [vmem:[%s6968_s1 + $0x1108] sm:$0xff]  ;;  %v655_v27 = vld [vmem:[%s6968_s1 + $0x1190] sm:$0xff] }
 0x111   :  { %1929 = vmatmul.f32.vlgmr.msrb.gmra.mxu0 %v42_v28  ;;  %1969 = vmatmul.f32.vlgmr.msrb.gmra.mxu2 %v44_v29  ;;  %v605_v28 = vld [vmem:[%s6968_s1 + $0x1000] sm:$0xff]  ;;  %v622_v29 = vld [vmem:[%s6968_s1 + $0x1088] sm:$0xff] }
 0x112   :  { %1993 = vmatpush.msra.mxu0 %v620_v30  ;;  %2033 = vmatpush.msra.mxu2 %v652_v31  ;;  %v637_v30 = vld [vmem:[%s6968_s1 + $0x1100] sm:$0xff]  ;;  %v654_v31 = vld [vmem:[%s6968_s1 + $0x1188] sm:$0xff] }
 0x113   :  { %1948 = vmatpush.msrb.mxu1 %v557_v32  ;;  %1988 = vmatpush.msrb.mxu3 %v589_v33  ;;  %v46_v32 = vld [vmem:[%s6969_s0 + $0x100] sm:$0xff]  ;;  %v48_v33 = vld [vmem:[%s6969_s0 + $0x110] sm:$0xff] }
 0x114   :  { %1949 = vmatmul.f32.vlgmr.msrb.gmra.mxu1 %v43_v34  ;;  %1989 = vmatmul.f32.vlgmr.msrb.gmra.mxu3 %v45_v35  ;;  %v684_v34 = vld [vmem:[%s6968_s1 + $0x1278] sm:$0xff] }
 0x115   :  { %1994 = vmatpush.msra.mxu0 %v619_v36  ;;  %2013 = vmatpush.msra.mxu1 %v636_v37  ;;  %v716_v35 = vld [vmem:[%s6968_s1 + $0x1378] sm:$0xff]  ;;  %v621_v36 = vld [vmem:[%s6968_s1 + $0x1080] sm:$0xff] }
 0x116   :  { %2034 = vmatpush.msra.mxu2 %v651_v38  ;;  %2053 = vmatpush.msra.mxu3 %v668_v39  ;;  %v653_v37 = vld [vmem:[%s6968_s1 + $0x1180] sm:$0xff]  ;;  %v47_v38 = vld [vmem:[%s6969_s0 + $0x108] sm:$0xff]  ;;  %v49_v39 = vld [vmem:[%s6969_s0 + $0x118] sm:$0xff] }
 0x117   :  { %1995 = vmatpush.msra.mxu0 %v618_v40  ;;  %2014 = vmatpush.msra.mxu1 %v635_v41  ;;  %v683_v40 = vld [vmem:[%s6968_s1 + $0x1270] sm:$0xff]  ;;  %v700_v41 = vld [vmem:[%s6968_s1 + $0x12f8] sm:$0xff] }
 0x118   :  { %2035 = vmatpush.msra.mxu2 %v650_v42  ;;  %2054 = vmatpush.msra.mxu3 %v667_v43  ;;  %v715_v42 = vld [vmem:[%s6968_s1 + $0x1370] sm:$0xff]  ;;  %v732_v43 = vld [vmem:[%s6968_s1 + $0x13f8] sm:$0xff] }
 0x119   :  { %1996 = vmatpush.msra.mxu0 %v617_v44  ;;  %2015 = vmatpush.msra.mxu1 %v634_v45  ;;  %v682_v44 = vld [vmem:[%s6968_s1 + $0x1268] sm:$0xff]  ;;  %v699_v45 = vld [vmem:[%s6968_s1 + $0x12f0] sm:$0xff] }
 0x11a   :  { %2036 = vmatpush.msra.mxu2 %v649_v46  ;;  %2055 = vmatpush.msra.mxu3 %v666_v47  ;;  %v714_v46 = vld [vmem:[%s6968_s1 + $0x1368] sm:$0xff]  ;;  %v731_v47 = vld [vmem:[%s6968_s1 + $0x13f0] sm:$0xff] }
 0x11b   :  { %1997 = vmatpush.msra.mxu0 %v616_v48  ;;  %2016 = vmatpush.msra.mxu1 %v633_v49  ;;  %v681_v48 = vld [vmem:[%s6968_s1 + $0x1260] sm:$0xff]  ;;  %v698_v49 = vld [vmem:[%s6968_s1 + $0x12e8] sm:$0xff] }
 0x11c   :  { %2037 = vmatpush.msra.mxu2 %v648_v50  ;;  %2056 = vmatpush.msra.mxu3 %v665_v51  ;;  %v713_v50 = vld [vmem:[%s6968_s1 + $0x1360] sm:$0xff]  ;;  %v730_v51 = vld [vmem:[%s6968_s1 + $0x13e8] sm:$0xff] }
 0x11d   :  { %1998 = vmatpush.msra.mxu0 %v615_v52  ;;  %2017 = vmatpush.msra.mxu1 %v632_v53  ;;  %v680_v52 = vld [vmem:[%s6968_s1 + $0x1258] sm:$0xff]  ;;  %v697_v53 = vld [vmem:[%s6968_s1 + $0x12e0] sm:$0xff] }
 0x11e   :  { %2038 = vmatpush.msra.mxu2 %v647_v54  ;;  %2057 = vmatpush.msra.mxu3 %v664_v55  ;;  %v712_v54 = vld [vmem:[%s6968_s1 + $0x1358] sm:$0xff]  ;;  %v729_v55 = vld [vmem:[%s6968_s1 + $0x13e0] sm:$0xff] }
 0x11f   :  { %1999 = vmatpush.msra.mxu0 %v614_v56  ;;  %2018 = vmatpush.msra.mxu1 %v631_v57  ;;  %v679_v56 = vld [vmem:[%s6968_s1 + $0x1250] sm:$0xff]  ;;  %v696_v57 = vld [vmem:[%s6968_s1 + $0x12d8] sm:$0xff] }
 0x120   :  { %2039 = vmatpush.msra.mxu2 %v646_v58  ;;  %2058 = vmatpush.msra.mxu3 %v663_v59  ;;  %v711_v58 = vld [vmem:[%s6968_s1 + $0x1350] sm:$0xff]  ;;  %v728_v59 = vld [vmem:[%s6968_s1 + $0x13d8] sm:$0xff] }
 0x121   :  { %2000 = vmatpush.msra.mxu0 %v613_v60  ;;  %2019 = vmatpush.msra.mxu1 %v630_v61  ;;  %v678_v60 = vld [vmem:[%s6968_s1 + $0x1248] sm:$0xff]  ;;  %v695_v61 = vld [vmem:[%s6968_s1 + $0x12d0] sm:$0xff] }
 0x122   :  { %2040 = vmatpush.msra.mxu2 %v645_v62  ;;  %2059 = vmatpush.msra.mxu3 %v662_v63  ;;  %v710_v62 = vld [vmem:[%s6968_s1 + $0x1348] sm:$0xff]  ;;  %v727_v63 = vld [vmem:[%s6968_s1 + $0x13d0] sm:$0xff] }
 0x123   :  { %2001 = vmatpush.msra.mxu0 %v612_v0  ;;  %2020 = vmatpush.msra.mxu1 %v629_v1  ;;  %v677_v0 = vld [vmem:[%s6968_s1 + $0x1240] sm:$0xff]  ;;  %v694_v1 = vld [vmem:[%s6968_s1 + $0x12c8] sm:$0xff] }
 0x124   :  { %2041 = vmatpush.msra.mxu2 %v644_v2  ;;  %2060 = vmatpush.msra.mxu3 %v661_v3  ;;  %v709_v2 = vld [vmem:[%s6968_s1 + $0x1340] sm:$0xff]  ;;  %v726_v3 = vld [vmem:[%s6968_s1 + $0x13c8] sm:$0xff] }
 0x125   :  { %2002 = vmatpush.msra.mxu0 %v611_v4  ;;  %2021 = vmatpush.msra.mxu1 %v628_v5  ;;  %v676_v4 = vld [vmem:[%s6968_s1 + $0x1238] sm:$0xff]  ;;  %v693_v5 = vld [vmem:[%s6968_s1 + $0x12c0] sm:$0xff] }
 0x126   :  { %2042 = vmatpush.msra.mxu2 %v643_v6  ;;  %2061 = vmatpush.msra.mxu3 %v660_v7  ;;  %v708_v6 = vld [vmem:[%s6968_s1 + $0x1338] sm:$0xff]  ;;  %v725_v7 = vld [vmem:[%s6968_s1 + $0x13c0] sm:$0xff] }
 0x127   :  { %2003 = vmatpush.msra.mxu0 %v610_v8  ;;  %2022 = vmatpush.msra.mxu1 %v627_v9  ;;  %v675_v8 = vld [vmem:[%s6968_s1 + $0x1230] sm:$0xff]  ;;  %v692_v9 = vld [vmem:[%s6968_s1 + $0x12b8] sm:$0xff] }
 0x128   :  { %2043 = vmatpush.msra.mxu2 %v642_v10  ;;  %2062 = vmatpush.msra.mxu3 %v659_v11  ;;  %v707_v10 = vld [vmem:[%s6968_s1 + $0x1330] sm:$0xff]  ;;  %v724_v11 = vld [vmem:[%s6968_s1 + $0x13b8] sm:$0xff] }
 0x129   :  { %2004 = vmatpush.msra.mxu0 %v609_v12  ;;  %2023 = vmatpush.msra.mxu1 %v626_v13  ;;  %v674_v12 = vld [vmem:[%s6968_s1 + $0x1228] sm:$0xff]  ;;  %v691_v13 = vld [vmem:[%s6968_s1 + $0x12b0] sm:$0xff] }
 0x12a   :  { %2044 = vmatpush.msra.mxu2 %v641_v14  ;;  %2063 = vmatpush.msra.mxu3 %v658_v15  ;;  %v706_v14 = vld [vmem:[%s6968_s1 + $0x1328] sm:$0xff]  ;;  %v723_v15 = vld [vmem:[%s6968_s1 + $0x13b0] sm:$0xff] }
 0x12b   :  { %2005 = vmatpush.msra.mxu0 %v608_v16  ;;  %2024 = vmatpush.msra.mxu1 %v625_v17  ;;  %v673_v16 = vld [vmem:[%s6968_s1 + $0x1220] sm:$0xff]  ;;  %v690_v17 = vld [vmem:[%s6968_s1 + $0x12a8] sm:$0xff] }
 0x12c   :  { %2045 = vmatpush.msra.mxu2 %v640_v18  ;;  %2064 = vmatpush.msra.mxu3 %v657_v19  ;;  %v705_v18 = vld [vmem:[%s6968_s1 + $0x1320] sm:$0xff]  ;;  %v722_v19 = vld [vmem:[%s6968_s1 + $0x13a8] sm:$0xff] }
 0x12d   :  { %2006 = vmatpush.msra.mxu0 %v607_v20  ;;  %2025 = vmatpush.msra.mxu1 %v624_v21  ;;  %v672_v20 = vld [vmem:[%s6968_s1 + $0x1218] sm:$0xff]  ;;  %v689_v21 = vld [vmem:[%s6968_s1 + $0x12a0] sm:$0xff] }
 0x12e   :  { %2046 = vmatpush.msra.mxu2 %v639_v22  ;;  %2065 = vmatpush.msra.mxu3 %v656_v23  ;;  %v704_v22 = vld [vmem:[%s6968_s1 + $0x1318] sm:$0xff]  ;;  %v721_v23 = vld [vmem:[%s6968_s1 + $0x13a0] sm:$0xff] }
 0x12f   :  { %2007 = vmatpush.msra.mxu0 %v606_v24  ;;  %2026 = vmatpush.msra.mxu1 %v623_v25  ;;  %v671_v24 = vld [vmem:[%s6968_s1 + $0x1210] sm:$0xff]  ;;  %v688_v25 = vld [vmem:[%s6968_s1 + $0x1298] sm:$0xff] }
 0x130   :  { %2047 = vmatpush.msra.mxu2 %v638_v26  ;;  %2066 = vmatpush.msra.mxu3 %v655_v27  ;;  %v703_v26 = vld [vmem:[%s6968_s1 + $0x1310] sm:$0xff]  ;;  %v720_v27 = vld [vmem:[%s6968_s1 + $0x1398] sm:$0xff] }
 0x131   :  { %2008 = vmatpush.msra.mxu0 %v605_v28  ;;  %2027 = vmatpush.msra.mxu1 %v622_v29  ;;  %v670_v28 = vld [vmem:[%s6968_s1 + $0x1208] sm:$0xff]  ;;  %v687_v29 = vld [vmem:[%s6968_s1 + $0x1290] sm:$0xff] }
 0x132   :  { %2048 = vmatpush.msra.mxu2 %v637_v30  ;;  %2067 = vmatpush.msra.mxu3 %v654_v31  ;;  %v702_v30 = vld [vmem:[%s6968_s1 + $0x1308] sm:$0xff]  ;;  %v719_v31 = vld [vmem:[%s6968_s1 + $0x1390] sm:$0xff] }
 0x133   :  { %2009 = vmatmul.f32.vlgmr.msra.gmra.mxu0 %v46_v32  ;;  %2049 = vmatmul.f32.vlgmr.msra.gmra.mxu2 %v48_v33  ;;  %v669_v32 = vld [vmem:[%s6968_s1 + $0x1200] sm:$0xff]  ;;  %v686_v33 = vld [vmem:[%s6968_s1 + $0x1288] sm:$0xff] }
 0x134   :  { %2073 = vmatpush.msrb.mxu0 %v684_v34  ;;  %2113 = vmatpush.msrb.mxu2 %v716_v35  ;;  %v701_v34 = vld [vmem:[%s6968_s1 + $0x1300] sm:$0xff]  ;;  %v718_v35 = vld [vmem:[%s6968_s1 + $0x1388] sm:$0xff] }
 0x135   :  { %2028 = vmatpush.msra.mxu1 %v621_v36  ;;  %2068 = vmatpush.msra.mxu3 %v653_v37  ;;  %v50_v36 = vld [vmem:[%s6969_s0 + $0x120] sm:$0xff]  ;;  %v52_v37 = vld [vmem:[%s6969_s0 + $0x130] sm:$0xff] }
 0x136   :  { %2029 = vmatmul.f32.vlgmr.msra.gmra.mxu1 %v47_v38  ;;  %2069 = vmatmul.f32.vlgmr.msra.gmra.mxu3 %v49_v39  ;;  %v748_v38 = vld [vmem:[%s6968_s1 + $0x1478] sm:$0xff] }
 0x137   :  { %2074 = vmatpush.msrb.mxu0 %v683_v40  ;;  %2093 = vmatpush.msrb.mxu1 %v700_v41  ;;  %v780_v39 = vld [vmem:[%s6968_s1 + $0x1578] sm:$0xff]  ;;  %v685_v40 = vld [vmem:[%s6968_s1 + $0x1280] sm:$0xff] }
 0x138   :  { %2114 = vmatpush.msrb.mxu2 %v715_v42  ;;  %2133 = vmatpush.msrb.mxu3 %v732_v43  ;;  %v717_v41 = vld [vmem:[%s6968_s1 + $0x1380] sm:$0xff]  ;;  %v51_v42 = vld [vmem:[%s6969_s0 + $0x128] sm:$0xff]  ;;  %v53_v43 = vld [vmem:[%s6969_s0 + $0x138] sm:$0xff] }
 0x139   :  { %2075 = vmatpush.msrb.mxu0 %v682_v44  ;;  %2094 = vmatpush.msrb.mxu1 %v699_v45  ;;  %v747_v44 = vld [vmem:[%s6968_s1 + $0x1470] sm:$0xff]  ;;  %v764_v45 = vld [vmem:[%s6968_s1 + $0x14f8] sm:$0xff] }
 0x13a   :  { %2115 = vmatpush.msrb.mxu2 %v714_v46  ;;  %2134 = vmatpush.msrb.mxu3 %v731_v47  ;;  %v779_v46 = vld [vmem:[%s6968_s1 + $0x1570] sm:$0xff]  ;;  %v796_v47 = vld [vmem:[%s6968_s1 + $0x15f8] sm:$0xff] }
 0x13b   :  { %2076 = vmatpush.msrb.mxu0 %v681_v48  ;;  %2095 = vmatpush.msrb.mxu1 %v698_v49  ;;  %v746_v48 = vld [vmem:[%s6968_s1 + $0x1468] sm:$0xff]  ;;  %v763_v49 = vld [vmem:[%s6968_s1 + $0x14f0] sm:$0xff] }
 0x13c   :  { %2116 = vmatpush.msrb.mxu2 %v713_v50  ;;  %2135 = vmatpush.msrb.mxu3 %v730_v51  ;;  %v778_v50 = vld [vmem:[%s6968_s1 + $0x1568] sm:$0xff]  ;;  %v795_v51 = vld [vmem:[%s6968_s1 + $0x15f0] sm:$0xff] }
 0x13d   :  { %2077 = vmatpush.msrb.mxu0 %v680_v52  ;;  %2096 = vmatpush.msrb.mxu1 %v697_v53  ;;  %v745_v52 = vld [vmem:[%s6968_s1 + $0x1460] sm:$0xff]  ;;  %v762_v53 = vld [vmem:[%s6968_s1 + $0x14e8] sm:$0xff] }
 0x13e   :  { %2117 = vmatpush.msrb.mxu2 %v712_v54  ;;  %2136 = vmatpush.msrb.mxu3 %v729_v55  ;;  %v777_v54 = vld [vmem:[%s6968_s1 + $0x1560] sm:$0xff]  ;;  %v794_v55 = vld [vmem:[%s6968_s1 + $0x15e8] sm:$0xff] }
 0x13f   :  { %2078 = vmatpush.msrb.mxu0 %v679_v56  ;;  %2097 = vmatpush.msrb.mxu1 %v696_v57  ;;  %v744_v56 = vld [vmem:[%s6968_s1 + $0x1458] sm:$0xff]  ;;  %v761_v57 = vld [vmem:[%s6968_s1 + $0x14e0] sm:$0xff] }
 0x140   :  { %2118 = vmatpush.msrb.mxu2 %v711_v58  ;;  %2137 = vmatpush.msrb.mxu3 %v728_v59  ;;  %v776_v58 = vld [vmem:[%s6968_s1 + $0x1558] sm:$0xff]  ;;  %v793_v59 = vld [vmem:[%s6968_s1 + $0x15e0] sm:$0xff] }
 0x141   :  { %2079 = vmatpush.msrb.mxu0 %v678_v60  ;;  %2098 = vmatpush.msrb.mxu1 %v695_v61  ;;  %v743_v60 = vld [vmem:[%s6968_s1 + $0x1450] sm:$0xff]  ;;  %v760_v61 = vld [vmem:[%s6968_s1 + $0x14d8] sm:$0xff] }
 0x142   :  { %2119 = vmatpush.msrb.mxu2 %v710_v62  ;;  %2138 = vmatpush.msrb.mxu3 %v727_v63  ;;  %v775_v62 = vld [vmem:[%s6968_s1 + $0x1550] sm:$0xff]  ;;  %v792_v63 = vld [vmem:[%s6968_s1 + $0x15d8] sm:$0xff] }
 0x143   :  { %2080 = vmatpush.msrb.mxu0 %v677_v0  ;;  %2099 = vmatpush.msrb.mxu1 %v694_v1  ;;  %v742_v0 = vld [vmem:[%s6968_s1 + $0x1448] sm:$0xff]  ;;  %v759_v1 = vld [vmem:[%s6968_s1 + $0x14d0] sm:$0xff] }
 0x144   :  { %2120 = vmatpush.msrb.mxu2 %v709_v2  ;;  %2139 = vmatpush.msrb.mxu3 %v726_v3  ;;  %v774_v2 = vld [vmem:[%s6968_s1 + $0x1548] sm:$0xff]  ;;  %v791_v3 = vld [vmem:[%s6968_s1 + $0x15d0] sm:$0xff] }
 0x145   :  { %2081 = vmatpush.msrb.mxu0 %v676_v4  ;;  %2100 = vmatpush.msrb.mxu1 %v693_v5  ;;  %v741_v4 = vld [vmem:[%s6968_s1 + $0x1440] sm:$0xff]  ;;  %v758_v5 = vld [vmem:[%s6968_s1 + $0x14c8] sm:$0xff] }
 0x146   :  { %2121 = vmatpush.msrb.mxu2 %v708_v6  ;;  %2140 = vmatpush.msrb.mxu3 %v725_v7  ;;  %v773_v6 = vld [vmem:[%s6968_s1 + $0x1540] sm:$0xff]  ;;  %v790_v7 = vld [vmem:[%s6968_s1 + $0x15c8] sm:$0xff] }
 0x147   :  { %2082 = vmatpush.msrb.mxu0 %v675_v8  ;;  %2101 = vmatpush.msrb.mxu1 %v692_v9  ;;  %v740_v8 = vld [vmem:[%s6968_s1 + $0x1438] sm:$0xff]  ;;  %v757_v9 = vld [vmem:[%s6968_s1 + $0x14c0] sm:$0xff] }
 0x148   :  { %2122 = vmatpush.msrb.mxu2 %v707_v10  ;;  %2141 = vmatpush.msrb.mxu3 %v724_v11  ;;  %v772_v10 = vld [vmem:[%s6968_s1 + $0x1538] sm:$0xff]  ;;  %v789_v11 = vld [vmem:[%s6968_s1 + $0x15c0] sm:$0xff] }
 0x149   :  { %2083 = vmatpush.msrb.mxu0 %v674_v12  ;;  %2102 = vmatpush.msrb.mxu1 %v691_v13  ;;  %v739_v12 = vld [vmem:[%s6968_s1 + $0x1430] sm:$0xff]  ;;  %v756_v13 = vld [vmem:[%s6968_s1 + $0x14b8] sm:$0xff] }
 0x14a   :  { %2123 = vmatpush.msrb.mxu2 %v706_v14  ;;  %2142 = vmatpush.msrb.mxu3 %v723_v15  ;;  %v771_v14 = vld [vmem:[%s6968_s1 + $0x1530] sm:$0xff]  ;;  %v788_v15 = vld [vmem:[%s6968_s1 + $0x15b8] sm:$0xff] }
 0x14b   :  { %2084 = vmatpush.msrb.mxu0 %v673_v16  ;;  %2103 = vmatpush.msrb.mxu1 %v690_v17  ;;  %v738_v16 = vld [vmem:[%s6968_s1 + $0x1428] sm:$0xff]  ;;  %v755_v17 = vld [vmem:[%s6968_s1 + $0x14b0] sm:$0xff] }
 0x14c   :  { %2124 = vmatpush.msrb.mxu2 %v705_v18  ;;  %2143 = vmatpush.msrb.mxu3 %v722_v19  ;;  %v770_v18 = vld [vmem:[%s6968_s1 + $0x1528] sm:$0xff]  ;;  %v787_v19 = vld [vmem:[%s6968_s1 + $0x15b0] sm:$0xff] }
 0x14d   :  { %2085 = vmatpush.msrb.mxu0 %v672_v20  ;;  %2104 = vmatpush.msrb.mxu1 %v689_v21  ;;  %v737_v20 = vld [vmem:[%s6968_s1 + $0x1420] sm:$0xff]  ;;  %v754_v21 = vld [vmem:[%s6968_s1 + $0x14a8] sm:$0xff] }
 0x14e   :  { %2125 = vmatpush.msrb.mxu2 %v704_v22  ;;  %2144 = vmatpush.msrb.mxu3 %v721_v23  ;;  %v769_v22 = vld [vmem:[%s6968_s1 + $0x1520] sm:$0xff]  ;;  %v786_v23 = vld [vmem:[%s6968_s1 + $0x15a8] sm:$0xff] }
 0x14f   :  { %2086 = vmatpush.msrb.mxu0 %v671_v24  ;;  %2105 = vmatpush.msrb.mxu1 %v688_v25  ;;  %v736_v24 = vld [vmem:[%s6968_s1 + $0x1418] sm:$0xff]  ;;  %v753_v25 = vld [vmem:[%s6968_s1 + $0x14a0] sm:$0xff] }
 0x150   :  { %2126 = vmatpush.msrb.mxu2 %v703_v26  ;;  %2145 = vmatpush.msrb.mxu3 %v720_v27  ;;  %v768_v26 = vld [vmem:[%s6968_s1 + $0x1518] sm:$0xff]  ;;  %v785_v27 = vld [vmem:[%s6968_s1 + $0x15a0] sm:$0xff] }
 0x151   :  { %2087 = vmatpush.msrb.mxu0 %v670_v28  ;;  %2106 = vmatpush.msrb.mxu1 %v687_v29  ;;  %v735_v28 = vld [vmem:[%s6968_s1 + $0x1410] sm:$0xff]  ;;  %v752_v29 = vld [vmem:[%s6968_s1 + $0x1498] sm:$0xff] }
 0x152   :  { %2127 = vmatpush.msrb.mxu2 %v702_v30  ;;  %2146 = vmatpush.msrb.mxu3 %v719_v31  ;;  %v767_v30 = vld [vmem:[%s6968_s1 + $0x1510] sm:$0xff]  ;;  %v784_v31 = vld [vmem:[%s6968_s1 + $0x1598] sm:$0xff] }
 0x153   :  { %2088 = vmatpush.msrb.mxu0 %v669_v32  ;;  %2107 = vmatpush.msrb.mxu1 %v686_v33  ;;  %v734_v32 = vld [vmem:[%s6968_s1 + $0x1408] sm:$0xff]  ;;  %v751_v33 = vld [vmem:[%s6968_s1 + $0x1490] sm:$0xff] }
 0x154   :  { %2128 = vmatpush.msrb.mxu2 %v701_v34  ;;  %2147 = vmatpush.msrb.mxu3 %v718_v35  ;;  %v766_v34 = vld [vmem:[%s6968_s1 + $0x1508] sm:$0xff]  ;;  %v783_v35 = vld [vmem:[%s6968_s1 + $0x1590] sm:$0xff] }
 0x155   :  { %2089 = vmatmul.f32.vlgmr.msrb.gmra.mxu0 %v50_v36  ;;  %2129 = vmatmul.f32.vlgmr.msrb.gmra.mxu2 %v52_v37  ;;  %v733_v36 = vld [vmem:[%s6968_s1 + $0x1400] sm:$0xff]  ;;  %v750_v37 = vld [vmem:[%s6968_s1 + $0x1488] sm:$0xff] }
 0x156   :  { %2153 = vmatpush.msra.mxu0 %v748_v38  ;;  %2193 = vmatpush.msra.mxu2 %v780_v39  ;;  %v765_v38 = vld [vmem:[%s6968_s1 + $0x1500] sm:$0xff]  ;;  %v782_v39 = vld [vmem:[%s6968_s1 + $0x1588] sm:$0xff] }
 0x157   :  { %2108 = vmatpush.msrb.mxu1 %v685_v40  ;;  %2148 = vmatpush.msrb.mxu3 %v717_v41  ;;  %v54_v40 = vld [vmem:[%s6969_s0 + $0x140] sm:$0xff]  ;;  %v56_v41 = vld [vmem:[%s6969_s0 + $0x150] sm:$0xff] }
 0x158   :  { %2109 = vmatmul.f32.vlgmr.msrb.gmra.mxu1 %v51_v42  ;;  %2149 = vmatmul.f32.vlgmr.msrb.gmra.mxu3 %v53_v43  ;;  %v812_v42 = vld [vmem:[%s6968_s1 + $0x1678] sm:$0xff] }
 0x159   :  { %2154 = vmatpush.msra.mxu0 %v747_v44  ;;  %2173 = vmatpush.msra.mxu1 %v764_v45  ;;  %v844_v43 = vld [vmem:[%s6968_s1 + $0x1778] sm:$0xff]  ;;  %v749_v44 = vld [vmem:[%s6968_s1 + $0x1480] sm:$0xff] }
 0x15a   :  { %2194 = vmatpush.msra.mxu2 %v779_v46  ;;  %2213 = vmatpush.msra.mxu3 %v796_v47  ;;  %v781_v45 = vld [vmem:[%s6968_s1 + $0x1580] sm:$0xff]  ;;  %v55_v46 = vld [vmem:[%s6969_s0 + $0x148] sm:$0xff]  ;;  %v57_v47 = vld [vmem:[%s6969_s0 + $0x158] sm:$0xff] }
 0x15b   :  { %2155 = vmatpush.msra.mxu0 %v746_v48  ;;  %2174 = vmatpush.msra.mxu1 %v763_v49  ;;  %v811_v48 = vld [vmem:[%s6968_s1 + $0x1670] sm:$0xff]  ;;  %v828_v49 = vld [vmem:[%s6968_s1 + $0x16f8] sm:$0xff] }
 0x15c   :  { %2195 = vmatpush.msra.mxu2 %v778_v50  ;;  %2214 = vmatpush.msra.mxu3 %v795_v51  ;;  %v843_v50 = vld [vmem:[%s6968_s1 + $0x1770] sm:$0xff]  ;;  %v860_v51 = vld [vmem:[%s6968_s1 + $0x17f8] sm:$0xff] }
 0x15d   :  { %2156 = vmatpush.msra.mxu0 %v745_v52  ;;  %2175 = vmatpush.msra.mxu1 %v762_v53  ;;  %v810_v52 = vld [vmem:[%s6968_s1 + $0x1668] sm:$0xff]  ;;  %v827_v53 = vld [vmem:[%s6968_s1 + $0x16f0] sm:$0xff] }
 0x15e   :  { %2196 = vmatpush.msra.mxu2 %v777_v54  ;;  %2215 = vmatpush.msra.mxu3 %v794_v55  ;;  %v842_v54 = vld [vmem:[%s6968_s1 + $0x1768] sm:$0xff]  ;;  %v859_v55 = vld [vmem:[%s6968_s1 + $0x17f0] sm:$0xff] }
 0x15f   :  { %2157 = vmatpush.msra.mxu0 %v744_v56  ;;  %2176 = vmatpush.msra.mxu1 %v761_v57  ;;  %v809_v56 = vld [vmem:[%s6968_s1 + $0x1660] sm:$0xff]  ;;  %v826_v57 = vld [vmem:[%s6968_s1 + $0x16e8] sm:$0xff] }
 0x160   :  { %2197 = vmatpush.msra.mxu2 %v776_v58  ;;  %2216 = vmatpush.msra.mxu3 %v793_v59  ;;  %v841_v58 = vld [vmem:[%s6968_s1 + $0x1760] sm:$0xff]  ;;  %v858_v59 = vld [vmem:[%s6968_s1 + $0x17e8] sm:$0xff] }
 0x161   :  { %2158 = vmatpush.msra.mxu0 %v743_v60  ;;  %2177 = vmatpush.msra.mxu1 %v760_v61  ;;  %v808_v60 = vld [vmem:[%s6968_s1 + $0x1658] sm:$0xff]  ;;  %v825_v61 = vld [vmem:[%s6968_s1 + $0x16e0] sm:$0xff] }
 0x162   :  { %2198 = vmatpush.msra.mxu2 %v775_v62  ;;  %2217 = vmatpush.msra.mxu3 %v792_v63  ;;  %v840_v62 = vld [vmem:[%s6968_s1 + $0x1758] sm:$0xff]  ;;  %v857_v63 = vld [vmem:[%s6968_s1 + $0x17e0] sm:$0xff] }
 0x163   :  { %2159 = vmatpush.msra.mxu0 %v742_v0  ;;  %2178 = vmatpush.msra.mxu1 %v759_v1  ;;  %v807_v0 = vld [vmem:[%s6968_s1 + $0x1650] sm:$0xff]  ;;  %v824_v1 = vld [vmem:[%s6968_s1 + $0x16d8] sm:$0xff] }
 0x164   :  { %2199 = vmatpush.msra.mxu2 %v774_v2  ;;  %2218 = vmatpush.msra.mxu3 %v791_v3  ;;  %v839_v2 = vld [vmem:[%s6968_s1 + $0x1750] sm:$0xff]  ;;  %v856_v3 = vld [vmem:[%s6968_s1 + $0x17d8] sm:$0xff] }
 0x165   :  { %2160 = vmatpush.msra.mxu0 %v741_v4  ;;  %2179 = vmatpush.msra.mxu1 %v758_v5  ;;  %v806_v4 = vld [vmem:[%s6968_s1 + $0x1648] sm:$0xff]  ;;  %v823_v5 = vld [vmem:[%s6968_s1 + $0x16d0] sm:$0xff] }
 0x166   :  { %2200 = vmatpush.msra.mxu2 %v773_v6  ;;  %2219 = vmatpush.msra.mxu3 %v790_v7  ;;  %v838_v6 = vld [vmem:[%s6968_s1 + $0x1748] sm:$0xff]  ;;  %v855_v7 = vld [vmem:[%s6968_s1 + $0x17d0] sm:$0xff] }
 0x167   :  { %2161 = vmatpush.msra.mxu0 %v740_v8  ;;  %2180 = vmatpush.msra.mxu1 %v757_v9  ;;  %v805_v8 = vld [vmem:[%s6968_s1 + $0x1640] sm:$0xff]  ;;  %v822_v9 = vld [vmem:[%s6968_s1 + $0x16c8] sm:$0xff] }
 0x168   :  { %2201 = vmatpush.msra.mxu2 %v772_v10  ;;  %2220 = vmatpush.msra.mxu3 %v789_v11  ;;  %v837_v10 = vld [vmem:[%s6968_s1 + $0x1740] sm:$0xff]  ;;  %v854_v11 = vld [vmem:[%s6968_s1 + $0x17c8] sm:$0xff] }
 0x169   :  { %2162 = vmatpush.msra.mxu0 %v739_v12  ;;  %2181 = vmatpush.msra.mxu1 %v756_v13  ;;  %v804_v12 = vld [vmem:[%s6968_s1 + $0x1638] sm:$0xff]  ;;  %v821_v13 = vld [vmem:[%s6968_s1 + $0x16c0] sm:$0xff] }
 0x16a   :  { %2202 = vmatpush.msra.mxu2 %v771_v14  ;;  %2221 = vmatpush.msra.mxu3 %v788_v15  ;;  %v836_v14 = vld [vmem:[%s6968_s1 + $0x1738] sm:$0xff]  ;;  %v853_v15 = vld [vmem:[%s6968_s1 + $0x17c0] sm:$0xff] }
 0x16b   :  { %2163 = vmatpush.msra.mxu0 %v738_v16  ;;  %2182 = vmatpush.msra.mxu1 %v755_v17  ;;  %v803_v16 = vld [vmem:[%s6968_s1 + $0x1630] sm:$0xff]  ;;  %v820_v17 = vld [vmem:[%s6968_s1 + $0x16b8] sm:$0xff] }
 0x16c   :  { %2203 = vmatpush.msra.mxu2 %v770_v18  ;;  %2222 = vmatpush.msra.mxu3 %v787_v19  ;;  %v835_v18 = vld [vmem:[%s6968_s1 + $0x1730] sm:$0xff]  ;;  %v852_v19 = vld [vmem:[%s6968_s1 + $0x17b8] sm:$0xff] }
 0x16d   :  { %2164 = vmatpush.msra.mxu0 %v737_v20  ;;  %2183 = vmatpush.msra.mxu1 %v754_v21  ;;  %v802_v20 = vld [vmem:[%s6968_s1 + $0x1628] sm:$0xff]  ;;  %v819_v21 = vld [vmem:[%s6968_s1 + $0x16b0] sm:$0xff] }
 0x16e   :  { %2204 = vmatpush.msra.mxu2 %v769_v22  ;;  %2223 = vmatpush.msra.mxu3 %v786_v23  ;;  %v834_v22 = vld [vmem:[%s6968_s1 + $0x1728] sm:$0xff]  ;;  %v851_v23 = vld [vmem:[%s6968_s1 + $0x17b0] sm:$0xff] }
 0x16f   :  { %2165 = vmatpush.msra.mxu0 %v736_v24  ;;  %2184 = vmatpush.msra.mxu1 %v753_v25  ;;  %v801_v24 = vld [vmem:[%s6968_s1 + $0x1620] sm:$0xff]  ;;  %v818_v25 = vld [vmem:[%s6968_s1 + $0x16a8] sm:$0xff] }
 0x170   :  { %2205 = vmatpush.msra.mxu2 %v768_v26  ;;  %2224 = vmatpush.msra.mxu3 %v785_v27  ;;  %v833_v26 = vld [vmem:[%s6968_s1 + $0x1720] sm:$0xff]  ;;  %v850_v27 = vld [vmem:[%s6968_s1 + $0x17a8] sm:$0xff] }
 0x171   :  { %2166 = vmatpush.msra.mxu0 %v735_v28  ;;  %2185 = vmatpush.msra.mxu1 %v752_v29  ;;  %v800_v28 = vld [vmem:[%s6968_s1 + $0x1618] sm:$0xff]  ;;  %v817_v29 = vld [vmem:[%s6968_s1 + $0x16a0] sm:$0xff] }
 0x172   :  { %2206 = vmatpush.msra.mxu2 %v767_v30  ;;  %2225 = vmatpush.msra.mxu3 %v784_v31  ;;  %v832_v30 = vld [vmem:[%s6968_s1 + $0x1718] sm:$0xff]  ;;  %v849_v31 = vld [vmem:[%s6968_s1 + $0x17a0] sm:$0xff] }
 0x173   :  { %2167 = vmatpush.msra.mxu0 %v734_v32  ;;  %2186 = vmatpush.msra.mxu1 %v751_v33  ;;  %v799_v32 = vld [vmem:[%s6968_s1 + $0x1610] sm:$0xff]  ;;  %v816_v33 = vld [vmem:[%s6968_s1 + $0x1698] sm:$0xff] }
 0x174   :  { %2207 = vmatpush.msra.mxu2 %v766_v34  ;;  %2226 = vmatpush.msra.mxu3 %v783_v35  ;;  %v831_v34 = vld [vmem:[%s6968_s1 + $0x1710] sm:$0xff]  ;;  %v848_v35 = vld [vmem:[%s6968_s1 + $0x1798] sm:$0xff] }
 0x175   :  { %2168 = vmatpush.msra.mxu0 %v733_v36  ;;  %2187 = vmatpush.msra.mxu1 %v750_v37  ;;  %v798_v36 = vld [vmem:[%s6968_s1 + $0x1608] sm:$0xff]  ;;  %v815_v37 = vld [vmem:[%s6968_s1 + $0x1690] sm:$0xff] }
 0x176   :  { %2208 = vmatpush.msra.mxu2 %v765_v38  ;;  %2227 = vmatpush.msra.mxu3 %v782_v39  ;;  %v830_v38 = vld [vmem:[%s6968_s1 + $0x1708] sm:$0xff]  ;;  %v847_v39 = vld [vmem:[%s6968_s1 + $0x1790] sm:$0xff] }
 0x177   :  { %2169 = vmatmul.f32.vlgmr.msra.gmra.mxu0 %v54_v40  ;;  %2209 = vmatmul.f32.vlgmr.msra.gmra.mxu2 %v56_v41  ;;  %v797_v40 = vld [vmem:[%s6968_s1 + $0x1600] sm:$0xff]  ;;  %v814_v41 = vld [vmem:[%s6968_s1 + $0x1688] sm:$0xff] }
 0x178   :  { %2233 = vmatpush.msrb.mxu0 %v812_v42  ;;  %2273 = vmatpush.msrb.mxu2 %v844_v43  ;;  %v829_v42 = vld [vmem:[%s6968_s1 + $0x1700] sm:$0xff]  ;;  %v846_v43 = vld [vmem:[%s6968_s1 + $0x1788] sm:$0xff] }
 0x179   :  { %2188 = vmatpush.msra.mxu1 %v749_v44  ;;  %2228 = vmatpush.msra.mxu3 %v781_v45  ;;  %v58_v44 = vld [vmem:[%s6969_s0 + $0x160] sm:$0xff]  ;;  %v60_v45 = vld [vmem:[%s6969_s0 + $0x170] sm:$0xff] }
 0x17a   :  { %2189 = vmatmul.f32.vlgmr.msra.gmra.mxu1 %v55_v46  ;;  %2229 = vmatmul.f32.vlgmr.msra.gmra.mxu3 %v57_v47  ;;  %v876_v46 = vld [vmem:[%s6968_s1 + $0x1878] sm:$0xff] }
 0x17b   :  { %2234 = vmatpush.msrb.mxu0 %v811_v48  ;;  %2253 = vmatpush.msrb.mxu1 %v828_v49  ;;  %v908_v47 = vld [vmem:[%s6968_s1 + $0x1978] sm:$0xff]  ;;  %v813_v48 = vld [vmem:[%s6968_s1 + $0x1680] sm:$0xff] }
 0x17c   :  { %2274 = vmatpush.msrb.mxu2 %v843_v50  ;;  %2293 = vmatpush.msrb.mxu3 %v860_v51  ;;  %v845_v49 = vld [vmem:[%s6968_s1 + $0x1780] sm:$0xff]  ;;  %v59_v50 = vld [vmem:[%s6969_s0 + $0x168] sm:$0xff]  ;;  %v61_v51 = vld [vmem:[%s6969_s0 + $0x178] sm:$0xff] }
 0x17d   :  { %2235 = vmatpush.msrb.mxu0 %v810_v52  ;;  %2254 = vmatpush.msrb.mxu1 %v827_v53  ;;  %v875_v52 = vld [vmem:[%s6968_s1 + $0x1870] sm:$0xff]  ;;  %v892_v53 = vld [vmem:[%s6968_s1 + $0x18f8] sm:$0xff] }
 0x17e   :  { %2275 = vmatpush.msrb.mxu2 %v842_v54  ;;  %2294 = vmatpush.msrb.mxu3 %v859_v55  ;;  %v907_v54 = vld [vmem:[%s6968_s1 + $0x1970] sm:$0xff]  ;;  %v924_v55 = vld [vmem:[%s6968_s1 + $0x19f8] sm:$0xff] }
 0x17f   :  { %2236 = vmatpush.msrb.mxu0 %v809_v56  ;;  %2255 = vmatpush.msrb.mxu1 %v826_v57  ;;  %v874_v56 = vld [vmem:[%s6968_s1 + $0x1868] sm:$0xff]  ;;  %v891_v57 = vld [vmem:[%s6968_s1 + $0x18f0] sm:$0xff] }
 0x180   :  { %2276 = vmatpush.msrb.mxu2 %v841_v58  ;;  %2295 = vmatpush.msrb.mxu3 %v858_v59  ;;  %v906_v58 = vld [vmem:[%s6968_s1 + $0x1968] sm:$0xff]  ;;  %v923_v59 = vld [vmem:[%s6968_s1 + $0x19f0] sm:$0xff] }
 0x181   :  { %2237 = vmatpush.msrb.mxu0 %v808_v60  ;;  %2256 = vmatpush.msrb.mxu1 %v825_v61  ;;  %v873_v60 = vld [vmem:[%s6968_s1 + $0x1860] sm:$0xff]  ;;  %v890_v61 = vld [vmem:[%s6968_s1 + $0x18e8] sm:$0xff] }
 0x182   :  { %2277 = vmatpush.msrb.mxu2 %v840_v62  ;;  %2296 = vmatpush.msrb.mxu3 %v857_v63  ;;  %v905_v62 = vld [vmem:[%s6968_s1 + $0x1960] sm:$0xff]  ;;  %v922_v63 = vld [vmem:[%s6968_s1 + $0x19e8] sm:$0xff] }
 0x183   :  { %2238 = vmatpush.msrb.mxu0 %v807_v0  ;;  %2257 = vmatpush.msrb.mxu1 %v824_v1  ;;  %v872_v0 = vld [vmem:[%s6968_s1 + $0x1858] sm:$0xff]  ;;  %v889_v1 = vld [vmem:[%s6968_s1 + $0x18e0] sm:$0xff] }
 0x184   :  { %2278 = vmatpush.msrb.mxu2 %v839_v2  ;;  %2297 = vmatpush.msrb.mxu3 %v856_v3  ;;  %v904_v2 = vld [vmem:[%s6968_s1 + $0x1958] sm:$0xff]  ;;  %v921_v3 = vld [vmem:[%s6968_s1 + $0x19e0] sm:$0xff] }
 0x185   :  { %2239 = vmatpush.msrb.mxu0 %v806_v4  ;;  %2258 = vmatpush.msrb.mxu1 %v823_v5  ;;  %v871_v4 = vld [vmem:[%s6968_s1 + $0x1850] sm:$0xff]  ;;  %v888_v5 = vld [vmem:[%s6968_s1 + $0x18d8] sm:$0xff] }
 0x186   :  { %2279 = vmatpush.msrb.mxu2 %v838_v6  ;;  %2298 = vmatpush.msrb.mxu3 %v855_v7  ;;  %v903_v6 = vld [vmem:[%s6968_s1 + $0x1950] sm:$0xff]  ;;  %v920_v7 = vld [vmem:[%s6968_s1 + $0x19d8] sm:$0xff] }
 0x187   :  { %2240 = vmatpush.msrb.mxu0 %v805_v8  ;;  %2259 = vmatpush.msrb.mxu1 %v822_v9  ;;  %v870_v8 = vld [vmem:[%s6968_s1 + $0x1848] sm:$0xff]  ;;  %v887_v9 = vld [vmem:[%s6968_s1 + $0x18d0] sm:$0xff] }
 0x188   :  { %2280 = vmatpush.msrb.mxu2 %v837_v10  ;;  %2299 = vmatpush.msrb.mxu3 %v854_v11  ;;  %v902_v10 = vld [vmem:[%s6968_s1 + $0x1948] sm:$0xff]  ;;  %v919_v11 = vld [vmem:[%s6968_s1 + $0x19d0] sm:$0xff] }
 0x189   :  { %2241 = vmatpush.msrb.mxu0 %v804_v12  ;;  %2260 = vmatpush.msrb.mxu1 %v821_v13  ;;  %v869_v12 = vld [vmem:[%s6968_s1 + $0x1840] sm:$0xff]  ;;  %v886_v13 = vld [vmem:[%s6968_s1 + $0x18c8] sm:$0xff] }
 0x18a   :  { %2281 = vmatpush.msrb.mxu2 %v836_v14  ;;  %2300 = vmatpush.msrb.mxu3 %v853_v15  ;;  %v901_v14 = vld [vmem:[%s6968_s1 + $0x1940] sm:$0xff]  ;;  %v918_v15 = vld [vmem:[%s6968_s1 + $0x19c8] sm:$0xff] }
 0x18b   :  { %2242 = vmatpush.msrb.mxu0 %v803_v16  ;;  %2261 = vmatpush.msrb.mxu1 %v820_v17  ;;  %v868_v16 = vld [vmem:[%s6968_s1 + $0x1838] sm:$0xff]  ;;  %v885_v17 = vld [vmem:[%s6968_s1 + $0x18c0] sm:$0xff] }
 0x18c   :  { %2282 = vmatpush.msrb.mxu2 %v835_v18  ;;  %2301 = vmatpush.msrb.mxu3 %v852_v19  ;;  %v900_v18 = vld [vmem:[%s6968_s1 + $0x1938] sm:$0xff]  ;;  %v917_v19 = vld [vmem:[%s6968_s1 + $0x19c0] sm:$0xff] }
 0x18d   :  { %2243 = vmatpush.msrb.mxu0 %v802_v20  ;;  %2262 = vmatpush.msrb.mxu1 %v819_v21  ;;  %v867_v20 = vld [vmem:[%s6968_s1 + $0x1830] sm:$0xff]  ;;  %v884_v21 = vld [vmem:[%s6968_s1 + $0x18b8] sm:$0xff] }
 0x18e   :  { %2283 = vmatpush.msrb.mxu2 %v834_v22  ;;  %2302 = vmatpush.msrb.mxu3 %v851_v23  ;;  %v899_v22 = vld [vmem:[%s6968_s1 + $0x1930] sm:$0xff]  ;;  %v916_v23 = vld [vmem:[%s6968_s1 + $0x19b8] sm:$0xff] }
 0x18f   :  { %2244 = vmatpush.msrb.mxu0 %v801_v24  ;;  %2263 = vmatpush.msrb.mxu1 %v818_v25  ;;  %v866_v24 = vld [vmem:[%s6968_s1 + $0x1828] sm:$0xff]  ;;  %v883_v25 = vld [vmem:[%s6968_s1 + $0x18b0] sm:$0xff] }
 0x190   :  { %2284 = vmatpush.msrb.mxu2 %v833_v26  ;;  %2303 = vmatpush.msrb.mxu3 %v850_v27  ;;  %v898_v26 = vld [vmem:[%s6968_s1 + $0x1928] sm:$0xff]  ;;  %v915_v27 = vld [vmem:[%s6968_s1 + $0x19b0] sm:$0xff] }
 0x191   :  { %2245 = vmatpush.msrb.mxu0 %v800_v28  ;;  %2264 = vmatpush.msrb.mxu1 %v817_v29  ;;  %v865_v28 = vld [vmem:[%s6968_s1 + $0x1820] sm:$0xff]  ;;  %v882_v29 = vld [vmem:[%s6968_s1 + $0x18a8] sm:$0xff] }
 0x192   :  { %2285 = vmatpush.msrb.mxu2 %v832_v30  ;;  %2304 = vmatpush.msrb.mxu3 %v849_v31  ;;  %v897_v30 = vld [vmem:[%s6968_s1 + $0x1920] sm:$0xff]  ;;  %v914_v31 = vld [vmem:[%s6968_s1 + $0x19a8] sm:$0xff] }
 0x193   :  { %2246 = vmatpush.msrb.mxu0 %v799_v32  ;;  %2265 = vmatpush.msrb.mxu1 %v816_v33  ;;  %v864_v32 = vld [vmem:[%s6968_s1 + $0x1818] sm:$0xff]  ;;  %v881_v33 = vld [vmem:[%s6968_s1 + $0x18a0] sm:$0xff] }
 0x194   :  { %2286 = vmatpush.msrb.mxu2 %v831_v34  ;;  %2305 = vmatpush.msrb.mxu3 %v848_v35  ;;  %v896_v34 = vld [vmem:[%s6968_s1 + $0x1918] sm:$0xff]  ;;  %v913_v35 = vld [vmem:[%s6968_s1 + $0x19a0] sm:$0xff] }
 0x195   :  { %2247 = vmatpush.msrb.mxu0 %v798_v36  ;;  %2266 = vmatpush.msrb.mxu1 %v815_v37  ;;  %v863_v36 = vld [vmem:[%s6968_s1 + $0x1810] sm:$0xff]  ;;  %v880_v37 = vld [vmem:[%s6968_s1 + $0x1898] sm:$0xff] }
 0x196   :  { %2287 = vmatpush.msrb.mxu2 %v830_v38  ;;  %2306 = vmatpush.msrb.mxu3 %v847_v39  ;;  %v895_v38 = vld [vmem:[%s6968_s1 + $0x1910] sm:$0xff]  ;;  %v912_v39 = vld [vmem:[%s6968_s1 + $0x1998] sm:$0xff] }
 0x197   :  { %2248 = vmatpush.msrb.mxu0 %v797_v40  ;;  %2267 = vmatpush.msrb.mxu1 %v814_v41  ;;  %v862_v40 = vld [vmem:[%s6968_s1 + $0x1808] sm:$0xff]  ;;  %v879_v41 = vld [vmem:[%s6968_s1 + $0x1890] sm:$0xff] }
 0x198   :  { %2288 = vmatpush.msrb.mxu2 %v829_v42  ;;  %2307 = vmatpush.msrb.mxu3 %v846_v43  ;;  %v894_v42 = vld [vmem:[%s6968_s1 + $0x1908] sm:$0xff]  ;;  %v911_v43 = vld [vmem:[%s6968_s1 + $0x1990] sm:$0xff] }
 0x199   :  { %2249 = vmatmul.f32.vlgmr.msrb.gmra.mxu0 %v58_v44  ;;  %2289 = vmatmul.f32.vlgmr.msrb.gmra.mxu2 %v60_v45  ;;  %v861_v44 = vld [vmem:[%s6968_s1 + $0x1800] sm:$0xff]  ;;  %v878_v45 = vld [vmem:[%s6968_s1 + $0x1888] sm:$0xff] }
 0x19a   :  { %2313 = vmatpush.msra.mxu0 %v876_v46  ;;  %2353 = vmatpush.msra.mxu2 %v908_v47  ;;  %v893_v46 = vld [vmem:[%s6968_s1 + $0x1900] sm:$0xff]  ;;  %v910_v47 = vld [vmem:[%s6968_s1 + $0x1988] sm:$0xff] }
 0x19b   :  { %2268 = vmatpush.msrb.mxu1 %v813_v48  ;;  %2308 = vmatpush.msrb.mxu3 %v845_v49  ;;  %v62_v48 = vld [vmem:[%s6969_s0 + $0x180] sm:$0xff]  ;;  %v64_v49 = vld [vmem:[%s6969_s0 + $0x190] sm:$0xff] }
 0x19c   :  { %2269 = vmatmul.f32.vlgmr.msrb.gmra.mxu1 %v59_v50  ;;  %2309 = vmatmul.f32.vlgmr.msrb.gmra.mxu3 %v61_v51  ;;  %v940_v50 = vld [vmem:[%s6968_s1 + $0x1a78] sm:$0xff] }
 0x19d   :  { %2314 = vmatpush.msra.mxu0 %v875_v52  ;;  %2333 = vmatpush.msra.mxu1 %v892_v53  ;;  %v972_v51 = vld [vmem:[%s6968_s1 + $0x1b78] sm:$0xff]  ;;  %v877_v52 = vld [vmem:[%s6968_s1 + $0x1880] sm:$0xff] }
 0x19e   :  { %2354 = vmatpush.msra.mxu2 %v907_v54  ;;  %2373 = vmatpush.msra.mxu3 %v924_v55  ;;  %v909_v53 = vld [vmem:[%s6968_s1 + $0x1980] sm:$0xff]  ;;  %v63_v54 = vld [vmem:[%s6969_s0 + $0x188] sm:$0xff]  ;;  %v65_v55 = vld [vmem:[%s6969_s0 + $0x198] sm:$0xff] }
 0x19f   :  { %2315 = vmatpush.msra.mxu0 %v874_v56  ;;  %2334 = vmatpush.msra.mxu1 %v891_v57  ;;  %v939_v56 = vld [vmem:[%s6968_s1 + $0x1a70] sm:$0xff]  ;;  %v956_v57 = vld [vmem:[%s6968_s1 + $0x1af8] sm:$0xff] }
 0x1a0   :  { %2355 = vmatpush.msra.mxu2 %v906_v58  ;;  %2374 = vmatpush.msra.mxu3 %v923_v59  ;;  %v971_v58 = vld [vmem:[%s6968_s1 + $0x1b70] sm:$0xff]  ;;  %v988_v59 = vld [vmem:[%s6968_s1 + $0x1bf8] sm:$0xff] }
 0x1a1   :  { %2316 = vmatpush.msra.mxu0 %v873_v60  ;;  %2335 = vmatpush.msra.mxu1 %v890_v61  ;;  %v938_v60 = vld [vmem:[%s6968_s1 + $0x1a68] sm:$0xff]  ;;  %v955_v61 = vld [vmem:[%s6968_s1 + $0x1af0] sm:$0xff] }
 0x1a2   :  { %2356 = vmatpush.msra.mxu2 %v905_v62  ;;  %2375 = vmatpush.msra.mxu3 %v922_v63  ;;  %v970_v62 = vld [vmem:[%s6968_s1 + $0x1b68] sm:$0xff]  ;;  %v987_v63 = vld [vmem:[%s6968_s1 + $0x1bf0] sm:$0xff] }
 0x1a3   :  { %2317 = vmatpush.msra.mxu0 %v872_v0  ;;  %2336 = vmatpush.msra.mxu1 %v889_v1  ;;  %v937_v0 = vld [vmem:[%s6968_s1 + $0x1a60] sm:$0xff]  ;;  %v954_v1 = vld [vmem:[%s6968_s1 + $0x1ae8] sm:$0xff] }
 0x1a4   :  { %2357 = vmatpush.msra.mxu2 %v904_v2  ;;  %2376 = vmatpush.msra.mxu3 %v921_v3  ;;  %v969_v2 = vld [vmem:[%s6968_s1 + $0x1b60] sm:$0xff]  ;;  %v986_v3 = vld [vmem:[%s6968_s1 + $0x1be8] sm:$0xff] }
 0x1a5   :  { %2318 = vmatpush.msra.mxu0 %v871_v4  ;;  %2337 = vmatpush.msra.mxu1 %v888_v5  ;;  %v936_v4 = vld [vmem:[%s6968_s1 + $0x1a58] sm:$0xff]  ;;  %v953_v5 = vld [vmem:[%s6968_s1 + $0x1ae0] sm:$0xff] }
 0x1a6   :  { %2358 = vmatpush.msra.mxu2 %v903_v6  ;;  %2377 = vmatpush.msra.mxu3 %v920_v7  ;;  %v968_v6 = vld [vmem:[%s6968_s1 + $0x1b58] sm:$0xff]  ;;  %v985_v7 = vld [vmem:[%s6968_s1 + $0x1be0] sm:$0xff] }
 0x1a7   :  { %2319 = vmatpush.msra.mxu0 %v870_v8  ;;  %2338 = vmatpush.msra.mxu1 %v887_v9  ;;  %v935_v8 = vld [vmem:[%s6968_s1 + $0x1a50] sm:$0xff]  ;;  %v952_v9 = vld [vmem:[%s6968_s1 + $0x1ad8] sm:$0xff] }
 0x1a8   :  { %2359 = vmatpush.msra.mxu2 %v902_v10  ;;  %2378 = vmatpush.msra.mxu3 %v919_v11  ;;  %v967_v10 = vld [vmem:[%s6968_s1 + $0x1b50] sm:$0xff]  ;;  %v984_v11 = vld [vmem:[%s6968_s1 + $0x1bd8] sm:$0xff] }
 0x1a9   :  { %2320 = vmatpush.msra.mxu0 %v869_v12  ;;  %2339 = vmatpush.msra.mxu1 %v886_v13  ;;  %v934_v12 = vld [vmem:[%s6968_s1 + $0x1a48] sm:$0xff]  ;;  %v951_v13 = vld [vmem:[%s6968_s1 + $0x1ad0] sm:$0xff] }
 0x1aa   :  { %2360 = vmatpush.msra.mxu2 %v901_v14  ;;  %2379 = vmatpush.msra.mxu3 %v918_v15  ;;  %v966_v14 = vld [vmem:[%s6968_s1 + $0x1b48] sm:$0xff]  ;;  %v983_v15 = vld [vmem:[%s6968_s1 + $0x1bd0] sm:$0xff] }
 0x1ab   :  { %2321 = vmatpush.msra.mxu0 %v868_v16  ;;  %2340 = vmatpush.msra.mxu1 %v885_v17  ;;  %v933_v16 = vld [vmem:[%s6968_s1 + $0x1a40] sm:$0xff]  ;;  %v950_v17 = vld [vmem:[%s6968_s1 + $0x1ac8] sm:$0xff] }
 0x1ac   :  { %2361 = vmatpush.msra.mxu2 %v900_v18  ;;  %2380 = vmatpush.msra.mxu3 %v917_v19  ;;  %v965_v18 = vld [vmem:[%s6968_s1 + $0x1b40] sm:$0xff]  ;;  %v982_v19 = vld [vmem:[%s6968_s1 + $0x1bc8] sm:$0xff] }
 0x1ad   :  { %2322 = vmatpush.msra.mxu0 %v867_v20  ;;  %2341 = vmatpush.msra.mxu1 %v884_v21  ;;  %v932_v20 = vld [vmem:[%s6968_s1 + $0x1a38] sm:$0xff]  ;;  %v949_v21 = vld [vmem:[%s6968_s1 + $0x1ac0] sm:$0xff] }
 0x1ae   :  { %2362 = vmatpush.msra.mxu2 %v899_v22  ;;  %2381 = vmatpush.msra.mxu3 %v916_v23  ;;  %v964_v22 = vld [vmem:[%s6968_s1 + $0x1b38] sm:$0xff]  ;;  %v981_v23 = vld [vmem:[%s6968_s1 + $0x1bc0] sm:$0xff] }
 0x1af   :  { %2323 = vmatpush.msra.mxu0 %v866_v24  ;;  %2342 = vmatpush.msra.mxu1 %v883_v25  ;;  %v931_v24 = vld [vmem:[%s6968_s1 + $0x1a30] sm:$0xff]  ;;  %v948_v25 = vld [vmem:[%s6968_s1 + $0x1ab8] sm:$0xff] }
 0x1b0   :  { %2363 = vmatpush.msra.mxu2 %v898_v26  ;;  %2382 = vmatpush.msra.mxu3 %v915_v27  ;;  %v963_v26 = vld [vmem:[%s6968_s1 + $0x1b30] sm:$0xff]  ;;  %v980_v27 = vld [vmem:[%s6968_s1 + $0x1bb8] sm:$0xff] }
 0x1b1   :  { %2324 = vmatpush.msra.mxu0 %v865_v28  ;;  %2343 = vmatpush.msra.mxu1 %v882_v29  ;;  %v930_v28 = vld [vmem:[%s6968_s1 + $0x1a28] sm:$0xff]  ;;  %v947_v29 = vld [vmem:[%s6968_s1 + $0x1ab0] sm:$0xff] }
 0x1b2   :  { %2364 = vmatpush.msra.mxu2 %v897_v30  ;;  %2383 = vmatpush.msra.mxu3 %v914_v31  ;;  %v962_v30 = vld [vmem:[%s6968_s1 + $0x1b28] sm:$0xff]  ;;  %v979_v31 = vld [vmem:[%s6968_s1 + $0x1bb0] sm:$0xff] }
 0x1b3   :  { %2325 = vmatpush.msra.mxu0 %v864_v32  ;;  %2344 = vmatpush.msra.mxu1 %v881_v33  ;;  %v929_v32 = vld [vmem:[%s6968_s1 + $0x1a20] sm:$0xff]  ;;  %v946_v33 = vld [vmem:[%s6968_s1 + $0x1aa8] sm:$0xff] }
 0x1b4   :  { %2365 = vmatpush.msra.mxu2 %v896_v34  ;;  %2384 = vmatpush.msra.mxu3 %v913_v35  ;;  %v961_v34 = vld [vmem:[%s6968_s1 + $0x1b20] sm:$0xff]  ;;  %v978_v35 = vld [vmem:[%s6968_s1 + $0x1ba8] sm:$0xff] }
 0x1b5   :  { %2326 = vmatpush.msra.mxu0 %v863_v36  ;;  %2345 = vmatpush.msra.mxu1 %v880_v37  ;;  %v928_v36 = vld [vmem:[%s6968_s1 + $0x1a18] sm:$0xff]  ;;  %v945_v37 = vld [vmem:[%s6968_s1 + $0x1aa0] sm:$0xff] }
 0x1b6   :  { %2366 = vmatpush.msra.mxu2 %v895_v38  ;;  %2385 = vmatpush.msra.mxu3 %v912_v39  ;;  %v960_v38 = vld [vmem:[%s6968_s1 + $0x1b18] sm:$0xff]  ;;  %v977_v39 = vld [vmem:[%s6968_s1 + $0x1ba0] sm:$0xff] }
 0x1b7   :  { %2327 = vmatpush.msra.mxu0 %v862_v40  ;;  %2346 = vmatpush.msra.mxu1 %v879_v41  ;;  %v927_v40 = vld [vmem:[%s6968_s1 + $0x1a10] sm:$0xff]  ;;  %v944_v41 = vld [vmem:[%s6968_s1 + $0x1a98] sm:$0xff] }
 0x1b8   :  { %2367 = vmatpush.msra.mxu2 %v894_v42  ;;  %2386 = vmatpush.msra.mxu3 %v911_v43  ;;  %v959_v42 = vld [vmem:[%s6968_s1 + $0x1b10] sm:$0xff]  ;;  %v976_v43 = vld [vmem:[%s6968_s1 + $0x1b98] sm:$0xff] }
 0x1b9   :  { %2328 = vmatpush.msra.mxu0 %v861_v44  ;;  %2347 = vmatpush.msra.mxu1 %v878_v45  ;;  %v926_v44 = vld [vmem:[%s6968_s1 + $0x1a08] sm:$0xff]  ;;  %v943_v45 = vld [vmem:[%s6968_s1 + $0x1a90] sm:$0xff] }
 0x1ba   :  { %2368 = vmatpush.msra.mxu2 %v893_v46  ;;  %2387 = vmatpush.msra.mxu3 %v910_v47  ;;  %v958_v46 = vld [vmem:[%s6968_s1 + $0x1b08] sm:$0xff]  ;;  %v975_v47 = vld [vmem:[%s6968_s1 + $0x1b90] sm:$0xff] }
 0x1bb   :  { %2329 = vmatmul.f32.vlgmr.msra.gmra.mxu0 %v62_v48  ;;  %2369 = vmatmul.f32.vlgmr.msra.gmra.mxu2 %v64_v49  ;;  %v925_v48 = vld [vmem:[%s6968_s1 + $0x1a00] sm:$0xff]  ;;  %v942_v49 = vld [vmem:[%s6968_s1 + $0x1a88] sm:$0xff] }
 0x1bc   :  { %2393 = vmatpush.msrb.mxu0 %v940_v50  ;;  %2433 = vmatpush.msrb.mxu2 %v972_v51  ;;  %v957_v50 = vld [vmem:[%s6968_s1 + $0x1b00] sm:$0xff]  ;;  %v974_v51 = vld [vmem:[%s6968_s1 + $0x1b88] sm:$0xff] }
 0x1bd   :  { %2348 = vmatpush.msra.mxu1 %v877_v52  ;;  %2388 = vmatpush.msra.mxu3 %v909_v53  ;;  %v66_v52 = vld [vmem:[%s6969_s0 + $0x1a0] sm:$0xff]  ;;  %v68_v53 = vld [vmem:[%s6969_s0 + $0x1b0] sm:$0xff] }
 0x1be   :  { %2349 = vmatmul.f32.vlgmr.msra.gmra.mxu1 %v63_v54  ;;  %2389 = vmatmul.f32.vlgmr.msra.gmra.mxu3 %v65_v55  ;;  %v1004_v54 = vld [vmem:[%s6968_s1 + $0x1c78] sm:$0xff] }
 0x1bf   :  { %2394 = vmatpush.msrb.mxu0 %v939_v56  ;;  %2413 = vmatpush.msrb.mxu1 %v956_v57  ;;  %v1036_v55 = vld [vmem:[%s6968_s1 + $0x1d78] sm:$0xff]  ;;  %v941_v56 = vld [vmem:[%s6968_s1 + $0x1a80] sm:$0xff] }
 0x1c0   :  { %2434 = vmatpush.msrb.mxu2 %v971_v58  ;;  %2453 = vmatpush.msrb.mxu3 %v988_v59  ;;  %v973_v57 = vld [vmem:[%s6968_s1 + $0x1b80] sm:$0xff]  ;;  %v67_v58 = vld [vmem:[%s6969_s0 + $0x1a8] sm:$0xff]  ;;  %v69_v59 = vld [vmem:[%s6969_s0 + $0x1b8] sm:$0xff] }
 0x1c1   :  { %2395 = vmatpush.msrb.mxu0 %v938_v60  ;;  %2414 = vmatpush.msrb.mxu1 %v955_v61  ;;  %v1003_v60 = vld [vmem:[%s6968_s1 + $0x1c70] sm:$0xff]  ;;  %v1020_v61 = vld [vmem:[%s6968_s1 + $0x1cf8] sm:$0xff] }
 0x1c2   :  { %2435 = vmatpush.msrb.mxu2 %v970_v62  ;;  %2454 = vmatpush.msrb.mxu3 %v987_v63  ;;  %v1035_v62 = vld [vmem:[%s6968_s1 + $0x1d70] sm:$0xff]  ;;  %v1052_v63 = vld [vmem:[%s6968_s1 + $0x1df8] sm:$0xff] }
 0x1c3   :  { %2396 = vmatpush.msrb.mxu0 %v937_v0  ;;  %2415 = vmatpush.msrb.mxu1 %v954_v1  ;;  %v1002_v0 = vld [vmem:[%s6968_s1 + $0x1c68] sm:$0xff]  ;;  %v1019_v1 = vld [vmem:[%s6968_s1 + $0x1cf0] sm:$0xff] }
 0x1c4   :  { %2436 = vmatpush.msrb.mxu2 %v969_v2  ;;  %2455 = vmatpush.msrb.mxu3 %v986_v3  ;;  %v1034_v2 = vld [vmem:[%s6968_s1 + $0x1d68] sm:$0xff]  ;;  %v1051_v3 = vld [vmem:[%s6968_s1 + $0x1df0] sm:$0xff] }
 0x1c5   :  { %2397 = vmatpush.msrb.mxu0 %v936_v4  ;;  %2416 = vmatpush.msrb.mxu1 %v953_v5  ;;  %v1001_v4 = vld [vmem:[%s6968_s1 + $0x1c60] sm:$0xff]  ;;  %v1018_v5 = vld [vmem:[%s6968_s1 + $0x1ce8] sm:$0xff] }
 0x1c6   :  { %2437 = vmatpush.msrb.mxu2 %v968_v6  ;;  %2456 = vmatpush.msrb.mxu3 %v985_v7  ;;  %v1033_v6 = vld [vmem:[%s6968_s1 + $0x1d60] sm:$0xff]  ;;  %v1050_v7 = vld [vmem:[%s6968_s1 + $0x1de8] sm:$0xff] }
 0x1c7   :  { %2398 = vmatpush.msrb.mxu0 %v935_v8  ;;  %2417 = vmatpush.msrb.mxu1 %v952_v9  ;;  %v1000_v8 = vld [vmem:[%s6968_s1 + $0x1c58] sm:$0xff]  ;;  %v1017_v9 = vld [vmem:[%s6968_s1 + $0x1ce0] sm:$0xff] }
 0x1c8   :  { %2438 = vmatpush.msrb.mxu2 %v967_v10  ;;  %2457 = vmatpush.msrb.mxu3 %v984_v11  ;;  %v1032_v10 = vld [vmem:[%s6968_s1 + $0x1d58] sm:$0xff]  ;;  %v1049_v11 = vld [vmem:[%s6968_s1 + $0x1de0] sm:$0xff] }
 0x1c9   :  { %2399 = vmatpush.msrb.mxu0 %v934_v12  ;;  %2418 = vmatpush.msrb.mxu1 %v951_v13  ;;  %v999_v12 = vld [vmem:[%s6968_s1 + $0x1c50] sm:$0xff]  ;;  %v1016_v13 = vld [vmem:[%s6968_s1 + $0x1cd8] sm:$0xff] }
 0x1ca   :  { %2439 = vmatpush.msrb.mxu2 %v966_v14  ;;  %2458 = vmatpush.msrb.mxu3 %v983_v15  ;;  %v1031_v14 = vld [vmem:[%s6968_s1 + $0x1d50] sm:$0xff]  ;;  %v1048_v15 = vld [vmem:[%s6968_s1 + $0x1dd8] sm:$0xff] }
 0x1cb   :  { %2400 = vmatpush.msrb.mxu0 %v933_v16  ;;  %2419 = vmatpush.msrb.mxu1 %v950_v17  ;;  %v998_v16 = vld [vmem:[%s6968_s1 + $0x1c48] sm:$0xff]  ;;  %v1015_v17 = vld [vmem:[%s6968_s1 + $0x1cd0] sm:$0xff] }
 0x1cc   :  { %2440 = vmatpush.msrb.mxu2 %v965_v18  ;;  %2459 = vmatpush.msrb.mxu3 %v982_v19  ;;  %v1030_v18 = vld [vmem:[%s6968_s1 + $0x1d48] sm:$0xff]  ;;  %v1047_v19 = vld [vmem:[%s6968_s1 + $0x1dd0] sm:$0xff] }
 0x1cd   :  { %2401 = vmatpush.msrb.mxu0 %v932_v20  ;;  %2420 = vmatpush.msrb.mxu1 %v949_v21  ;;  %v997_v20 = vld [vmem:[%s6968_s1 + $0x1c40] sm:$0xff]  ;;  %v1014_v21 = vld [vmem:[%s6968_s1 + $0x1cc8] sm:$0xff] }
 0x1ce   :  { %2441 = vmatpush.msrb.mxu2 %v964_v22  ;;  %2460 = vmatpush.msrb.mxu3 %v981_v23  ;;  %v1029_v22 = vld [vmem:[%s6968_s1 + $0x1d40] sm:$0xff]  ;;  %v1046_v23 = vld [vmem:[%s6968_s1 + $0x1dc8] sm:$0xff] }
 0x1cf   :  { %2402 = vmatpush.msrb.mxu0 %v931_v24  ;;  %2421 = vmatpush.msrb.mxu1 %v948_v25  ;;  %v996_v24 = vld [vmem:[%s6968_s1 + $0x1c38] sm:$0xff]  ;;  %v1013_v25 = vld [vmem:[%s6968_s1 + $0x1cc0] sm:$0xff] }
 0x1d0   :  { %2442 = vmatpush.msrb.mxu2 %v963_v26  ;;  %2461 = vmatpush.msrb.mxu3 %v980_v27  ;;  %v1028_v26 = vld [vmem:[%s6968_s1 + $0x1d38] sm:$0xff]  ;;  %v1045_v27 = vld [vmem:[%s6968_s1 + $0x1dc0] sm:$0xff] }
 0x1d1   :  { %2403 = vmatpush.msrb.mxu0 %v930_v28  ;;  %2422 = vmatpush.msrb.mxu1 %v947_v29  ;;  %v995_v28 = vld [vmem:[%s6968_s1 + $0x1c30] sm:$0xff]  ;;  %v1012_v29 = vld [vmem:[%s6968_s1 + $0x1cb8] sm:$0xff] }
 0x1d2   :  { %2443 = vmatpush.msrb.mxu2 %v962_v30  ;;  %2462 = vmatpush.msrb.mxu3 %v979_v31  ;;  %v1027_v30 = vld [vmem:[%s6968_s1 + $0x1d30] sm:$0xff]  ;;  %v1044_v31 = vld [vmem:[%s6968_s1 + $0x1db8] sm:$0xff] }
 0x1d3   :  { %2404 = vmatpush.msrb.mxu0 %v929_v32  ;;  %2423 = vmatpush.msrb.mxu1 %v946_v33  ;;  %v994_v32 = vld [vmem:[%s6968_s1 + $0x1c28] sm:$0xff]  ;;  %v1011_v33 = vld [vmem:[%s6968_s1 + $0x1cb0] sm:$0xff] }
 0x1d4   :  { %2444 = vmatpush.msrb.mxu2 %v961_v34  ;;  %2463 = vmatpush.msrb.mxu3 %v978_v35  ;;  %v1026_v34 = vld [vmem:[%s6968_s1 + $0x1d28] sm:$0xff]  ;;  %v1043_v35 = vld [vmem:[%s6968_s1 + $0x1db0] sm:$0xff] }
 0x1d5   :  { %2405 = vmatpush.msrb.mxu0 %v928_v36  ;;  %2424 = vmatpush.msrb.mxu1 %v945_v37  ;;  %v993_v36 = vld [vmem:[%s6968_s1 + $0x1c20] sm:$0xff]  ;;  %v1010_v37 = vld [vmem:[%s6968_s1 + $0x1ca8] sm:$0xff] }
 0x1d6   :  { %2445 = vmatpush.msrb.mxu2 %v960_v38  ;;  %2464 = vmatpush.msrb.mxu3 %v977_v39  ;;  %v1025_v38 = vld [vmem:[%s6968_s1 + $0x1d20] sm:$0xff]  ;;  %v1042_v39 = vld [vmem:[%s6968_s1 + $0x1da8] sm:$0xff] }
 0x1d7   :  { %2406 = vmatpush.msrb.mxu0 %v927_v40  ;;  %2425 = vmatpush.msrb.mxu1 %v944_v41  ;;  %v992_v40 = vld [vmem:[%s6968_s1 + $0x1c18] sm:$0xff]  ;;  %v1009_v41 = vld [vmem:[%s6968_s1 + $0x1ca0] sm:$0xff] }
 0x1d8   :  { %2446 = vmatpush.msrb.mxu2 %v959_v42  ;;  %2465 = vmatpush.msrb.mxu3 %v976_v43  ;;  %v1024_v42 = vld [vmem:[%s6968_s1 + $0x1d18] sm:$0xff]  ;;  %v1041_v43 = vld [vmem:[%s6968_s1 + $0x1da0] sm:$0xff] }
 0x1d9   :  { %2407 = vmatpush.msrb.mxu0 %v926_v44  ;;  %2426 = vmatpush.msrb.mxu1 %v943_v45  ;;  %v991_v44 = vld [vmem:[%s6968_s1 + $0x1c10] sm:$0xff]  ;;  %v1008_v45 = vld [vmem:[%s6968_s1 + $0x1c98] sm:$0xff] }
 0x1da   :  { %2447 = vmatpush.msrb.mxu2 %v958_v46  ;;  %2466 = vmatpush.msrb.mxu3 %v975_v47  ;;  %v1023_v46 = vld [vmem:[%s6968_s1 + $0x1d10] sm:$0xff]  ;;  %v1040_v47 = vld [vmem:[%s6968_s1 + $0x1d98] sm:$0xff] }
 0x1db   :  { %2408 = vmatpush.msrb.mxu0 %v925_v48  ;;  %2427 = vmatpush.msrb.mxu1 %v942_v49  ;;  %v990_v48 = vld [vmem:[%s6968_s1 + $0x1c08] sm:$0xff]  ;;  %v1007_v49 = vld [vmem:[%s6968_s1 + $0x1c90] sm:$0xff] }
 0x1dc   :  { %2448 = vmatpush.msrb.mxu2 %v957_v50  ;;  %2467 = vmatpush.msrb.mxu3 %v974_v51  ;;  %v1022_v50 = vld [vmem:[%s6968_s1 + $0x1d08] sm:$0xff]  ;;  %v1039_v51 = vld [vmem:[%s6968_s1 + $0x1d90] sm:$0xff] }
 0x1dd   :  { %2409 = vmatmul.f32.vlgmr.msrb.gmra.mxu0 %v66_v52  ;;  %2449 = vmatmul.f32.vlgmr.msrb.gmra.mxu2 %v68_v53  ;;  %v989_v52 = vld [vmem:[%s6968_s1 + $0x1c00] sm:$0xff]  ;;  %v1006_v53 = vld [vmem:[%s6968_s1 + $0x1c88] sm:$0xff] }
 0x1de   :  { %2473 = vmatpush.msra.mxu0 %v1004_v54  ;;  %2513 = vmatpush.msra.mxu2 %v1036_v55  ;;  %v1021_v54 = vld [vmem:[%s6968_s1 + $0x1d00] sm:$0xff]  ;;  %v1038_v55 = vld [vmem:[%s6968_s1 + $0x1d88] sm:$0xff] }
 0x1df   :  { %2428 = vmatpush.msrb.mxu1 %v941_v56  ;;  %2468 = vmatpush.msrb.mxu3 %v973_v57  ;;  %v70_v56 = vld [vmem:[%s6969_s0 + $0x1c0] sm:$0xff]  ;;  %v72_v57 = vld [vmem:[%s6969_s0 + $0x1d0] sm:$0xff] }
 0x1e0   :  { %2429 = vmatmul.f32.vlgmr.msrb.gmra.mxu1 %v67_v58  ;;  %2469 = vmatmul.f32.vlgmr.msrb.gmra.mxu3 %v69_v59  ;;  %v1068_v58 = vld [vmem:[%s6968_s1 + $0x1e78] sm:$0xff] }
 0x1e1   :  { %2474 = vmatpush.msra.mxu0 %v1003_v60  ;;  %2493 = vmatpush.msra.mxu1 %v1020_v61  ;;  %v1100_v59 = vld [vmem:[%s6968_s1 + $0x1f78] sm:$0xff]  ;;  %v1005_v60 = vld [vmem:[%s6968_s1 + $0x1c80] sm:$0xff] }
 0x1e2   :  { %2514 = vmatpush.msra.mxu2 %v1035_v62  ;;  %2533 = vmatpush.msra.mxu3 %v1052_v63  ;;  %v1037_v61 = vld [vmem:[%s6968_s1 + $0x1d80] sm:$0xff]  ;;  %v71_v62 = vld [vmem:[%s6969_s0 + $0x1c8] sm:$0xff]  ;;  %v73_v63 = vld [vmem:[%s6969_s0 + $0x1d8] sm:$0xff] }
 0x1e3   :  { %2475 = vmatpush.msra.mxu0 %v1002_v0  ;;  %2494 = vmatpush.msra.mxu1 %v1019_v1  ;;  %v1067_v0 = vld [vmem:[%s6968_s1 + $0x1e70] sm:$0xff]  ;;  %v1084_v1 = vld [vmem:[%s6968_s1 + $0x1ef8] sm:$0xff] }
 0x1e4   :  { %2515 = vmatpush.msra.mxu2 %v1034_v2  ;;  %2534 = vmatpush.msra.mxu3 %v1051_v3  ;;  %v1099_v2 = vld [vmem:[%s6968_s1 + $0x1f70] sm:$0xff]  ;;  %v1116_v3 = vld [vmem:[%s6968_s1 + $0x1ff8] sm:$0xff] }
 0x1e5   :  { %2476 = vmatpush.msra.mxu0 %v1001_v4  ;;  %2495 = vmatpush.msra.mxu1 %v1018_v5  ;;  %v1066_v4 = vld [vmem:[%s6968_s1 + $0x1e68] sm:$0xff]  ;;  %v1083_v5 = vld [vmem:[%s6968_s1 + $0x1ef0] sm:$0xff] }
 0x1e6   :  { %2516 = vmatpush.msra.mxu2 %v1033_v6  ;;  %2535 = vmatpush.msra.mxu3 %v1050_v7  ;;  %v1098_v6 = vld [vmem:[%s6968_s1 + $0x1f68] sm:$0xff]  ;;  %v1115_v7 = vld [vmem:[%s6968_s1 + $0x1ff0] sm:$0xff] }
 0x1e7   :  { %2477 = vmatpush.msra.mxu0 %v1000_v8  ;;  %2496 = vmatpush.msra.mxu1 %v1017_v9  ;;  %v1065_v8 = vld [vmem:[%s6968_s1 + $0x1e60] sm:$0xff]  ;;  %v1082_v9 = vld [vmem:[%s6968_s1 + $0x1ee8] sm:$0xff] }
 0x1e8   :  { %2517 = vmatpush.msra.mxu2 %v1032_v10  ;;  %2536 = vmatpush.msra.mxu3 %v1049_v11  ;;  %v1097_v10 = vld [vmem:[%s6968_s1 + $0x1f60] sm:$0xff]  ;;  %v1114_v11 = vld [vmem:[%s6968_s1 + $0x1fe8] sm:$0xff] }
 0x1e9   :  { %2478 = vmatpush.msra.mxu0 %v999_v12  ;;  %2497 = vmatpush.msra.mxu1 %v1016_v13  ;;  %v1064_v12 = vld [vmem:[%s6968_s1 + $0x1e58] sm:$0xff]  ;;  %v1081_v13 = vld [vmem:[%s6968_s1 + $0x1ee0] sm:$0xff] }
 0x1ea   :  { %2518 = vmatpush.msra.mxu2 %v1031_v14  ;;  %2537 = vmatpush.msra.mxu3 %v1048_v15  ;;  %v1096_v14 = vld [vmem:[%s6968_s1 + $0x1f58] sm:$0xff]  ;;  %v1113_v15 = vld [vmem:[%s6968_s1 + $0x1fe0] sm:$0xff] }
 0x1eb   :  { %2479 = vmatpush.msra.mxu0 %v998_v16  ;;  %2498 = vmatpush.msra.mxu1 %v1015_v17  ;;  %v1063_v16 = vld [vmem:[%s6968_s1 + $0x1e50] sm:$0xff]  ;;  %v1080_v17 = vld [vmem:[%s6968_s1 + $0x1ed8] sm:$0xff] }
 0x1ec   :  { %2519 = vmatpush.msra.mxu2 %v1030_v18  ;;  %2538 = vmatpush.msra.mxu3 %v1047_v19  ;;  %v1095_v18 = vld [vmem:[%s6968_s1 + $0x1f50] sm:$0xff]  ;;  %v1112_v19 = vld [vmem:[%s6968_s1 + $0x1fd8] sm:$0xff] }
 0x1ed   :  { %2480 = vmatpush.msra.mxu0 %v997_v20  ;;  %2499 = vmatpush.msra.mxu1 %v1014_v21  ;;  %v1062_v20 = vld [vmem:[%s6968_s1 + $0x1e48] sm:$0xff]  ;;  %v1079_v21 = vld [vmem:[%s6968_s1 + $0x1ed0] sm:$0xff] }
 0x1ee   :  { %2520 = vmatpush.msra.mxu2 %v1029_v22  ;;  %2539 = vmatpush.msra.mxu3 %v1046_v23  ;;  %v1094_v22 = vld [vmem:[%s6968_s1 + $0x1f48] sm:$0xff]  ;;  %v1111_v23 = vld [vmem:[%s6968_s1 + $0x1fd0] sm:$0xff] }
 0x1ef   :  { %2481 = vmatpush.msra.mxu0 %v996_v24  ;;  %2500 = vmatpush.msra.mxu1 %v1013_v25  ;;  %v1061_v24 = vld [vmem:[%s6968_s1 + $0x1e40] sm:$0xff]  ;;  %v1078_v25 = vld [vmem:[%s6968_s1 + $0x1ec8] sm:$0xff] }
 0x1f0   :  { %2521 = vmatpush.msra.mxu2 %v1028_v26  ;;  %2540 = vmatpush.msra.mxu3 %v1045_v27  ;;  %v1093_v26 = vld [vmem:[%s6968_s1 + $0x1f40] sm:$0xff]  ;;  %v1110_v27 = vld [vmem:[%s6968_s1 + $0x1fc8] sm:$0xff] }
 0x1f1   :  { %2482 = vmatpush.msra.mxu0 %v995_v28  ;;  %2501 = vmatpush.msra.mxu1 %v1012_v29  ;;  %v1060_v28 = vld [vmem:[%s6968_s1 + $0x1e38] sm:$0xff]  ;;  %v1077_v29 = vld [vmem:[%s6968_s1 + $0x1ec0] sm:$0xff] }
 0x1f2   :  { %2522 = vmatpush.msra.mxu2 %v1027_v30  ;;  %2541 = vmatpush.msra.mxu3 %v1044_v31  ;;  %v1092_v30 = vld [vmem:[%s6968_s1 + $0x1f38] sm:$0xff]  ;;  %v1109_v31 = vld [vmem:[%s6968_s1 + $0x1fc0] sm:$0xff] }
 0x1f3   :  { %2483 = vmatpush.msra.mxu0 %v994_v32  ;;  %2502 = vmatpush.msra.mxu1 %v1011_v33  ;;  %v1059_v32 = vld [vmem:[%s6968_s1 + $0x1e30] sm:$0xff]  ;;  %v1076_v33 = vld [vmem:[%s6968_s1 + $0x1eb8] sm:$0xff] }
 0x1f4   :  { %2523 = vmatpush.msra.mxu2 %v1026_v34  ;;  %2542 = vmatpush.msra.mxu3 %v1043_v35  ;;  %v1091_v34 = vld [vmem:[%s6968_s1 + $0x1f30] sm:$0xff]  ;;  %v1108_v35 = vld [vmem:[%s6968_s1 + $0x1fb8] sm:$0xff] }
 0x1f5   :  { %2484 = vmatpush.msra.mxu0 %v993_v36  ;;  %2503 = vmatpush.msra.mxu1 %v1010_v37  ;;  %v1058_v36 = vld [vmem:[%s6968_s1 + $0x1e28] sm:$0xff]  ;;  %v1075_v37 = vld [vmem:[%s6968_s1 + $0x1eb0] sm:$0xff] }
 0x1f6   :  { %2524 = vmatpush.msra.mxu2 %v1025_v38  ;;  %2543 = vmatpush.msra.mxu3 %v1042_v39  ;;  %v1090_v38 = vld [vmem:[%s6968_s1 + $0x1f28] sm:$0xff]  ;;  %v1107_v39 = vld [vmem:[%s6968_s1 + $0x1fb0] sm:$0xff] }
 0x1f7   :  { %2485 = vmatpush.msra.mxu0 %v992_v40  ;;  %2504 = vmatpush.msra.mxu1 %v1009_v41  ;;  %v1057_v40 = vld [vmem:[%s6968_s1 + $0x1e20] sm:$0xff]  ;;  %v1074_v41 = vld [vmem:[%s6968_s1 + $0x1ea8] sm:$0xff] }
 0x1f8   :  { %2525 = vmatpush.msra.mxu2 %v1024_v42  ;;  %2544 = vmatpush.msra.mxu3 %v1041_v43  ;;  %v1089_v42 = vld [vmem:[%s6968_s1 + $0x1f20] sm:$0xff]  ;;  %v1106_v43 = vld [vmem:[%s6968_s1 + $0x1fa8] sm:$0xff] }
 0x1f9   :  { %2486 = vmatpush.msra.mxu0 %v991_v44  ;;  %2505 = vmatpush.msra.mxu1 %v1008_v45  ;;  %v1056_v44 = vld [vmem:[%s6968_s1 + $0x1e18] sm:$0xff]  ;;  %v1073_v45 = vld [vmem:[%s6968_s1 + $0x1ea0] sm:$0xff] }
 0x1fa   :  { %2526 = vmatpush.msra.mxu2 %v1023_v46  ;;  %2545 = vmatpush.msra.mxu3 %v1040_v47  ;;  %v1088_v46 = vld [vmem:[%s6968_s1 + $0x1f18] sm:$0xff]  ;;  %v1105_v47 = vld [vmem:[%s6968_s1 + $0x1fa0] sm:$0xff] }
 0x1fb   :  { %2487 = vmatpush.msra.mxu0 %v990_v48  ;;  %2506 = vmatpush.msra.mxu1 %v1007_v49  ;;  %v1055_v48 = vld [vmem:[%s6968_s1 + $0x1e10] sm:$0xff]  ;;  %v1072_v49 = vld [vmem:[%s6968_s1 + $0x1e98] sm:$0xff] }
 0x1fc   :  { %2527 = vmatpush.msra.mxu2 %v1022_v50  ;;  %2546 = vmatpush.msra.mxu3 %v1039_v51  ;;  %v1087_v50 = vld [vmem:[%s6968_s1 + $0x1f10] sm:$0xff]  ;;  %v1104_v51 = vld [vmem:[%s6968_s1 + $0x1f98] sm:$0xff] }
 0x1fd   :  { %2488 = vmatpush.msra.mxu0 %v989_v52  ;;  %2507 = vmatpush.msra.mxu1 %v1006_v53  ;;  %v1054_v52 = vld [vmem:[%s6968_s1 + $0x1e08] sm:$0xff]  ;;  %v1071_v53 = vld [vmem:[%s6968_s1 + $0x1e90] sm:$0xff] }
 0x1fe   :  { %2528 = vmatpush.msra.mxu2 %v1021_v54  ;;  %2547 = vmatpush.msra.mxu3 %v1038_v55  ;;  %v1086_v54 = vld [vmem:[%s6968_s1 + $0x1f08] sm:$0xff]  ;;  %v1103_v55 = vld [vmem:[%s6968_s1 + $0x1f90] sm:$0xff] }
 0x1ff   :  { %2489 = vmatmul.f32.vlgmr.msra.gmra.mxu0 %v70_v56  ;;  %2529 = vmatmul.f32.vlgmr.msra.gmra.mxu2 %v72_v57  ;;  %v1053_v56 = vld [vmem:[%s6968_s1 + $0x1e00] sm:$0xff]  ;;  %v1070_v57 = vld [vmem:[%s6968_s1 + $0x1e88] sm:$0xff] }
 0x200   :  { %2553 = vmatpush.msrb.mxu0 %v1068_v58  ;;  %2593 = vmatpush.msrb.mxu2 %v1100_v59  ;;  %v1085_v58 = vld [vmem:[%s6968_s1 + $0x1f00] sm:$0xff]  ;;  %v1102_v59 = vld [vmem:[%s6968_s1 + $0x1f88] sm:$0xff] }
 0x201   :  { %2508 = vmatpush.msra.mxu1 %v1005_v60  ;;  %2548 = vmatpush.msra.mxu3 %v1037_v61  ;;  %v74_v60 = vld [vmem:[%s6969_s0 + $0x1e0] sm:$0xff]  ;;  %v76_v61 = vld [vmem:[%s6969_s0 + $0x1f0] sm:$0xff] }
 0x202   :  { %2509 = vmatmul.f32.vlgmr.msra.gmra.mxu1 %v71_v62  ;;  %2549 = vmatmul.f32.vlgmr.msra.gmra.mxu3 %v73_v63  ;;  %v1132_v62 = vld [vmem:[%s6968_s1 + $0x2078] sm:$0xff] }
 0x203   :  { %2554 = vmatpush.msrb.mxu0 %v1067_v0  ;;  %2573 = vmatpush.msrb.mxu1 %v1084_v1  ;;  %v1164_v63 = vld [vmem:[%s6968_s1 + $0x2178] sm:$0xff]  ;;  %v1069_v0 = vld [vmem:[%s6968_s1 + $0x1e80] sm:$0xff] }
 0x204   :  { %2594 = vmatpush.msrb.mxu2 %v1099_v2  ;;  %2613 = vmatpush.msrb.mxu3 %v1116_v3  ;;  %v1101_v1 = vld [vmem:[%s6968_s1 + $0x1f80] sm:$0xff]  ;;  %v75_v2 = vld [vmem:[%s6969_s0 + $0x1e8] sm:$0xff]  ;;  %v77_v3 = vld [vmem:[%s6969_s0 + $0x1f8] sm:$0xff] }
 0x205   :  { %2555 = vmatpush.msrb.mxu0 %v1066_v4  ;;  %2574 = vmatpush.msrb.mxu1 %v1083_v5  ;;  %v1131_v4 = vld [vmem:[%s6968_s1 + $0x2070] sm:$0xff]  ;;  %v1148_v5 = vld [vmem:[%s6968_s1 + $0x20f8] sm:$0xff] }
 0x206   :  { %2595 = vmatpush.msrb.mxu2 %v1098_v6  ;;  %2614 = vmatpush.msrb.mxu3 %v1115_v7  ;;  %v1163_v6 = vld [vmem:[%s6968_s1 + $0x2170] sm:$0xff]  ;;  %v1180_v7 = vld [vmem:[%s6968_s1 + $0x21f8] sm:$0xff] }
 0x207   :  { %2556 = vmatpush.msrb.mxu0 %v1065_v8  ;;  %2575 = vmatpush.msrb.mxu1 %v1082_v9  ;;  %v1130_v8 = vld [vmem:[%s6968_s1 + $0x2068] sm:$0xff]  ;;  %v1147_v9 = vld [vmem:[%s6968_s1 + $0x20f0] sm:$0xff] }
 0x208   :  { %2596 = vmatpush.msrb.mxu2 %v1097_v10  ;;  %2615 = vmatpush.msrb.mxu3 %v1114_v11  ;;  %v1162_v10 = vld [vmem:[%s6968_s1 + $0x2168] sm:$0xff]  ;;  %v1179_v11 = vld [vmem:[%s6968_s1 + $0x21f0] sm:$0xff] }
 0x209   :  { %2557 = vmatpush.msrb.mxu0 %v1064_v12  ;;  %2576 = vmatpush.msrb.mxu1 %v1081_v13  ;;  %v1129_v12 = vld [vmem:[%s6968_s1 + $0x2060] sm:$0xff]  ;;  %v1146_v13 = vld [vmem:[%s6968_s1 + $0x20e8] sm:$0xff] }
 0x20a   :  { %2597 = vmatpush.msrb.mxu2 %v1096_v14  ;;  %2616 = vmatpush.msrb.mxu3 %v1113_v15  ;;  %v1161_v14 = vld [vmem:[%s6968_s1 + $0x2160] sm:$0xff]  ;;  %v1178_v15 = vld [vmem:[%s6968_s1 + $0x21e8] sm:$0xff] }
 0x20b   :  { %2558 = vmatpush.msrb.mxu0 %v1063_v16  ;;  %2577 = vmatpush.msrb.mxu1 %v1080_v17  ;;  %v1128_v16 = vld [vmem:[%s6968_s1 + $0x2058] sm:$0xff]  ;;  %v1145_v17 = vld [vmem:[%s6968_s1 + $0x20e0] sm:$0xff] }
 0x20c   :  { %2598 = vmatpush.msrb.mxu2 %v1095_v18  ;;  %2617 = vmatpush.msrb.mxu3 %v1112_v19  ;;  %v1160_v18 = vld [vmem:[%s6968_s1 + $0x2158] sm:$0xff]  ;;  %v1177_v19 = vld [vmem:[%s6968_s1 + $0x21e0] sm:$0xff] }
 0x20d   :  { %2559 = vmatpush.msrb.mxu0 %v1062_v20  ;;  %2578 = vmatpush.msrb.mxu1 %v1079_v21  ;;  %v1127_v20 = vld [vmem:[%s6968_s1 + $0x2050] sm:$0xff]  ;;  %v1144_v21 = vld [vmem:[%s6968_s1 + $0x20d8] sm:$0xff] }
 0x20e   :  { %2599 = vmatpush.msrb.mxu2 %v1094_v22  ;;  %2618 = vmatpush.msrb.mxu3 %v1111_v23  ;;  %v1159_v22 = vld [vmem:[%s6968_s1 + $0x2150] sm:$0xff]  ;;  %v1176_v23 = vld [vmem:[%s6968_s1 + $0x21d8] sm:$0xff] }
 0x20f   :  { %2560 = vmatpush.msrb.mxu0 %v1061_v24  ;;  %2579 = vmatpush.msrb.mxu1 %v1078_v25  ;;  %v1126_v24 = vld [vmem:[%s6968_s1 + $0x2048] sm:$0xff]  ;;  %v1143_v25 = vld [vmem:[%s6968_s1 + $0x20d0] sm:$0xff] }
 0x210   :  { %2600 = vmatpush.msrb.mxu2 %v1093_v26  ;;  %2619 = vmatpush.msrb.mxu3 %v1110_v27  ;;  %v1158_v26 = vld [vmem:[%s6968_s1 + $0x2148] sm:$0xff]  ;;  %v1175_v27 = vld [vmem:[%s6968_s1 + $0x21d0] sm:$0xff] }
 0x211   :  { %2561 = vmatpush.msrb.mxu0 %v1060_v28  ;;  %2580 = vmatpush.msrb.mxu1 %v1077_v29  ;;  %v1125_v28 = vld [vmem:[%s6968_s1 + $0x2040] sm:$0xff]  ;;  %v1142_v29 = vld [vmem:[%s6968_s1 + $0x20c8] sm:$0xff] }
 0x212   :  { %2601 = vmatpush.msrb.mxu2 %v1092_v30  ;;  %2620 = vmatpush.msrb.mxu3 %v1109_v31  ;;  %v1157_v30 = vld [vmem:[%s6968_s1 + $0x2140] sm:$0xff]  ;;  %v1174_v31 = vld [vmem:[%s6968_s1 + $0x21c8] sm:$0xff] }
 0x213   :  { %2562 = vmatpush.msrb.mxu0 %v1059_v32  ;;  %2581 = vmatpush.msrb.mxu1 %v1076_v33  ;;  %v1124_v32 = vld [vmem:[%s6968_s1 + $0x2038] sm:$0xff]  ;;  %v1141_v33 = vld [vmem:[%s6968_s1 + $0x20c0] sm:$0xff] }
 0x214   :  { %2602 = vmatpush.msrb.mxu2 %v1091_v34  ;;  %2621 = vmatpush.msrb.mxu3 %v1108_v35  ;;  %v1156_v34 = vld [vmem:[%s6968_s1 + $0x2138] sm:$0xff]  ;;  %v1173_v35 = vld [vmem:[%s6968_s1 + $0x21c0] sm:$0xff] }
 0x215   :  { %2563 = vmatpush.msrb.mxu0 %v1058_v36  ;;  %2582 = vmatpush.msrb.mxu1 %v1075_v37  ;;  %v1123_v36 = vld [vmem:[%s6968_s1 + $0x2030] sm:$0xff]  ;;  %v1140_v37 = vld [vmem:[%s6968_s1 + $0x20b8] sm:$0xff] }
 0x216   :  { %2603 = vmatpush.msrb.mxu2 %v1090_v38  ;;  %2622 = vmatpush.msrb.mxu3 %v1107_v39  ;;  %v1155_v38 = vld [vmem:[%s6968_s1 + $0x2130] sm:$0xff]  ;;  %v1172_v39 = vld [vmem:[%s6968_s1 + $0x21b8] sm:$0xff] }
 0x217   :  { %2564 = vmatpush.msrb.mxu0 %v1057_v40  ;;  %2583 = vmatpush.msrb.mxu1 %v1074_v41  ;;  %v1122_v40 = vld [vmem:[%s6968_s1 + $0x2028] sm:$0xff]  ;;  %v1139_v41 = vld [vmem:[%s6968_s1 + $0x20b0] sm:$0xff] }
 0x218   :  { %2604 = vmatpush.msrb.mxu2 %v1089_v42  ;;  %2623 = vmatpush.msrb.mxu3 %v1106_v43  ;;  %v1154_v42 = vld [vmem:[%s6968_s1 + $0x2128] sm:$0xff]  ;;  %v1171_v43 = vld [vmem:[%s6968_s1 + $0x21b0] sm:$0xff] }
 0x219   :  { %2565 = vmatpush.msrb.mxu0 %v1056_v44  ;;  %2584 = vmatpush.msrb.mxu1 %v1073_v45  ;;  %v1121_v44 = vld [vmem:[%s6968_s1 + $0x2020] sm:$0xff]  ;;  %v1138_v45 = vld [vmem:[%s6968_s1 + $0x20a8] sm:$0xff] }
 0x21a   :  { %2605 = vmatpush.msrb.mxu2 %v1088_v46  ;;  %2624 = vmatpush.msrb.mxu3 %v1105_v47  ;;  %v1153_v46 = vld [vmem:[%s6968_s1 + $0x2120] sm:$0xff]  ;;  %v1170_v47 = vld [vmem:[%s6968_s1 + $0x21a8] sm:$0xff] }
 0x21b   :  { %2566 = vmatpush.msrb.mxu0 %v1055_v48  ;;  %2585 = vmatpush.msrb.mxu1 %v1072_v49  ;;  %v1347_v48 = vpop.permute.xlu0 %1346  ;;  %v1370_v49 = vpop.f32.mrf.mxu0 }
 0x21c   :  { %2606 = vmatpush.msrb.mxu2 %v1087_v50  ;;  %2625 = vmatpush.msrb.mxu3 %v1104_v51  ;;  %v1120_v50 = vld [vmem:[%s6968_s1 + $0x2018] sm:$0xff]  ;;  %v1137_v51 = vld [vmem:[%s6968_s1 + $0x20a0] sm:$0xff] }
 0x21d   :  { %2567 = vmatpush.msrb.mxu0 %v1054_v52  ;;  %2586 = vmatpush.msrb.mxu1 %v1071_v53  ;;  %v1152_v52 = vld [vmem:[%s6968_s1 + $0x2118] sm:$0xff]  ;;  %v1169_v53 = vld [vmem:[%s6968_s1 + $0x21a0] sm:$0xff] }
 0x21e   :  { %2607 = vmatpush.msrb.mxu2 %v1086_v54  ;;  %2626 = vmatpush.msrb.mxu3 %v1103_v55  ;;  %v1119_v54 = vld [vmem:[%s6968_s1 + $0x2010] sm:$0xff]  ;;  %v1136_v55 = vld [vmem:[%s6968_s1 + $0x2098] sm:$0xff] }
 0x21f   :  { %2568 = vmatpush.msrb.mxu0 %v1053_v56  ;;  %2587 = vmatpush.msrb.mxu1 %v1070_v57  ;;  %v1371_v56 = vadd.f32 %v1370_v49, %v1347_v48  ;;  %v1151_v57 = vld [vmem:[%s6968_s1 + $0x2110] sm:$0xff]  ;;  %v1221_v48 = vld [vmem:[%s6968_s1 + $0x2340] sm:$0xff]  ;;  %v1238_v49 = vld [vmem:[%s6968_s1 + $0x23c8] sm:$0xff] }
 0x220   :  { %2608 = vmatpush.msrb.mxu2 %v1085_v58  ;;  %2627 = vmatpush.msrb.mxu3 %v1102_v59  ;;  %v1168_v58 = vld [vmem:[%s6968_s1 + $0x2198] sm:$0xff]  ;;  %v1390_v59 = vpop.f32.mrf.mxu1 }
 0x221   :  { %2569 = vmatmul.f32.vlgmr.msrb.gmra.mxu0 %v74_v60  ;;  %2609 = vmatmul.f32.vlgmr.msrb.gmra.mxu2 %v76_v61  ;;  %v1118_v60 = vld [vmem:[%s6968_s1 + $0x2008] sm:$0xff]  ;;  %v1135_v61 = vld [vmem:[%s6968_s1 + $0x2090] sm:$0xff] }
 0x222   :  { %2633 = vmatpush.msra.mxu0 %v1132_v62  ;;  %2673 = vmatpush.msra.mxu2 %v1164_v63  ;;  %v1150_v62 = vld [vmem:[%s6968_s1 + $0x2108] sm:$0xff]  ;;  %v1167_v63 = vld [vmem:[%s6968_s1 + $0x2190] sm:$0xff] }
 0x223   :  { %2588 = vmatpush.msrb.mxu1 %v1069_v0  ;;  %2628 = vmatpush.msrb.mxu3 %v1101_v1  ;;  %v1117_v0 = vld [vmem:[%s6968_s1 + $0x2000] sm:$0xff]  ;;  %v1134_v1 = vld [vmem:[%s6968_s1 + $0x2088] sm:$0xff] }
 0x224   :  { %2589 = vmatmul.f32.vlgmr.msrb.gmra.mxu1 %v75_v2  ;;  %2629 = vmatmul.f32.vlgmr.msrb.gmra.mxu3 %v77_v3  ;;  %v1391_v2 = vadd.f32 %v1390_v59, %v1371_v56  ;;  %v1149_v3 = vld [vmem:[%s6968_s1 + $0x2100] sm:$0xff]  ;;  %v1187_v56 = vld [vmem:[%s6968_s1 + $0x2230] sm:$0xff]  ;;  %v1236_v59 = vld [vmem:[%s6968_s1 + $0x23b8] sm:$0xff] }
 0x225   :  { %2634 = vmatpush.msra.mxu0 %v1131_v4  ;;  %2653 = vmatpush.msra.mxu1 %v1148_v5  ;;  %v1166_v4 = vld [vmem:[%s6968_s1 + $0x2188] sm:$0xff]  ;;  %v1410_v5 = vpop.f32.mrf.mxu2 }
 0x226   :  { %2674 = vmatpush.msra.mxu2 %v1163_v6  ;;  %2693 = vmatpush.msra.mxu3 %v1180_v7  ;;  %v78_v6 = vld [vmem:[%s6969_s0 + $0x200] sm:$0xff]  ;;  %v80_v7 = vld [vmem:[%s6969_s0 + $0x210] sm:$0xff] }
 0x227   :  { %2635 = vmatpush.msra.mxu0 %v1130_v8  ;;  %2654 = vmatpush.msra.mxu1 %v1147_v9  ;;  %v1196_v8 = vld [vmem:[%s6968_s1 + $0x2278] sm:$0xff] }
 0x228   :  { %2675 = vmatpush.msra.mxu2 %v1162_v10  ;;  %2694 = vmatpush.msra.mxu3 %v1179_v11  ;;  %v1228_v9 = vld [vmem:[%s6968_s1 + $0x2378] sm:$0xff]  ;;  %v1133_v10 = vld [vmem:[%s6968_s1 + $0x2080] sm:$0xff] }
 0x229   :  { %2636 = vmatpush.msra.mxu0 %v1129_v12  ;;  %2655 = vmatpush.msra.mxu1 %v1146_v13  ;;  %v1165_v11 = vld [vmem:[%s6968_s1 + $0x2180] sm:$0xff]  ;;  %v1411_v12 = vadd.f32 %v1410_v5, %v1391_v2  ;;  %v79_v13 = vld [vmem:[%s6969_s0 + $0x208] sm:$0xff] }
 0x22a   :  { %2676 = vmatpush.msra.mxu2 %v1161_v14  ;;  %2695 = vmatpush.msra.mxu3 %v1178_v15  ;;  %v81_v14 = vld [vmem:[%s6969_s0 + $0x218] sm:$0xff]  ;;  %v1430_v15 = vpop.f32.mrf.mxu3  ;;  %v1185_v2 = vld [vmem:[%s6968_s1 + $0x2220] sm:$0xff] }
 0x22b   :  { %2637 = vmatpush.msra.mxu0 %v1128_v16  ;;  %2656 = vmatpush.msra.mxu1 %v1145_v17  ;;  %v1195_v16 = vld [vmem:[%s6968_s1 + $0x2270] sm:$0xff]  ;;  %v1212_v17 = vld [vmem:[%s6968_s1 + $0x22f8] sm:$0xff]  ;;  %v1217_v5 = vld [vmem:[%s6968_s1 + $0x2320] sm:$0xff] }
 0x22c   :  { %2677 = vmatpush.msra.mxu2 %v1160_v18  ;;  %2696 = vmatpush.msra.mxu3 %v1177_v19  ;;  %v1227_v18 = vld [vmem:[%s6968_s1 + $0x2370] sm:$0xff]  ;;  %v1244_v19 = vld [vmem:[%s6968_s1 + $0x23f8] sm:$0xff] }
 0x22d   :  { %2638 = vmatpush.msra.mxu0 %v1127_v20  ;;  %2657 = vmatpush.msra.mxu1 %v1144_v21  ;;  %v1194_v20 = vld [vmem:[%s6968_s1 + $0x2268] sm:$0xff]  ;;  %v1211_v21 = vld [vmem:[%s6968_s1 + $0x22f0] sm:$0xff] }
 0x22e   :  { %2678 = vmatpush.msra.mxu2 %v1159_v22  ;;  %2697 = vmatpush.msra.mxu3 %v1176_v23  ;;  %v1431_v22 = vadd.f32 %v1430_v15, %v1411_v12  ;;  %v1226_v23 = vld [vmem:[%s6968_s1 + $0x2368] sm:$0xff] }
 0x22f   :  { %2639 = vmatpush.msra.mxu0 %v1126_v24  ;;  %2658 = vmatpush.msra.mxu1 %v1143_v25  ;;  %v1243_v24 = vld [vmem:[%s6968_s1 + $0x23f0] sm:$0xff]  ;;  %v1450_v25 = vpop.f32.mrf.mxu0 }
 0x230   :  { %2679 = vmatpush.msra.mxu2 %v1158_v26  ;;  %2698 = vmatpush.msra.mxu3 %v1175_v27  ;;  %v1193_v26 = vld [vmem:[%s6968_s1 + $0x2260] sm:$0xff]  ;;  %v1210_v27 = vld [vmem:[%s6968_s1 + $0x22e8] sm:$0xff] }
 0x231   :  { %2640 = vmatpush.msra.mxu0 %v1125_v28  ;;  %2659 = vmatpush.msra.mxu1 %v1142_v29  ;;  %v1225_v28 = vld [vmem:[%s6968_s1 + $0x2360] sm:$0xff]  ;;  %v1242_v29 = vld [vmem:[%s6968_s1 + $0x23e8] sm:$0xff] }
 0x232   :  { %2680 = vmatpush.msra.mxu2 %v1157_v30  ;;  %2699 = vmatpush.msra.mxu3 %v1174_v31  ;;  %v1192_v30 = vld [vmem:[%s6968_s1 + $0x2258] sm:$0xff]  ;;  %v1209_v31 = vld [vmem:[%s6968_s1 + $0x22e0] sm:$0xff] }
 0x233   :  { %2641 = vmatpush.msra.mxu0 %v1124_v32  ;;  %2660 = vmatpush.msra.mxu1 %v1141_v33  ;;  %v1451_v32 = vadd.f32 %v1450_v25, %v1431_v22  ;;  %v1224_v33 = vld [vmem:[%s6968_s1 + $0x2358] sm:$0xff]  ;;  %v1231_v22 = vld [vmem:[%s6968_s1 + $0x2390] sm:$0xff]  ;;  %v1198_v25 = vld [vmem:[%s6968_s1 + $0x2288] sm:$0xff] }
 0x234   :  { %2681 = vmatpush.msra.mxu2 %v1156_v34  ;;  %2700 = vmatpush.msra.mxu3 %v1173_v35  ;;  %v1241_v34 = vld [vmem:[%s6968_s1 + $0x23e0] sm:$0xff]  ;;  %v1470_v35 = vpop.f32.mrf.mxu1 }
 0x235   :  { %2642 = vmatpush.msra.mxu0 %v1123_v36  ;;  %2661 = vmatpush.msra.mxu1 %v1140_v37  ;;  %v1191_v36 = vld [vmem:[%s6968_s1 + $0x2250] sm:$0xff]  ;;  %v1208_v37 = vld [vmem:[%s6968_s1 + $0x22d8] sm:$0xff] }
 0x236   :  { %2682 = vmatpush.msra.mxu2 %v1155_v38  ;;  %2701 = vmatpush.msra.mxu3 %v1172_v39  ;;  %v1223_v38 = vld [vmem:[%s6968_s1 + $0x2350] sm:$0xff]  ;;  %v1240_v39 = vld [vmem:[%s6968_s1 + $0x23d8] sm:$0xff] }
 0x237   :  { %2643 = vmatpush.msra.mxu0 %v1122_v40  ;;  %2662 = vmatpush.msra.mxu1 %v1139_v41  ;;  %v1190_v40 = vld [vmem:[%s6968_s1 + $0x2248] sm:$0xff]  ;;  %v1207_v41 = vld [vmem:[%s6968_s1 + $0x22d0] sm:$0xff] }
 0x238   :  { %2683 = vmatpush.msra.mxu2 %v1154_v42  ;;  %2702 = vmatpush.msra.mxu3 %v1171_v43  ;;  %v1471_v42 = vadd.f32 %v1470_v35, %v1451_v32  ;;  %v1222_v43 = vld [vmem:[%s6968_s1 + $0x2348] sm:$0xff]  ;;  %v1260_v32 = vld [vmem:[%s6968_s1 + $0x2478] sm:$0xff]  ;;  %v1229_v35 = vld [vmem:[%s6968_s1 + $0x2380] sm:$0xff] }
 0x239   :  { %2644 = vmatpush.msra.mxu0 %v1121_v44  ;;  %2663 = vmatpush.msra.mxu1 %v1138_v45  ;;  %v1239_v44 = vld [vmem:[%s6968_s1 + $0x23d0] sm:$0xff]  ;;  %v1490_v45 = vpop.f32.mrf.mxu2 }
 0x23a   :  { %2684 = vmatpush.msra.mxu2 %v1153_v46  ;;  %2703 = vmatpush.msra.mxu3 %v1170_v47  ;;  %v1189_v46 = vld [vmem:[%s6968_s1 + $0x2240] sm:$0xff]  ;;  %v1206_v47 = vld [vmem:[%s6968_s1 + $0x22c8] sm:$0xff] }
 0x23b   :  { %2645 = vmatpush.msra.mxu0 %v1120_v50  ;;  %2664 = vmatpush.msra.mxu1 %v1137_v51  ;;  %v1188_v50 = vld [vmem:[%s6968_s1 + $0x2238] sm:$0xff]  ;;  %v1205_v51 = vld [vmem:[%s6968_s1 + $0x22c0] sm:$0xff] }
 0x23c   :  { %2685 = vmatpush.msra.mxu2 %v1152_v52  ;;  %2704 = vmatpush.msra.mxu3 %v1169_v53  ;;  %v1491_v52 = vadd.f32 %v1490_v45, %v1471_v42  ;;  %v1220_v53 = vld [vmem:[%s6968_s1 + $0x2338] sm:$0xff]  ;;  %v1291_v42 = vld [vmem:[%s6968_s1 + $0x2570] sm:$0xff]  ;;  %v1258_v45 = vld [vmem:[%s6968_s1 + $0x2468] sm:$0xff] }
 0x23d   :  { %2646 = vmatpush.msra.mxu0 %v1119_v54  ;;  %2665 = vmatpush.msra.mxu1 %v1136_v55  ;;  %v1237_v54 = vld [vmem:[%s6968_s1 + $0x23c0] sm:$0xff]  ;;  %v1510_v55 = vpop.f32.mrf.mxu3 }
 0x23e   :  { %2686 = vmatpush.msra.mxu2 %v1151_v57  ;;  %2705 = vmatpush.msra.mxu3 %v1168_v58  ;;  %v1204_v57 = vld [vmem:[%s6968_s1 + $0x22b8] sm:$0xff]  ;;  %v1219_v58 = vld [vmem:[%s6968_s1 + $0x2330] sm:$0xff] }
 0x23f   :  { %2647 = vmatpush.msra.mxu0 %v1118_v60  ;;  %2666 = vmatpush.msra.mxu1 %v1135_v61  ;;  %v1530_v60 = vpop.f32.mrf.mxu0  ;;  %v1186_v61 = vld [vmem:[%s6968_s1 + $0x2228] sm:$0xff] }
 0x240   :  { %2687 = vmatpush.msra.mxu2 %v1150_v62  ;;  %2706 = vmatpush.msra.mxu3 %v1167_v63  ;;  %v1203_v62 = vld [vmem:[%s6968_s1 + $0x22b0] sm:$0xff]  ;;  %v1511_v63 = vadd.f32 %v1510_v55, %v1491_v52 }
 0x241   :  { %2648 = vmatpush.msra.mxu0 %v1117_v0  ;;  %2667 = vmatpush.msra.mxu1 %v1134_v1  ;;  %v1218_v0 = vld [vmem:[%s6968_s1 + $0x2328] sm:$0xff]  ;;  %v1235_v1 = vld [vmem:[%s6968_s1 + $0x23b0] sm:$0xff]  ;;  %v1570_v12 = vpop.f32.mrf.mxu2 }
 0x242   :  { %2688 = vmatpush.msra.mxu2 %v1149_v3  ;;  %2707 = vmatpush.msra.mxu3 %v1166_v4  ;;  %v1202_v3 = vld [vmem:[%s6968_s1 + $0x22a8] sm:$0xff]  ;;  %v1531_v4 = vadd.f32 %v1530_v60, %v1511_v63 }
 0x243   :  { %2649 = vmatmul.f32.vlgmr.msra.gmra.mxu0 %v78_v6  ;;  %2689 = vmatmul.f32.vlgmr.msra.gmra.mxu2 %v80_v7  ;;  %v1234_v6 = vld [vmem:[%s6968_s1 + $0x23a8] sm:$0xff]  ;;  %v1550_v7 = vpop.f32.mrf.mxu1 }
 0x244   :  { %2713 = vmatpush.msrb.mxu0 %v1196_v8  ;;  %2753 = vmatpush.msrb.mxu2 %v1228_v9  ;;  %v1184_v8 = vld [vmem:[%s6968_s1 + $0x2218] sm:$0xff]  ;;  %v1201_v9 = vld [vmem:[%s6968_s1 + $0x22a0] sm:$0xff]  ;;  %v1551_v15 = vadd.f32 %v1550_v7, %v1531_v4 }
 0x245   :  { %2668 = vmatpush.msra.mxu1 %v1133_v10  ;;  %2708 = vmatpush.msra.mxu3 %v1165_v11  ;;  %v1216_v10 = vld [vmem:[%s6968_s1 + $0x2318] sm:$0xff]  ;;  %v1233_v11 = vld [vmem:[%s6968_s1 + $0x23a0] sm:$0xff] }
 0x246   :  { %2669 = vmatmul.f32.vlgmr.msra.gmra.mxu1 %v79_v13  ;;  %2709 = vmatmul.f32.vlgmr.msra.gmra.mxu3 %v81_v14  ;;  %v1183_v13 = vld [vmem:[%s6968_s1 + $0x2210] sm:$0xff]  ;;  %v1200_v14 = vld [vmem:[%s6968_s1 + $0x2298] sm:$0xff] }
 0x247   :  { %2714 = vmatpush.msrb.mxu0 %v1195_v16  ;;  %2733 = vmatpush.msrb.mxu1 %v1212_v17  ;;  %v1215_v16 = vld [vmem:[%s6968_s1 + $0x2310] sm:$0xff]  ;;  %v1232_v17 = vld [vmem:[%s6968_s1 + $0x2398] sm:$0xff] }
 0x248   :  { %2754 = vmatpush.msrb.mxu2 %v1227_v18  ;;  %2773 = vmatpush.msrb.mxu3 %v1244_v19  ;;  %v1182_v18 = vld [vmem:[%s6968_s1 + $0x2208] sm:$0xff]  ;;  %v1199_v19 = vld [vmem:[%s6968_s1 + $0x2290] sm:$0xff] }
 0x249   :  { %2715 = vmatpush.msrb.mxu0 %v1194_v20  ;;  %2734 = vmatpush.msrb.mxu1 %v1211_v21  ;;  %v1571_v20 = vadd.f32 %v1570_v12, %v1551_v15  ;;  %v1214_v21 = vld [vmem:[%s6968_s1 + $0x2308] sm:$0xff] }
 0x24a   :  { %2755 = vmatpush.msrb.mxu2 %v1226_v23  ;;  %2774 = vmatpush.msrb.mxu3 %v1243_v24  ;;  %v1590_v23 = vpop.f32.mrf.mxu3  ;;  %v1181_v24 = vld [vmem:[%s6968_s1 + $0x2200] sm:$0xff] }
 0x24b   :  { %2716 = vmatpush.msrb.mxu0 %v1193_v26  ;;  %2735 = vmatpush.msrb.mxu1 %v1210_v27  ;;  %v1213_v26 = vld [vmem:[%s6968_s1 + $0x2300] sm:$0xff]  ;;  %v1230_v27 = vld [vmem:[%s6968_s1 + $0x2388] sm:$0xff] }
 0x24c   :  { %2756 = vmatpush.msrb.mxu2 %v1225_v28  ;;  %2775 = vmatpush.msrb.mxu3 %v1242_v29  ;;  %v1610_v28 = vpop.f32.mrf.mxu0  ;;  %v82_v29 = vld [vmem:[%s6969_s0 + $0x220] sm:$0xff] }
 0x24d   :  { %2717 = vmatpush.msrb.mxu0 %v1192_v30  ;;  %2736 = vmatpush.msrb.mxu1 %v1209_v31  ;;  %v84_v30 = vld [vmem:[%s6969_s0 + $0x230] sm:$0xff]  ;;  %v1591_v31 = vadd.f32 %v1590_v23, %v1571_v20 }
 0x24e   :  { %2757 = vmatpush.msrb.mxu2 %v1224_v33  ;;  %2776 = vmatpush.msrb.mxu3 %v1241_v34  ;;  %v1292_v33 = vld [vmem:[%s6968_s1 + $0x2578] sm:$0xff]  ;;  %v1197_v34 = vld [vmem:[%s6968_s1 + $0x2280] sm:$0xff] }
 0x24f   :  { %2718 = vmatpush.msrb.mxu0 %v1191_v36  ;;  %2737 = vmatpush.msrb.mxu1 %v1208_v37  ;;  %v1611_v36 = vadd.f32 %v1610_v28, %v1591_v31  ;;  %v83_v37 = vld [vmem:[%s6969_s0 + $0x228] sm:$0xff] }
 0x250   :  { %2758 = vmatpush.msrb.mxu2 %v1223_v38  ;;  %2777 = vmatpush.msrb.mxu3 %v1240_v39  ;;  %v85_v38 = vld [vmem:[%s6969_s0 + $0x238] sm:$0xff]  ;;  %v1630_v39 = vpop.f32.mrf.mxu1 }
 0x251   :  { %2719 = vmatpush.msrb.mxu0 %v1190_v40  ;;  %2738 = vmatpush.msrb.mxu1 %v1207_v41  ;;  %v1259_v40 = vld [vmem:[%s6968_s1 + $0x2470] sm:$0xff]  ;;  %v1276_v41 = vld [vmem:[%s6968_s1 + $0x24f8] sm:$0xff] }
 0x252   :  { %2759 = vmatpush.msrb.mxu2 %v1222_v43  ;;  %2778 = vmatpush.msrb.mxu3 %v1239_v44  ;;  %v1308_v43 = vld [vmem:[%s6968_s1 + $0x25f8] sm:$0xff]  ;;  %v1650_v44 = vpop.f32.mrf.mxu2  ;;  %v1670_v55 = vpop.f32.mrf.mxu3 }
 0x253   :  { %2720 = vmatpush.msrb.mxu0 %v1189_v46  ;;  %2739 = vmatpush.msrb.mxu1 %v1206_v47  ;;  %v1275_v46 = vld [vmem:[%s6968_s1 + $0x24f0] sm:$0xff]  ;;  %v1631_v47 = vadd.f32 %v1630_v39, %v1611_v36 }
 0x254   :  { %2760 = vmatpush.msrb.mxu2 %v1221_v48  ;;  %2779 = vmatpush.msrb.mxu3 %v1238_v49  ;;  %v1290_v48 = vld [vmem:[%s6968_s1 + $0x2568] sm:$0xff]  ;;  %v1307_v49 = vld [vmem:[%s6968_s1 + $0x25f0] sm:$0xff]  ;;  %v1690_v60 = vpop.f32.mrf.mxu0 }
 0x255   :  { %2721 = vmatpush.msrb.mxu0 %v1188_v50  ;;  %2740 = vmatpush.msrb.mxu1 %v1205_v51  ;;  %v1257_v50 = vld [vmem:[%s6968_s1 + $0x2460] sm:$0xff]  ;;  %v1274_v51 = vld [vmem:[%s6968_s1 + $0x24e8] sm:$0xff]  ;;  %v1651_v52 = vadd.f32 %v1650_v44, %v1631_v47 }
 0x256   :  { %2761 = vmatpush.msrb.mxu2 %v1220_v53  ;;  %2780 = vmatpush.msrb.mxu3 %v1237_v54  ;;  %v1289_v53 = vld [vmem:[%s6968_s1 + $0x2560] sm:$0xff]  ;;  %v1306_v54 = vld [vmem:[%s6968_s1 + $0x25e8] sm:$0xff] }
 0x257   :  { %2722 = vmatpush.msrb.mxu0 %v1187_v56  ;;  %2741 = vmatpush.msrb.mxu1 %v1204_v57  ;;  %v1256_v56 = vld [vmem:[%s6968_s1 + $0x2458] sm:$0xff]  ;;  %v1273_v57 = vld [vmem:[%s6968_s1 + $0x24e0] sm:$0xff]  ;;  %v1671_v63 = vadd.f32 %v1670_v55, %v1651_v52 }
 0x258   :  { %2762 = vmatpush.msrb.mxu2 %v1219_v58  ;;  %2781 = vmatpush.msrb.mxu3 %v1236_v59  ;;  %v1288_v58 = vld [vmem:[%s6968_s1 + $0x2558] sm:$0xff]  ;;  %v1305_v59 = vld [vmem:[%s6968_s1 + $0x25e0] sm:$0xff]  ;;  %v1710_v7 = vpop.f32.mrf.mxu1 }
 0x259   :  { %2723 = vmatpush.msrb.mxu0 %v1186_v61  ;;  %2742 = vmatpush.msrb.mxu1 %v1203_v62  ;;  %v1255_v61 = vld [vmem:[%s6968_s1 + $0x2450] sm:$0xff]  ;;  %v1272_v62 = vld [vmem:[%s6968_s1 + $0x24d8] sm:$0xff]  ;;  %v1691_v4 = vadd.f32 %v1690_v60, %v1671_v63 }
 0x25a   :  { %2763 = vmatpush.msrb.mxu2 %v1218_v0  ;;  %2782 = vmatpush.msrb.mxu3 %v1235_v1  ;;  %v1287_v0 = vld [vmem:[%s6968_s1 + $0x2550] sm:$0xff]  ;;  %v1304_v1 = vld [vmem:[%s6968_s1 + $0x25d8] sm:$0xff]  ;;  %v1730_v12 = vpop.f32.mrf.mxu2  ;;  %v1750_v23 = vpop.f32.mrf.mxu3 }
 0x25b   :  { %2724 = vmatpush.msrb.mxu0 %v1185_v2  ;;  %2743 = vmatpush.msrb.mxu1 %v1202_v3  ;;  %v1254_v2 = vld [vmem:[%s6968_s1 + $0x2448] sm:$0xff]  ;;  %v1271_v3 = vld [vmem:[%s6968_s1 + $0x24d0] sm:$0xff]  ;;  %v1711_v15 = vadd.f32 %v1710_v7, %v1691_v4 }
 0x25c   :  { %2764 = vmatpush.msrb.mxu2 %v1217_v5  ;;  %2783 = vmatpush.msrb.mxu3 %v1234_v6  ;;  %v1286_v5 = vld [vmem:[%s6968_s1 + $0x2548] sm:$0xff]  ;;  %v1303_v6 = vld [vmem:[%s6968_s1 + $0x25d0] sm:$0xff]  ;;  %v1770_v28 = vpop.f32.mrf.mxu0 }
 0x25d   :  { %2725 = vmatpush.msrb.mxu0 %v1184_v8  ;;  %2744 = vmatpush.msrb.mxu1 %v1201_v9  ;;  %v1253_v8 = vld [vmem:[%s6968_s1 + $0x2440] sm:$0xff]  ;;  %v1270_v9 = vld [vmem:[%s6968_s1 + $0x24c8] sm:$0xff]  ;;  %v1731_v20 = vadd.f32 %v1730_v12, %v1711_v15  ;;  %v1339_v7 = vld [vmem:[%s6968_s1 + $0x26f0] sm:$0xff] }
 0x25e   :  { %2765 = vmatpush.msrb.mxu2 %v1216_v10  ;;  %2784 = vmatpush.msrb.mxu3 %v1233_v11  ;;  %v1285_v10 = vld [vmem:[%s6968_s1 + $0x2540] sm:$0xff]  ;;  %v1302_v11 = vld [vmem:[%s6968_s1 + $0x25c8] sm:$0xff]  ;;  %v92_v12 = vld [vmem:[%s6969_s0 + $0x270] sm:$0xff] }
 0x25f   :  { %2726 = vmatpush.msrb.mxu0 %v1183_v13  ;;  %2745 = vmatpush.msrb.mxu1 %v1200_v14  ;;  %v1252_v13 = vld [vmem:[%s6968_s1 + $0x2438] sm:$0xff]  ;;  %v1269_v14 = vld [vmem:[%s6968_s1 + $0x24c0] sm:$0xff]  ;;  %v1751_v31 = vadd.f32 %v1750_v23, %v1731_v20  ;;  %v1318_v20 = vld [vmem:[%s6968_s1 + $0x2648] sm:$0xff] }
 0x260   :  { %2766 = vmatpush.msrb.mxu2 %v1215_v16  ;;  %2785 = vmatpush.msrb.mxu3 %v1232_v17  ;;  %v1284_v16 = vld [vmem:[%s6968_s1 + $0x2538] sm:$0xff]  ;;  %v1301_v17 = vld [vmem:[%s6968_s1 + $0x25c0] sm:$0xff]  ;;  %v1790_v39 = vpop.f32.mrf.mxu1 }
 0x261   :  { %2727 = vmatpush.msrb.mxu0 %v1182_v18  ;;  %2746 = vmatpush.msrb.mxu1 %v1199_v19  ;;  %v1251_v18 = vld [vmem:[%s6968_s1 + $0x2430] sm:$0xff]  ;;  %v1268_v19 = vld [vmem:[%s6968_s1 + $0x24b8] sm:$0xff]  ;;  %v1771_v36 = vadd.f32 %v1770_v28, %v1751_v31  ;;  %v1337_v15 = vld [vmem:[%s6968_s1 + $0x26e0] sm:$0xff] }
 0x262   :  { %2767 = vmatpush.msrb.mxu2 %v1214_v21  ;;  %2786 = vmatpush.msrb.mxu3 %v1231_v22  ;;  %v1283_v21 = vld [vmem:[%s6968_s1 + $0x2530] sm:$0xff]  ;;  %v1300_v22 = vld [vmem:[%s6968_s1 + $0x25b8] sm:$0xff]  ;;  %v1810_v44 = vpop.f32.mrf.mxu2  ;;  %v1830_v55 = vpop.f32.mrf.mxu3 }
 0x263   :  { %2728 = vmatpush.msrb.mxu0 %v1181_v24  ;;  %2747 = vmatpush.msrb.mxu1 %v1198_v25  ;;  %v1250_v24 = vld [vmem:[%s6968_s1 + $0x2428] sm:$0xff]  ;;  %v1267_v25 = vld [vmem:[%s6968_s1 + $0x24b0] sm:$0xff]  ;;  %v1791_v47 = vadd.f32 %v1790_v39, %v1771_v36 }
 0x264   :  { %2768 = vmatpush.msrb.mxu2 %v1213_v26  ;;  %2787 = vmatpush.msrb.mxu3 %v1230_v27  ;;  %v1282_v26 = vld [vmem:[%s6968_s1 + $0x2528] sm:$0xff]  ;;  %v1299_v27 = vld [vmem:[%s6968_s1 + $0x25b0] sm:$0xff]  ;;  %v1850_v60 = vpop.f32.mrf.mxu0 }
 0x265   :  { %2729 = vmatmul.f32.vlgmr.msrb.gmra.mxu0 %v82_v29  ;;  %2769 = vmatmul.f32.vlgmr.msrb.gmra.mxu2 %v84_v30  ;;  %v1249_v29 = vld [vmem:[%s6968_s1 + $0x2420] sm:$0xff]  ;;  %v1266_v30 = vld [vmem:[%s6968_s1 + $0x24a8] sm:$0xff]  ;;  %v1811_v52 = vadd.f32 %v1810_v44, %v1791_v47  ;;  %v1311_v44 = vld [vmem:[%s6968_s1 + $0x2610] sm:$0xff] }
 0x266   :  { %2793 = vmatpush.msra.mxu0 %v1260_v32  ;;  %2833 = vmatpush.msra.mxu2 %v1292_v33  ;;  %v1281_v32 = vld [vmem:[%s6968_s1 + $0x2520] sm:$0xff]  ;;  %v1298_v33 = vld [vmem:[%s6968_s1 + $0x25a8] sm:$0xff] }
 0x267   :  { %2748 = vmatpush.msrb.mxu1 %v1197_v34  ;;  %2788 = vmatpush.msrb.mxu3 %v1229_v35  ;;  %v1248_v34 = vld [vmem:[%s6968_s1 + $0x2418] sm:$0xff]  ;;  %v1265_v35 = vld [vmem:[%s6968_s1 + $0x24a0] sm:$0xff]  ;;  %v1831_v63 = vadd.f32 %v1830_v55, %v1811_v52  ;;  %v1330_v39 = vld [vmem:[%s6968_s1 + $0x26a8] sm:$0xff] }
 0x268   :  { %2749 = vmatmul.f32.vlgmr.msrb.gmra.mxu1 %v83_v37  ;;  %2789 = vmatmul.f32.vlgmr.msrb.gmra.mxu3 %v85_v38  ;;  %v1280_v37 = vld [vmem:[%s6968_s1 + $0x2518] sm:$0xff]  ;;  %v1297_v38 = vld [vmem:[%s6968_s1 + $0x25a0] sm:$0xff]  ;;  %v1310_v47 = vld [vmem:[%s6968_s1 + $0x2608] sm:$0xff] }
 0x269   :  { %2794 = vmatpush.msra.mxu0 %v1259_v40  ;;  %2813 = vmatpush.msra.mxu1 %v1276_v41  ;;  %v1247_v40 = vld [vmem:[%s6968_s1 + $0x2410] sm:$0xff]  ;;  %v1264_v41 = vld [vmem:[%s6968_s1 + $0x2498] sm:$0xff]  ;;  %v1851_v4 = vadd.f32 %v1850_v60, %v1831_v63  ;;  %v1326_v52 = vld [vmem:[%s6968_s1 + $0x2688] sm:$0xff] }
 0x26a   :  { %2834 = vmatpush.msra.mxu2 %v1291_v42  ;;  %2853 = vmatpush.msra.mxu3 %v1308_v43  ;;  %v1279_v42 = vld [vmem:[%s6968_s1 + $0x2510] sm:$0xff]  ;;  %v1296_v43 = vld [vmem:[%s6968_s1 + $0x2598] sm:$0xff]  ;;  %v1325_v55 = vld [vmem:[%s6968_s1 + $0x2680] sm:$0xff] }
 0x26b   :  { %2795 = vmatpush.msra.mxu0 %v1258_v45  ;;  %2814 = vmatpush.msra.mxu1 %v1275_v46  ;;  %v1246_v45 = vld [vmem:[%s6968_s1 + $0x2408] sm:$0xff]  ;;  %v1263_v46 = vld [vmem:[%s6968_s1 + $0x2490] sm:$0xff] }
 0x26c   :  { %2835 = vmatpush.msra.mxu2 %v1290_v48  ;;  %2854 = vmatpush.msra.mxu3 %v1307_v49  ;;  %v1278_v48 = vld [vmem:[%s6968_s1 + $0x2508] sm:$0xff]  ;;  %v1295_v49 = vld [vmem:[%s6968_s1 + $0x2590] sm:$0xff] }
 0x26d   :  { %2796 = vmatpush.msra.mxu0 %v1257_v50  ;;  %2815 = vmatpush.msra.mxu1 %v1274_v51  ;;  %v1245_v50 = vld [vmem:[%s6968_s1 + $0x2400] sm:$0xff]  ;;  %v1262_v51 = vld [vmem:[%s6968_s1 + $0x2488] sm:$0xff] }
 0x26e   :  { %2836 = vmatpush.msra.mxu2 %v1289_v53  ;;  %2855 = vmatpush.msra.mxu3 %v1306_v54  ;;  %v1277_v53 = vld [vmem:[%s6968_s1 + $0x2500] sm:$0xff]  ;;  %v1294_v54 = vld [vmem:[%s6968_s1 + $0x2588] sm:$0xff] }
 0x26f   :  { %2797 = vmatpush.msra.mxu0 %v1256_v56  ;;  %2816 = vmatpush.msra.mxu1 %v1273_v57  ;;  %v86_v56 = vld [vmem:[%s6969_s0 + $0x240] sm:$0xff]  ;;  %v88_v57 = vld [vmem:[%s6969_s0 + $0x250] sm:$0xff] }
 0x270   :  { %2837 = vmatpush.msra.mxu2 %v1288_v58  ;;  %2856 = vmatpush.msra.mxu3 %v1305_v59  ;;  %v1324_v58 = vld [vmem:[%s6968_s1 + $0x2678] sm:$0xff]  ;;  %v1261_v59 = vld [vmem:[%s6968_s1 + $0x2480] sm:$0xff] }
 0x271   :  { %2798 = vmatpush.msra.mxu0 %v1255_v61  ;;  %2817 = vmatpush.msra.mxu1 %v1272_v62  ;;  %v1293_v61 = vld [vmem:[%s6968_s1 + $0x2580] sm:$0xff]  ;;  %v87_v62 = vld [vmem:[%s6969_s0 + $0x248] sm:$0xff] }
 0x272   :  { %2838 = vmatpush.msra.mxu2 %v1287_v0  ;;  %2857 = vmatpush.msra.mxu3 %v1304_v1  ;;  %v89_v0 = vld [vmem:[%s6969_s0 + $0x258] sm:$0xff]  ;;  %v1323_v1 = vld [vmem:[%s6968_s1 + $0x2670] sm:$0xff] }
 0x273   :  { %2799 = vmatpush.msra.mxu0 %v1254_v2  ;;  %2818 = vmatpush.msra.mxu1 %v1271_v3  ;;  %v1340_v2 = vld [vmem:[%s6968_s1 + $0x26f8] sm:$0xff]  ;;  %v1342_v3 = vld [vmem:[%s6968_s1 + $0x2708] sm:$0xff] }
 0x274   :  { %2839 = vmatpush.msra.mxu2 %v1286_v5  ;;  %2858 = vmatpush.msra.mxu3 %v1303_v6  ;;  %v1322_v5 = vld [vmem:[%s6968_s1 + $0x2668] sm:$0xff]  ;;  %v1870_v6 = vpop.f32.mrf.mxu1 }
 0x275   :  { %2800 = vmatpush.msra.mxu0 %v1253_v8  ;;  %2819 = vmatpush.msra.mxu1 %v1270_v9  ;;  %v1341_v8 = vld [vmem:[%s6968_s1 + $0x2700] sm:$0xff] }
 0x276   :  { %2840 = vmatpush.msra.mxu2 %v1285_v10  ;;  %2859 = vmatpush.msra.mxu3 %v1302_v11  ;;  %v1321_v9 = vld [vmem:[%s6968_s1 + $0x2660] sm:$0xff]  ;;  %v1890_v10 = vpop.f32.mrf.mxu2  ;;  %v1338_v11 = vld [vmem:[%s6968_s1 + $0x26e8] sm:$0xff] }
 0x277   :  { %2801 = vmatpush.msra.mxu0 %v1252_v13  ;;  %2820 = vmatpush.msra.mxu1 %v1269_v14  ;;  %v1871_v13 = vadd.f32 %v1870_v6, %v1851_v4  ;;  %v1320_v14 = vld [vmem:[%s6968_s1 + $0x2658] sm:$0xff] }
 0x278   :  { %2841 = vmatpush.msra.mxu2 %v1284_v16  ;;  %2860 = vmatpush.msra.mxu3 %v1301_v17  ;;  %v1319_v17 = vld [vmem:[%s6968_s1 + $0x2650] sm:$0xff] }
 0x279   :  { %2802 = vmatpush.msra.mxu0 %v1251_v18  ;;  %2821 = vmatpush.msra.mxu1 %v1268_v19  ;;  %v1891_v16 = vadd.f32 %v1890_v10, %v1871_v13  ;;  %v1910_v18 = vpop.f32.mrf.mxu3  ;;  %v1336_v19 = vld [vmem:[%s6968_s1 + $0x26d8] sm:$0xff] }
 0x27a   :  { %2842 = vmatpush.msra.mxu2 %v1283_v21  ;;  %2861 = vmatpush.msra.mxu3 %v1300_v22  ;;  %v1930_v21 = vpop.f32.mrf.mxu0  ;;  %v1335_v22 = vld [vmem:[%s6968_s1 + $0x26d0] sm:$0xff] }
 0x27b   :  { %2803 = vmatpush.msra.mxu0 %v1250_v24  ;;  %2822 = vmatpush.msra.mxu1 %v1267_v25  ;;  %v1911_v23 = vadd.f32 %v1910_v18, %v1891_v16  ;;  %v1317_v24 = vld [vmem:[%s6968_s1 + $0x2640] sm:$0xff]  ;;  %v1334_v25 = vld [vmem:[%s6968_s1 + $0x26c8] sm:$0xff] }
 0x27c   :  { %2843 = vmatpush.msra.mxu2 %v1282_v26  ;;  %2862 = vmatpush.msra.mxu3 %v1299_v27  ;;  %v1316_v27 = vld [vmem:[%s6968_s1 + $0x2638] sm:$0xff]  ;;  %v1950_v28 = vpop.f32.mrf.mxu1 }
 0x27d   :  { %2804 = vmatpush.msra.mxu0 %v1249_v29  ;;  %2823 = vmatpush.msra.mxu1 %v1266_v30  ;;  %v1931_v26 = vadd.f32 %v1930_v21, %v1911_v23  ;;  %v1333_v29 = vld [vmem:[%s6968_s1 + $0x26c0] sm:$0xff]  ;;  %v1315_v30 = vld [vmem:[%s6968_s1 + $0x2630] sm:$0xff] }
 0x27e   :  { %2844 = vmatpush.msra.mxu2 %v1281_v32  ;;  %2863 = vmatpush.msra.mxu3 %v1298_v33  ;;  %v1970_v31 = vpop.f32.mrf.mxu2  ;;  %v1332_v32 = vld [vmem:[%s6968_s1 + $0x26b8] sm:$0xff] }
 0x27f   :  { %2805 = vmatpush.msra.mxu0 %v1248_v34  ;;  %2824 = vmatpush.msra.mxu1 %v1265_v35  ;;  %v1951_v33 = vadd.f32 %v1950_v28, %v1931_v26  ;;  %v1314_v34 = vld [vmem:[%s6968_s1 + $0x2628] sm:$0xff]  ;;  %v1331_v35 = vld [vmem:[%s6968_s1 + $0x26b0] sm:$0xff] }
 0x280   :  { %2845 = vmatpush.msra.mxu2 %v1280_v37  ;;  %2864 = vmatpush.msra.mxu3 %v1297_v38  ;;  %v1313_v37 = vld [vmem:[%s6968_s1 + $0x2620] sm:$0xff] }
 0x281   :  { %2806 = vmatpush.msra.mxu0 %v1247_v40  ;;  %2825 = vmatpush.msra.mxu1 %v1264_v41  ;;  %v1971_v36 = vadd.f32 %v1970_v31, %v1951_v33  ;;  %v1990_v38 = vpop.f32.mrf.mxu3  ;;  %v1312_v40 = vld [vmem:[%s6968_s1 + $0x2618] sm:$0xff] }
 0x282   :  { %2846 = vmatpush.msra.mxu2 %v1279_v42  ;;  %2865 = vmatpush.msra.mxu3 %v1296_v43  ;;  %v2010_v41 = vpop.f32.mrf.mxu0  ;;  %v1329_v42 = vld [vmem:[%s6968_s1 + $0x26a0] sm:$0xff] }
 0x283   :  { %2807 = vmatpush.msra.mxu0 %v1246_v45  ;;  %2826 = vmatpush.msra.mxu1 %v1263_v46  ;;  %v1991_v43 = vadd.f32 %v1990_v38, %v1971_v36  ;;  %v1328_v45 = vld [vmem:[%s6968_s1 + $0x2698] sm:$0xff] }
 0x284   :  { %2847 = vmatpush.msra.mxu2 %v1278_v48  ;;  %2866 = vmatpush.msra.mxu3 %v1295_v49  ;;  %v2030_v48 = vpop.f32.mrf.mxu1  ;;  %v1327_v49 = vld [vmem:[%s6968_s1 + $0x2690] sm:$0xff] }
 0x285   :  { %2808 = vmatpush.msra.mxu0 %v1245_v50  ;;  %2827 = vmatpush.msra.mxu1 %v1262_v51  ;;  %v2011_v46 = vadd.f32 %v2010_v41, %v1991_v43  ;;  %v1309_v50 = vld [vmem:[%s6968_s1 + $0x2600] sm:$0xff] }
 0x286   :  { %2848 = vmatpush.msra.mxu2 %v1277_v53  ;;  %2867 = vmatpush.msra.mxu3 %v1294_v54  ;;  %v2050_v51 = vpop.f32.mrf.mxu2  ;;  %v90_v53 = vld [vmem:[%s6969_s0 + $0x260] sm:$0xff] }
 0x287   :  { %2809 = vmatmul.f32.vlgmr.msra.gmra.mxu0 %v86_v56  ;;  %2849 = vmatmul.f32.vlgmr.msra.gmra.mxu2 %v88_v57  ;;  %v2031_v54 = vadd.f32 %v2030_v48, %v2011_v46  ;;  %v91_v57 = vld [vmem:[%s6969_s0 + $0x268] sm:$0xff] }
 0x288   :  { %2873 = vmatpush.msrb.mxu0 %v1324_v58  ;;  %2828 = vmatpush.msra.mxu1 %v1261_v59 }
 0x289   :  { %2868 = vmatpush.msra.mxu3 %v1293_v61  ;;  %2829 = vmatmul.f32.vlgmr.msra.gmra.mxu1 %v87_v62  ;;  %v2051_v56 = vadd.f32 %v2050_v51, %v2031_v54  ;;  %v2070_v58 = vpop.f32.mrf.mxu3 }
 0x28a   :  { %2869 = vmatmul.f32.vlgmr.msra.gmra.mxu3 %v89_v0  ;;  %2874 = vmatpush.msrb.mxu0 %v1323_v1  ;;  %v2090_v59 = vpop.f32.mrf.mxu0 }
 0x28b   :  { %2893 = vmatpush.msrb.mxu1 %v1340_v2  ;;  %2927 = vmatpush.msrb.mxu2 %v1342_v3  ;;  %v2071_v60 = vadd.f32 %v2070_v58, %v2051_v56 }
 0x28c   :  { %2875 = vmatpush.msrb.mxu0 %v1322_v5  ;;  %v2110_v62 = vpop.f32.mrf.mxu1 }
 0x28d   :  { %2894 = vmatpush.msrb.mxu1 %v1339_v7  ;;  %2928 = vmatpush.msrb.mxu2 %v1341_v8  ;;  %v2091_v61 = vadd.f32 %v2090_v59, %v2071_v60 }
 0x28e   :  { %2876 = vmatpush.msrb.mxu0 %v1321_v9  ;;  %v2130_v63 = vpop.f32.mrf.mxu2 }
 0x28f   :  { %2895 = vmatpush.msrb.mxu1 %v1338_v11  ;;  %2949 = vmatmul.msk.f32.vlgmr.msrb.gmra.mxu2 %vm1349_vm0, %v92_v12  ;;  %v2111_v0 = vadd.f32 %v2110_v62, %v2091_v61 }
 0x290   :  { %2877 = vmatpush.msrb.mxu0 %v1320_v14 }
 0x291   :  { %2896 = vmatpush.msrb.mxu1 %v1337_v15  ;;  %v2131_v1 = vadd.f32 %v2130_v63, %v2111_v0  ;;  %v2150_v2 = vpop.f32.mrf.mxu3 }
 0x292   :  { %2878 = vmatpush.msrb.mxu0 %v1319_v17  ;;  %v2170_v3 = vpop.f32.mrf.mxu0 }
 0x293   :  { %2897 = vmatpush.msrb.mxu1 %v1336_v19  ;;  %v2151_v4 = vadd.f32 %v2150_v2, %v2131_v1 }
 0x294   :  { %2879 = vmatpush.msrb.mxu0 %v1318_v20  ;;  %v2190_v6 = vpop.f32.mrf.mxu1 }
 0x295   :  { %2898 = vmatpush.msrb.mxu1 %v1335_v22  ;;  %v2171_v5 = vadd.f32 %v2170_v3, %v2151_v4 }
 0x296   :  { %2880 = vmatpush.msrb.mxu0 %v1317_v24  ;;  %v2210_v7 = vpop.f32.mrf.mxu2 }
 0x297   :  { %2899 = vmatpush.msrb.mxu1 %v1334_v25  ;;  %v2191_v8 = vadd.f32 %v2190_v6, %v2171_v5 }
 0x298   :  { %2881 = vmatpush.msrb.mxu0 %v1316_v27 }
 0x299   :  { %2900 = vmatpush.msrb.mxu1 %v1333_v29  ;;  %v2211_v9 = vadd.f32 %v2210_v7, %v2191_v8  ;;  %v2230_v10 = vpop.f32.mrf.mxu3 }
 0x29a   :  { %2882 = vmatpush.msrb.mxu0 %v1315_v30  ;;  %v2250_v11 = vpop.f32.mrf.mxu0 }
 0x29b   :  { %2901 = vmatpush.msrb.mxu1 %v1332_v32  ;;  %v2231_v12 = vadd.f32 %v2230_v10, %v2211_v9 }
 0x29c   :  { %2883 = vmatpush.msrb.mxu0 %v1314_v34  ;;  %v2270_v14 = vpop.f32.mrf.mxu1 }
 0x29d   :  { %2902 = vmatpush.msrb.mxu1 %v1331_v35  ;;  %v2251_v13 = vadd.f32 %v2250_v11, %v2231_v12 }
 0x29e   :  { %2884 = vmatpush.msrb.mxu0 %v1313_v37  ;;  %v2290_v15 = vpop.f32.mrf.mxu2 }
 0x29f   :  { %2903 = vmatpush.msrb.mxu1 %v1330_v39  ;;  %v2271_v16 = vadd.f32 %v2270_v14, %v2251_v13 }
 0x2a0   :  { %2885 = vmatpush.msrb.mxu0 %v1312_v40 }
 0x2a1   :  { %2904 = vmatpush.msrb.mxu1 %v1329_v42  ;;  %v2291_v17 = vadd.f32 %v2290_v15, %v2271_v16  ;;  %v2310_v18 = vpop.f32.mrf.mxu3 }
 0x2a2   :  { %2886 = vmatpush.msrb.mxu0 %v1311_v44  ;;  %v2330_v19 = vpop.f32.mrf.mxu0 }
 0x2a3   :  { %2905 = vmatpush.msrb.mxu1 %v1328_v45  ;;  %v2311_v20 = vadd.f32 %v2310_v18, %v2291_v17 }
 0x2a4   :  { %2887 = vmatpush.msrb.mxu0 %v1310_v47  ;;  %v2350_v22 = vpop.f32.mrf.mxu1 }
 0x2a5   :  { %2906 = vmatpush.msrb.mxu1 %v1327_v49  ;;  %v2331_v21 = vadd.f32 %v2330_v19, %v2311_v20 }
 0x2a6   :  { %2888 = vmatpush.msrb.mxu0 %v1309_v50  ;;  %v2370_v23 = vpop.f32.mrf.mxu2 }
 0x2a7   :  { %2907 = vmatpush.msrb.mxu1 %v1326_v52  ;;  %2889 = vmatmul.f32.vlgmr.msrb.gmra.mxu0 %v90_v53  ;;  %v2351_v24 = vadd.f32 %v2350_v22, %v2331_v21 }
 0x2a9   :  { %2908 = vmatpush.msrb.mxu1 %v1325_v55  ;;  %v2371_v25 = vadd.f32 %v2370_v23, %v2351_v24  ;;  %v2390_v26 = vpop.f32.mrf.mxu3 }
 0x2aa   :  { %2909 = vmatmul.f32.vlgmr.msrb.gmra.mxu1 %v91_v57  ;;  %v2410_v27 = vpop.f32.mrf.mxu0 }
 0x2ab   :  { %v2391_v28 = vadd.f32 %v2390_v26, %v2371_v25 }
 0x2ac   :  { %v2430_v30 = vpop.f32.mrf.mxu1 }
 0x2ad   :  { %v2411_v29 = vadd.f32 %v2410_v27, %v2391_v28 }
 0x2ae   :  { %v2450_v31 = vpop.f32.mrf.mxu2 }
 0x2af   :  { %v2431_v32 = vadd.f32 %v2430_v30, %v2411_v29 }
 0x2b1   :  { %v2451_v33 = vadd.f32 %v2450_v31, %v2431_v32  ;;  %v2470_v34 = vpop.f32.mrf.mxu3 }
 0x2b2   :  { %v2490_v35 = vpop.f32.mrf.mxu0 }
 0x2b3   :  { %v2471_v36 = vadd.f32 %v2470_v34, %v2451_v33 }
 0x2b4   :  { %v2510_v38 = vpop.f32.mrf.mxu1 }
 0x2b5   :  { %v2491_v37 = vadd.f32 %v2490_v35, %v2471_v36 }
 0x2b6   :  { %v2530_v39 = vpop.f32.mrf.mxu2 }
 0x2b7   :  { %v2511_v40 = vadd.f32 %v2510_v38, %v2491_v37 }
 0x2b9   :  { %v2531_v41 = vadd.f32 %v2530_v39, %v2511_v40  ;;  %v2550_v42 = vpop.f32.mrf.mxu3 }
 0x2ba   :  { %v2570_v43 = vpop.f32.mrf.mxu0 }
 0x2bb   :  { %v2551_v44 = vadd.f32 %v2550_v42, %v2531_v41 }
 0x2bc   :  { %v2590_v46 = vpop.f32.mrf.mxu1 }
 0x2bd   :  { %v2571_v45 = vadd.f32 %v2570_v43, %v2551_v44 }
 0x2be   :  { %v2610_v47 = vpop.f32.mrf.mxu2 }
 0x2bf   :  { %v2591_v48 = vadd.f32 %v2590_v46, %v2571_v45 }
 0x2c1   :  { %v2611_v49 = vadd.f32 %v2610_v47, %v2591_v48  ;;  %v2630_v50 = vpop.f32.mrf.mxu3 }
 0x2c2   :  { %v2650_v51 = vpop.f32.mrf.mxu0 }
 0x2c3   :  { %v2631_v52 = vadd.f32 %v2630_v50, %v2611_v49 }
 0x2c4   :  { %v2670_v54 = vpop.f32.mrf.mxu1 }
 0x2c5   :  { %v2651_v53 = vadd.f32 %v2650_v51, %v2631_v52 }
 0x2c6   :  { %v2690_v55 = vpop.f32.mrf.mxu2 }
 0x2c7   :  { %v2671_v56 = vadd.f32 %v2670_v54, %v2651_v53 }
 0x2c9   :  { %v2691_v57 = vadd.f32 %v2690_v55, %v2671_v56  ;;  %v2710_v58 = vpop.f32.mrf.mxu3 }
 0x2cb   :  { %v2711_v60 = vadd.f32 %v2710_v58, %v2691_v57 }
 0x2e2   :  { %v2730_v59 = vpop.f32.mrf.mxu0 }
 0x2e3   :  { %v2731_v61 = vadd.f32 %v2730_v59, %v2711_v60 }
 0x2e5   :  { %v2750_v62 = vpop.f32.mrf.mxu1 }
 0x2e6   :  { %v2751_v0 = vadd.f32 %v2750_v62, %v2731_v61 }
 0x2e8   :  { %v2770_v63 = vpop.f32.mrf.mxu2 }
 0x2e9   :  { %v2771_v1 = vadd.f32 %v2770_v63, %v2751_v0 }
 0x2eb   :  { %v2790_v2 = vpop.f32.mrf.mxu3 }
 0x2ec   :  { %v2791_v4 = vadd.f32 %v2790_v2, %v2771_v1 }
 0x304   :  { %v2810_v3 = vpop.f32.mrf.mxu0 }
 0x305   :  { %v2811_v5 = vadd.f32 %v2810_v3, %v2791_v4 }
 0x306   :  { %v2830_v6 = vpop.f32.mrf.mxu1 }
 0x307   :  { %v2831_v8 = vadd.f32 %v2830_v6, %v2811_v5 }
 0x30a   :  { %v2850_v7 = vpop.f32.mrf.mxu2 }
 0x30b   :  { %v2851_v9 = vadd.f32 %v2850_v7, %v2831_v8 }
 0x30d   :  { %v2870_v10 = vpop.f32.mrf.mxu3 }
 0x30e   :  { %v2871_v11 = vadd.f32 %v2870_v10, %v2851_v9 }
 0x312   :  { %v2930_v15 = vpop.f32.mrf.mxu2 }
 0x324   :  { %v2890_v12 = vpop.f32.mrf.mxu0 }
 0x325   :  { %v2891_v13 = vadd.f32 %v2890_v12, %v2871_v11 }
 0x327   :  { %v2910_v14 = vpop.f32.mrf.mxu1 }
 0x328   :  { %v2911_v16 = vadd.f32 %v2910_v14, %v2891_v13 }
 0x32a   :  { %v2931_v17 = vadd.f32 %v2930_v15, %v2911_v16 }
 0x32c   :  { %v2933_v18 = vmul.f32 %v2931_v17, %v2931_v17  ;;  %v2938_v24 = vmul.f32 0.5, %v2931_v17 }
 0x32e   :  { %v2934_v19 = vmul.f32 %v2933_v18, %v2931_v17 }
 0x330   :  { %v2935_v20 = vmul.f32 0.044715, %v2934_v19 }
 0x332   :  { %v2936_v21 = vadd.f32 %v2935_v20, %v2931_v17 }
 0x334   :  { %v2937_v22 = vmul.f32 0.7978846, %v2936_v21 }
 0x336   :  { %2952 = vtanh.f32 %v2937_v22 }
 0x33c   :  { %v2953_v23 = vpop.eup %2952 }
 0x33d   :  { %v2940_v25 = vadd.f32 1.0, %v2953_v23 }
 0x33f   :  { %v2941_v26 = vmul.f32 %v2940_v25, %v2938_v24 }
 0x341   :  { %v2942_v27 = vadd.f32 %v2941_v26, %v2935_v20 }
 0x343   :  { %2944 = vst.msk [vmem:[%s6971_s3] sm:$0xff] %vm2943_vm1, %v2942_v27 }

</bundles_post_ra>
